<compile_context>
chip_gen: v7x
topology: tpu7x:2x2x1
jax: 0.10.0
libtpu: 0.0.40
codegen_flags: <defaults>
</compile_context>

<pallas_src>
from functools import partial

import numpy as np
import jax
import jax.numpy as jnp
from jax.experimental import pallas as pl
from jax.experimental.pallas import tpu as pltpu

NEG_SLOPE = 0.01     # F.leaky_relu default negative_slope
K = 5
PAD = 2
H, W = 3, 5          # fixed by linear_input_size = 3*5*32 in the module
HW = H * W           # 15
CONV_C = 32
CONV_FLAT = CONV_C * HW          # 480
CONV_FLAT_PAD = 512              # 480 padded to lane multiple
MLP_HID = 50
MLP_HID_PAD = 128                # 50 padded to lane multiple
OUT_PAD = 128                    # final layer padded to lane multiple


def _leaky(x):
    return jnp.where(x >= 0, x, NEG_SLOPE * x)


def _round_up(n, m):
    return ((n + m - 1) // m) * m


# ---------------------------------------------------------------------------
# Fused Pallas kernel: conv1..conv5 (as dense matmuls) + MLP1..MLP4
# ---------------------------------------------------------------------------
def _dqn_fused_kernel(x_ref, cw1_ref, cws_ref, cbs_ref,
                      mw1_ref, mws_ref, mbs_ref, o_ref):
    f32 = jnp.float32
    # conv1 (dense form): (TB, 15) @ (15, 512)
    h = jnp.dot(x_ref[...], cw1_ref[...], preferred_element_type=f32)
    h = _leaky(h + cbs_ref[0])
    # conv2..conv5: (TB, 512) @ (512, 512); cols 480..511 stay exactly 0.
    for l in range(4):
        h = jnp.dot(h, cws_ref[l], preferred_element_type=f32)
        h = _leaky(h + cbs_ref[l + 1])
    # MLP head (flatten order already matches torch .view(B,-1)).
    h = _leaky(jnp.dot(h, mw1_ref[...], preferred_element_type=f32) + mbs_ref[0])
    h = _leaky(jnp.dot(h, mws_ref[0], preferred_element_type=f32) + mbs_ref[1])
    h = _leaky(jnp.dot(h, mws_ref[1], preferred_element_type=f32) + mbs_ref[2])
    o = jnp.dot(h, mws_ref[2], preferred_element_type=f32) + mbs_ref[3]
    o_ref[...] = o.astype(o_ref.dtype)


# ---------------------------------------------------------------------------
# One-time weight packing (runs at init, never in the forward path)
# ---------------------------------------------------------------------------
def _spatial_operator():
    """P[kh,kw,p_out,p_in] = 1 iff input spatial p_in feeds output p_out
    through kernel tap (kh,kw) of a 5x5/pad=2 conv on a 3x5 image."""
    P = np.zeros((K, K, HW, HW), np.float32)
    for kh in range(K):
        for kw in range(K):
            for ho in range(H):
                for wo in range(W):
                    hi, wi = ho + kh - PAD, wo + kw - PAD
                    if 0 <= hi < H and 0 <= wi < W:
                        P[kh, kw, ho * W + wo, hi * W + wi] = 1.0
    return jnp.asarray(P)


_SPATIAL_P = _spatial_operator()


def _conv_to_dense(w):
    """w: (Cout, Cin, 5, 5) -> dense (Cin*15, Cout*15) matrix acting on the
    NCHW-flattened activation (index = c*15 + h*5 + w)."""
    cout, cin = w.shape[0], w.shape[1]
    d = jnp.einsum('klpq,oikl->iqop', _SPATIAL_P, w)   # (Cin, HW, Cout, HW)
    return d.reshape(cin * HW, cout * HW)


def _pad2(a, rows, cols):
    return jnp.pad(a, ((0, rows - a.shape[0]), (0, cols - a.shape[1])))


def pack_params(params, outputs):
    """Pre-lay-out all weights into their MXU-friendly, lane-dense forms."""
    assert outputs <= OUT_PAD, "outputs > 128 not supported by this packing"
    cw1 = _pad2(_conv_to_dense(params['conv1_w']), HW, CONV_FLAT_PAD)      # (15, 512)
    cws = jnp.stack([
        _pad2(_conv_to_dense(params[f'conv{l}_w']), CONV_FLAT_PAD, CONV_FLAT_PAD)
        for l in range(2, 6)])                                             # (4, 512, 512)
    cbs = jnp.stack([
        jnp.pad(jnp.repeat(params[f'conv{l}_b'], HW),
                (0, CONV_FLAT_PAD - CONV_FLAT))[None, :]
        for l in range(1, 6)])                                             # (5, 1, 512)
    mw1 = _pad2(params['mlp1_w'].T, CONV_FLAT_PAD, MLP_HID_PAD)            # (512, 128)
    mws = jnp.stack([
        _pad2(params['mlp2_w'].T, MLP_HID_PAD, MLP_HID_PAD),
        _pad2(params['mlp3_w'].T, MLP_HID_PAD, MLP_HID_PAD),
        _pad2(params['mlp4_w'].T, MLP_HID_PAD, OUT_PAD)])                  # (3, 128, 128)
    mbs = jnp.stack([
        jnp.pad(params['mlp1_b'], (0, MLP_HID_PAD - MLP_HID))[None, :],
        jnp.pad(params['mlp2_b'], (0, MLP_HID_PAD - MLP_HID))[None, :],
        jnp.pad(params['mlp3_b'], (0, MLP_HID_PAD - MLP_HID))[None, :],
        jnp.pad(params['mlp4_b'], (0, OUT_PAD - outputs))[None, :]])       # (4, 1, 128)
    return dict(cw1=cw1, cws=cws, cbs=cbs, mw1=mw1, mws=mws, mbs=mbs)


# ---------------------------------------------------------------------------
# Forward pass (single pallas_call)
# ---------------------------------------------------------------------------
@partial(jax.jit, static_argnames=("outputs",))
def dqn_forward(x, packed, *, outputs):
    B = x.shape[0]
    x2 = x.reshape(B, HW).astype(jnp.float32)      # (B,1,3,5) -> (B,15), NCHW order

    tb = min(128, _round_up(B, 8))                 # batch tile (rows per grid step)
    bp = _round_up(B, tb)
    if bp != B:
        x2 = jnp.pad(x2, ((0, bp - B), (0, 0)))

    out = pl.pallas_call(
        _dqn_fused_kernel,
        out_shape=jax.ShapeDtypeStruct((bp, OUT_PAD), jnp.float32),
        grid=(bp // tb,),
        in_specs=[
            pl.BlockSpec((tb, HW), lambda i: (i, 0)),                       # x
            pl.BlockSpec((HW, CONV_FLAT_PAD), lambda i: (0, 0)),            # conv1 dense
            pl.BlockSpec((4, CONV_FLAT_PAD, CONV_FLAT_PAD),
                         lambda i: (0, 0, 0)),                              # conv2..5 dense
            pl.BlockSpec((5, 1, CONV_FLAT_PAD), lambda i: (0, 0, 0)),       # conv biases
            pl.BlockSpec((CONV_FLAT_PAD, MLP_HID_PAD), lambda i: (0, 0)),   # mlp1 w
            pl.BlockSpec((3, MLP_HID_PAD, MLP_HID_PAD),
                         lambda i: (0, 0, 0)),                              # mlp2..4 w
            pl.BlockSpec((4, 1, MLP_HID_PAD), lambda i: (0, 0, 0)),         # mlp biases
        ],
        out_specs=pl.BlockSpec((tb, OUT_PAD), lambda i: (i, 0)),
        compiler_params=pltpu.CompilerParams(
            dimension_semantics=("parallel",),
            vmem_limit_bytes=32 * 1024 * 1024),
    )(x2, packed['cw1'], packed['cws'], packed['cbs'],
      packed['mw1'], packed['mws'], packed['mbs'])

    return out[:B, :outputs]


# ---------------------------------------------------------------------------
# Pure-JAX reference (exact module semantics) for the correctness check
# ---------------------------------------------------------------------------
def dqn_reference(x, params):
    def conv(x, w, b):
        y = jax.lax.conv_general_dilated(
            x, w, (1, 1), ((PAD, PAD), (PAD, PAD)),
            dimension_numbers=('NCHW', 'OIHW', 'NCHW'))
        return y + b[None, :, None, None]
    for l in range(1, 6):
        x = _leaky(conv(x, params[f'conv{l}_w'], params[f'conv{l}_b']))
    x = x.reshape(x.shape[0], -1)
    for l in range(1, 4):
        x = _leaky(x @ params[f'mlp{l}_w'].T + params[f'mlp{l}_b'])
    return x @ params['mlp4_w'].T + params['mlp4_b']


# ---------------------------------------------------------------------------
# Deterministic torch-like init: uniform(-1/sqrt(fan_in), 1/sqrt(fan_in))
# ---------------------------------------------------------------------------
def init_params(key, outputs):
    keys = jax.random.split(key, 18)
    def u(k, shape, fan_in):
        bound = 1.0 / float(fan_in) ** 0.5
        return jax.random.uniform(k, shape, jnp.float32, -bound, bound)
    params = {}
    i = 0
    cin = 1
    for l in range(1, 6):
        params[f'conv{l}_w'] = u(keys[i], (CONV_C, cin, K, K), cin * K * K); i += 1
        params[f'conv{l}_b'] = u(keys[i], (CONV_C,), cin * K * K); i += 1
        cin = CONV_C
    dims = [(CONV_FLAT, MLP_HID), (MLP_HID, MLP_HID),
            (MLP_HID, MLP_HID), (MLP_HID, outputs)]
    for l, (fin, fout) in enumerate(dims, 1):
        params[f'mlp{l}_w'] = u(keys[i], (fout, fin), fin); i += 1   # torch (out, in)
        params[f'mlp{l}_b'] = u(keys[i], (fout,), fin); i += 1
    return params


if __name__ == "__main__":
    outputs = 4
    key = jax.random.PRNGKey(0)
    k_x, k_p = jax.random.split(key)
    # Input implied by the module: (B, 1, 3, 5)  (linear_input_size = 3*5*32)
    x = jax.random.normal(k_x, (2, 1, 3, 5), dtype=jnp.float32)
    params = init_params(k_p, outputs)
    packed = pack_params(params, outputs)

    out = jax.block_until_ready(dqn_forward(x, packed, outputs=outputs))
    assert out.shape == (2, outputs), out.shape

    ref = jax.block_until_ready(dqn_reference(x, params))
    assert jnp.allclose(out, ref, atol=1e-3, rtol=1e-3), (out, ref)

    print("KERNEL_OK")
</pallas_src>

<mosaic_0001>
module attributes {stable_mosaic.version = 11 : i64} {
  func.func @_dqn_fused_kernel(%arg0: i32, %arg1: memref<8x15xf32, #tpu.memory_space<vmem>>, %arg2: memref<15x512xf32, #tpu.memory_space<vmem>>, %arg3: memref<4x512x512xf32, #tpu.memory_space<vmem>>, %arg4: memref<5x1x512xf32, #tpu.memory_space<vmem>>, %arg5: memref<512x128xf32, #tpu.memory_space<vmem>>, %arg6: memref<3x128x128xf32, #tpu.memory_space<vmem>>, %arg7: memref<4x1x128xf32, #tpu.memory_space<vmem>>, %arg8: memref<8x128xf32, #tpu.memory_space<vmem>>) attributes {dimension_semantics = [#tpu.dimension_semantics<parallel>], iteration_bounds = array<i64: 1>, scalar_prefetch = 0 : i64, scratch_operands = 0 : i64, tpu.core_type = #tpu.core_type<tc>, window_params = [{transform_indices = @transform_0, window_bounds = array<i64: 8, 15>}, {pipeline_mode = #tpu.pipeline_mode<synchronous>, transform_indices = @transform_1, window_bounds = array<i64: 15, 512>}, {pipeline_mode = #tpu.pipeline_mode<synchronous>, transform_indices = @transform_2, window_bounds = array<i64: 4, 512, 512>}, {pipeline_mode = #tpu.pipeline_mode<synchronous>, transform_indices = @transform_3, window_bounds = array<i64: 5, 1, 512>}, {pipeline_mode = #tpu.pipeline_mode<synchronous>, transform_indices = @transform_4, window_bounds = array<i64: 512, 128>}, {pipeline_mode = #tpu.pipeline_mode<synchronous>, transform_indices = @transform_5, window_bounds = array<i64: 3, 128, 128>}, {pipeline_mode = #tpu.pipeline_mode<synchronous>, transform_indices = @transform_6, window_bounds = array<i64: 4, 1, 128>}, {transform_indices = @transform_7, window_bounds = array<i64: 8, 128>}]} {
    %c0 = arith.constant 0 : index
    %c0_0 = arith.constant 0 : index
    %0 = vector.load %arg1[%c0, %c0_0] : memref<8x15xf32, #tpu.memory_space<vmem>>, vector<8x15xf32>
    %c0_1 = arith.constant 0 : index
    %c0_2 = arith.constant 0 : index
    %1 = vector.load %arg2[%c0_1, %c0_2] : memref<15x512xf32, #tpu.memory_space<vmem>>, vector<15x512xf32>
    %cst = arith.constant dense<0.000000e+00> : vector<8x512xf32>
    %2 = tpu.matmul %0, %1, %cst {dimension_numbers = #tpu.dot_dimension_numbers<[1], [0], [0], [1], [0, 0, 1, 1], [], []>} : vector<8x15xf32>, vector<15x512xf32>, vector<8x512xf32> -> vector<8x512xf32>
    %c0_3 = arith.constant 0 : index
    %c0_4 = arith.constant 0 : index
    %c0_5 = arith.constant 0 : index
    %3 = vector.load %arg4[%c0_3, %c0_4, %c0_5] : memref<5x1x512xf32, #tpu.memory_space<vmem>>, vector<1x1x512xf32>
    %4 = vector.shape_cast %3 : vector<1x1x512xf32> to vector<1x512xf32>
    %5 = vector.broadcast %4 : vector<1x512xf32> to vector<8x512xf32>
    %6 = arith.addf %2, %5 : vector<8x512xf32>
    %cst_6 = arith.constant 0.000000e+00 : f32
    %7 = vector.broadcast %cst_6 : f32 to vector<8x512xf32>
    %8 = arith.cmpf oge, %6, %7 : vector<8x512xf32>
    %cst_7 = arith.constant 0.00999999977 : f32
    %9 = vector.broadcast %cst_7 : f32 to vector<8x512xf32>
    %10 = arith.mulf %9, %6 : vector<8x512xf32>
    %11 = arith.select %8, %6, %10 : vector<8x512xi1>, vector<8x512xf32>
    %c0_8 = arith.constant 0 : index
    %c0_9 = arith.constant 0 : index
    %c0_10 = arith.constant 0 : index
    %12 = vector.load %arg3[%c0_8, %c0_9, %c0_10] : memref<4x512x512xf32, #tpu.memory_space<vmem>>, vector<1x512x512xf32>
    %13 = vector.shape_cast %12 : vector<1x512x512xf32> to vector<512x512xf32>
    %cst_11 = arith.constant dense<0.000000e+00> : vector<8x512xf32>
    %14 = tpu.matmul %11, %13, %cst_11 {dimension_numbers = #tpu.dot_dimension_numbers<[1], [0], [0], [1], [0, 0, 1, 1], [], []>} : vector<8x512xf32>, vector<512x512xf32>, vector<8x512xf32> -> vector<8x512xf32>
    %c1 = arith.constant 1 : index
    %c0_12 = arith.constant 0 : index
    %c0_13 = arith.constant 0 : index
    %15 = vector.load %arg4[%c1, %c0_12, %c0_13] : memref<5x1x512xf32, #tpu.memory_space<vmem>>, vector<1x1x512xf32>
    %16 = vector.shape_cast %15 : vector<1x1x512xf32> to vector<1x512xf32>
    %17 = vector.broadcast %16 : vector<1x512xf32> to vector<8x512xf32>
    %18 = arith.addf %14, %17 : vector<8x512xf32>
    %cst_14 = arith.constant 0.000000e+00 : f32
    %19 = vector.broadcast %cst_14 : f32 to vector<8x512xf32>
    %20 = arith.cmpf oge, %18, %19 : vector<8x512xf32>
    %cst_15 = arith.constant 0.00999999977 : f32
    %21 = vector.broadcast %cst_15 : f32 to vector<8x512xf32>
    %22 = arith.mulf %21, %18 : vector<8x512xf32>
    %23 = arith.select %20, %18, %22 : vector<8x512xi1>, vector<8x512xf32>
    %c1_16 = arith.constant 1 : index
    %c0_17 = arith.constant 0 : index
    %c0_18 = arith.constant 0 : index
    %24 = vector.load %arg3[%c1_16, %c0_17, %c0_18] : memref<4x512x512xf32, #tpu.memory_space<vmem>>, vector<1x512x512xf32>
    %25 = vector.shape_cast %24 : vector<1x512x512xf32> to vector<512x512xf32>
    %cst_19 = arith.constant dense<0.000000e+00> : vector<8x512xf32>
    %26 = tpu.matmul %23, %25, %cst_19 {dimension_numbers = #tpu.dot_dimension_numbers<[1], [0], [0], [1], [0, 0, 1, 1], [], []>} : vector<8x512xf32>, vector<512x512xf32>, vector<8x512xf32> -> vector<8x512xf32>
    %c2 = arith.constant 2 : index
    %c0_20 = arith.constant 0 : index
    %c0_21 = arith.constant 0 : index
    %27 = vector.load %arg4[%c2, %c0_20, %c0_21] : memref<5x1x512xf32, #tpu.memory_space<vmem>>, vector<1x1x512xf32>
    %28 = vector.shape_cast %27 : vector<1x1x512xf32> to vector<1x512xf32>
    %29 = vector.broadcast %28 : vector<1x512xf32> to vector<8x512xf32>
    %30 = arith.addf %26, %29 : vector<8x512xf32>
    %cst_22 = arith.constant 0.000000e+00 : f32
    %31 = vector.broadcast %cst_22 : f32 to vector<8x512xf32>
    %32 = arith.cmpf oge, %30, %31 : vector<8x512xf32>
    %cst_23 = arith.constant 0.00999999977 : f32
    %33 = vector.broadcast %cst_23 : f32 to vector<8x512xf32>
    %34 = arith.mulf %33, %30 : vector<8x512xf32>
    %35 = arith.select %32, %30, %34 : vector<8x512xi1>, vector<8x512xf32>
    %c2_24 = arith.constant 2 : index
    %c0_25 = arith.constant 0 : index
    %c0_26 = arith.constant 0 : index
    %36 = vector.load %arg3[%c2_24, %c0_25, %c0_26] : memref<4x512x512xf32, #tpu.memory_space<vmem>>, vector<1x512x512xf32>
    %37 = vector.shape_cast %36 : vector<1x512x512xf32> to vector<512x512xf32>
    %cst_27 = arith.constant dense<0.000000e+00> : vector<8x512xf32>
    %38 = tpu.matmul %35, %37, %cst_27 {dimension_numbers = #tpu.dot_dimension_numbers<[1], [0], [0], [1], [0, 0, 1, 1], [], []>} : vector<8x512xf32>, vector<512x512xf32>, vector<8x512xf32> -> vector<8x512xf32>
    %c3 = arith.constant 3 : index
    %c0_28 = arith.constant 0 : index
    %c0_29 = arith.constant 0 : index
    %39 = vector.load %arg4[%c3, %c0_28, %c0_29] : memref<5x1x512xf32, #tpu.memory_space<vmem>>, vector<1x1x512xf32>
    %40 = vector.shape_cast %39 : vector<1x1x512xf32> to vector<1x512xf32>
    %41 = vector.broadcast %40 : vector<1x512xf32> to vector<8x512xf32>
    %42 = arith.addf %38, %41 : vector<8x512xf32>
    %cst_30 = arith.constant 0.000000e+00 : f32
    %43 = vector.broadcast %cst_30 : f32 to vector<8x512xf32>
    %44 = arith.cmpf oge, %42, %43 : vector<8x512xf32>
    %cst_31 = arith.constant 0.00999999977 : f32
    %45 = vector.broadcast %cst_31 : f32 to vector<8x512xf32>
    %46 = arith.mulf %45, %42 : vector<8x512xf32>
    %47 = arith.select %44, %42, %46 : vector<8x512xi1>, vector<8x512xf32>
    %c3_32 = arith.constant 3 : index
    %c0_33 = arith.constant 0 : index
    %c0_34 = arith.constant 0 : index
    %48 = vector.load %arg3[%c3_32, %c0_33, %c0_34] : memref<4x512x512xf32, #tpu.memory_space<vmem>>, vector<1x512x512xf32>
    %49 = vector.shape_cast %48 : vector<1x512x512xf32> to vector<512x512xf32>
    %cst_35 = arith.constant dense<0.000000e+00> : vector<8x512xf32>
    %50 = tpu.matmul %47, %49, %cst_35 {dimension_numbers = #tpu.dot_dimension_numbers<[1], [0], [0], [1], [0, 0, 1, 1], [], []>} : vector<8x512xf32>, vector<512x512xf32>, vector<8x512xf32> -> vector<8x512xf32>
    %c4 = arith.constant 4 : index
    %c0_36 = arith.constant 0 : index
    %c0_37 = arith.constant 0 : index
    %51 = vector.load %arg4[%c4, %c0_36, %c0_37] : memref<5x1x512xf32, #tpu.memory_space<vmem>>, vector<1x1x512xf32>
    %52 = vector.shape_cast %51 : vector<1x1x512xf32> to vector<1x512xf32>
    %53 = vector.broadcast %52 : vector<1x512xf32> to vector<8x512xf32>
    %54 = arith.addf %50, %53 : vector<8x512xf32>
    %cst_38 = arith.constant 0.000000e+00 : f32
    %55 = vector.broadcast %cst_38 : f32 to vector<8x512xf32>
    %56 = arith.cmpf oge, %54, %55 : vector<8x512xf32>
    %cst_39 = arith.constant 0.00999999977 : f32
    %57 = vector.broadcast %cst_39 : f32 to vector<8x512xf32>
    %58 = arith.mulf %57, %54 : vector<8x512xf32>
    %59 = arith.select %56, %54, %58 : vector<8x512xi1>, vector<8x512xf32>
    %c0_40 = arith.constant 0 : index
    %c0_41 = arith.constant 0 : index
    %60 = vector.load %arg5[%c0_40, %c0_41] : memref<512x128xf32, #tpu.memory_space<vmem>>, vector<512x128xf32>
    %cst_42 = arith.constant dense<0.000000e+00> : vector<8x128xf32>
    %61 = tpu.matmul %59, %60, %cst_42 {dimension_numbers = #tpu.dot_dimension_numbers<[1], [0], [0], [1], [0, 0, 1, 1], [], []>} : vector<8x512xf32>, vector<512x128xf32>, vector<8x128xf32> -> vector<8x128xf32>
    %c0_43 = arith.constant 0 : index
    %c0_44 = arith.constant 0 : index
    %c0_45 = arith.constant 0 : index
    %62 = vector.load %arg7[%c0_43, %c0_44, %c0_45] : memref<4x1x128xf32, #tpu.memory_space<vmem>>, vector<1x1x128xf32>
    %63 = vector.shape_cast %62 : vector<1x1x128xf32> to vector<1x128xf32>
    %64 = vector.broadcast %63 : vector<1x128xf32> to vector<8x128xf32>
    %65 = arith.addf %61, %64 : vector<8x128xf32>
    %cst_46 = arith.constant 0.000000e+00 : f32
    %66 = vector.broadcast %cst_46 : f32 to vector<8x128xf32>
    %67 = arith.cmpf oge, %65, %66 : vector<8x128xf32>
    %cst_47 = arith.constant 0.00999999977 : f32
    %68 = vector.broadcast %cst_47 : f32 to vector<8x128xf32>
    %69 = arith.mulf %68, %65 : vector<8x128xf32>
    %70 = arith.select %67, %65, %69 : vector<8x128xi1>, vector<8x128xf32>
    %c0_48 = arith.constant 0 : index
    %c0_49 = arith.constant 0 : index
    %c0_50 = arith.constant 0 : index
    %71 = vector.load %arg6[%c0_48, %c0_49, %c0_50] : memref<3x128x128xf32, #tpu.memory_space<vmem>>, vector<1x128x128xf32>
    %72 = vector.shape_cast %71 : vector<1x128x128xf32> to vector<128x128xf32>
    %cst_51 = arith.constant dense<0.000000e+00> : vector<8x128xf32>
    %73 = tpu.matmul %70, %72, %cst_51 {dimension_numbers = #tpu.dot_dimension_numbers<[1], [0], [0], [1], [0, 0, 1, 1], [], []>} : vector<8x128xf32>, vector<128x128xf32>, vector<8x128xf32> -> vector<8x128xf32>
    %c1_52 = arith.constant 1 : index
    %c0_53 = arith.constant 0 : index
    %c0_54 = arith.constant 0 : index
    %74 = vector.load %arg7[%c1_52, %c0_53, %c0_54] : memref<4x1x128xf32, #tpu.memory_space<vmem>>, vector<1x1x128xf32>
    %75 = vector.shape_cast %74 : vector<1x1x128xf32> to vector<1x128xf32>
    %76 = vector.broadcast %75 : vector<1x128xf32> to vector<8x128xf32>
    %77 = arith.addf %73, %76 : vector<8x128xf32>
    %cst_55 = arith.constant 0.000000e+00 : f32
    %78 = vector.broadcast %cst_55 : f32 to vector<8x128xf32>
    %79 = arith.cmpf oge, %77, %78 : vector<8x128xf32>
    %cst_56 = arith.constant 0.00999999977 : f32
    %80 = vector.broadcast %cst_56 : f32 to vector<8x128xf32>
    %81 = arith.mulf %80, %77 : vector<8x128xf32>
    %82 = arith.select %79, %77, %81 : vector<8x128xi1>, vector<8x128xf32>
    %c1_57 = arith.constant 1 : index
    %c0_58 = arith.constant 0 : index
    %c0_59 = arith.constant 0 : index
    %83 = vector.load %arg6[%c1_57, %c0_58, %c0_59] : memref<3x128x128xf32, #tpu.memory_space<vmem>>, vector<1x128x128xf32>
    %84 = vector.shape_cast %83 : vector<1x128x128xf32> to vector<128x128xf32>
    %cst_60 = arith.constant dense<0.000000e+00> : vector<8x128xf32>
    %85 = tpu.matmul %82, %84, %cst_60 {dimension_numbers = #tpu.dot_dimension_numbers<[1], [0], [0], [1], [0, 0, 1, 1], [], []>} : vector<8x128xf32>, vector<128x128xf32>, vector<8x128xf32> -> vector<8x128xf32>
    %c2_61 = arith.constant 2 : index
    %c0_62 = arith.constant 0 : index
    %c0_63 = arith.constant 0 : index
    %86 = vector.load %arg7[%c2_61, %c0_62, %c0_63] : memref<4x1x128xf32, #tpu.memory_space<vmem>>, vector<1x1x128xf32>
    %87 = vector.shape_cast %86 : vector<1x1x128xf32> to vector<1x128xf32>
    %88 = vector.broadcast %87 : vector<1x128xf32> to vector<8x128xf32>
    %89 = arith.addf %85, %88 : vector<8x128xf32>
    %cst_64 = arith.constant 0.000000e+00 : f32
    %90 = vector.broadcast %cst_64 : f32 to vector<8x128xf32>
    %91 = arith.cmpf oge, %89, %90 : vector<8x128xf32>
    %cst_65 = arith.constant 0.00999999977 : f32
    %92 = vector.broadcast %cst_65 : f32 to vector<8x128xf32>
    %93 = arith.mulf %92, %89 : vector<8x128xf32>
    %94 = arith.select %91, %89, %93 : vector<8x128xi1>, vector<8x128xf32>
    %c2_66 = arith.constant 2 : index
    %c0_67 = arith.constant 0 : index
    %c0_68 = arith.constant 0 : index
    %95 = vector.load %arg6[%c2_66, %c0_67, %c0_68] : memref<3x128x128xf32, #tpu.memory_space<vmem>>, vector<1x128x128xf32>
    %96 = vector.shape_cast %95 : vector<1x128x128xf32> to vector<128x128xf32>
    %cst_69 = arith.constant dense<0.000000e+00> : vector<8x128xf32>
    %97 = tpu.matmul %94, %96, %cst_69 {dimension_numbers = #tpu.dot_dimension_numbers<[1], [0], [0], [1], [0, 0, 1, 1], [], []>} : vector<8x128xf32>, vector<128x128xf32>, vector<8x128xf32> -> vector<8x128xf32>
    %c3_70 = arith.constant 3 : index
    %c0_71 = arith.constant 0 : index
    %c0_72 = arith.constant 0 : index
    %98 = vector.load %arg7[%c3_70, %c0_71, %c0_72] : memref<4x1x128xf32, #tpu.memory_space<vmem>>, vector<1x1x128xf32>
    %99 = vector.shape_cast %98 : vector<1x1x128xf32> to vector<1x128xf32>
    %100 = vector.broadcast %99 : vector<1x128xf32> to vector<8x128xf32>
    %101 = arith.addf %97, %100 : vector<8x128xf32>
    %c0_73 = arith.constant 0 : index
    %c0_74 = arith.constant 0 : index
    %102 = vector.load %arg8[%c0_73, %c0_74] : memref<8x128xf32, #tpu.memory_space<vmem>>, vector<8x128xf32>
    tpu.vector_store %arg8[%c0_73, %c0_74], %101 {strides = array<i32>} : memref<8x128xf32, #tpu.memory_space<vmem>>, vector<8x128xf32>,
    return
  }
  func.func @transform_0(%arg0: i32) -> (i32, i32) {
    %c0_i32 = arith.constant 0 : i32
    %c0_i32_0 = arith.constant 0 : i32
    return %arg0, %c0_i32 : i32, i32
  }
  func.func @transform_1(%arg0: i32) -> (i32, i32) {
    %c0_i32 = arith.constant 0 : i32
    %c0_i32_0 = arith.constant 0 : i32
    %c0_i32_1 = arith.constant 0 : i32
    return %c0_i32, %c0_i32_0 : i32, i32
  }
  func.func @transform_2(%arg0: i32) -> (i32, i32, i32) {
    %c0_i32 = arith.constant 0 : i32
    %c0_i32_0 = arith.constant 0 : i32
    %c0_i32_1 = arith.constant 0 : i32
    %c0_i32_2 = arith.constant 0 : i32
    return %c0_i32, %c0_i32_0, %c0_i32_1 : i32, i32, i32
  }
  func.func @transform_3(%arg0: i32) -> (i32, i32, i32) {
    %c0_i32 = arith.constant 0 : i32
    %c0_i32_0 = arith.constant 0 : i32
    %c0_i32_1 = arith.constant 0 : i32
    %c0_i32_2 = arith.constant 0 : i32
    return %c0_i32, %c0_i32_0, %c0_i32_1 : i32, i32, i32
  }
  func.func @transform_4(%arg0: i32) -> (i32, i32) {
    %c0_i32 = arith.constant 0 : i32
    %c0_i32_0 = arith.constant 0 : i32
    %c0_i32_1 = arith.constant 0 : i32
    return %c0_i32, %c0_i32_0 : i32, i32
  }
  func.func @transform_5(%arg0: i32) -> (i32, i32, i32) {
    %c0_i32 = arith.constant 0 : i32
    %c0_i32_0 = arith.constant 0 : i32
    %c0_i32_1 = arith.constant 0 : i32
    %c0_i32_2 = arith.constant 0 : i32
    return %c0_i32, %c0_i32_0, %c0_i32_1 : i32, i32, i32
  }
  func.func @transform_6(%arg0: i32) -> (i32, i32, i32) {
    %c0_i32 = arith.constant 0 : i32
    %c0_i32_0 = arith.constant 0 : i32
    %c0_i32_1 = arith.constant 0 : i32
    %c0_i32_2 = arith.constant 0 : i32
    return %c0_i32, %c0_i32_0, %c0_i32_1 : i32, i32, i32
  }
  func.func @transform_7(%arg0: i32) -> (i32, i32) {
    %c0_i32 = arith.constant 0 : i32
    %c0_i32_0 = arith.constant 0 : i32
    return %arg0, %c0_i32 : i32, i32
  }
}

</mosaic_0001>

<bundles_post_ra>
// kernel: dqn_forward.1
= control target key start
LH: loop header
LB: loop body
LE: loop exit
PB: predicated region body
PF: predicated region fallthrough
CT: control target
= control target key end

     0   :  { %12 = vsyncpa [#allocation3], 0  ;;  %s5016_s0 = inlined_call_operand.vmem [shape: f32[8,15], index: 0, kind: input, shape index: {}]   ;;  %s5017_s1 = inlined_call_operand.hbm [shape: f32[15,512], index: 1, kind: input, shape index: {}]   ;;  %s5018_s2 = inlined_call_operand.hbm [shape: f32[4,512,512], index: 2, kind: input, shape index: {}]   ;;  %s5019_s3 = inlined_call_operand.hbm [shape: f32[5,1,512], index: 3, kind: input, shape index: {}]   ;;  %s5020_s4 = inlined_call_operand.hbm [shape: f32[512,128], index: 4, kind: input, shape index: {}]   ;;  %s5021_s5 = inlined_call_operand.hbm [shape: f32[3,128,128], index: 5, kind: input, shape index: {}]   ;;  %s5022_s6 = inlined_call_operand.hbm [shape: f32[4,1,128], index: 6, kind: input, shape index: {}]   ;;  %s5023_s7 = inlined_call_operand.vmem [shape: f32[8,128], index: 7, kind: output, shape index: {}]  }
   0x1   :  { %13 = vsyncpa [#allocation5], 0 }
   0x2   :  { %14 = vsyncpa [#allocation8], 0 }
   0x3   :  { %15 = vsyncpa [#allocation11], 0  ;;  %s4724_s24 = smov [#allocation4]   ;;  %s4725_s26 = smov [#allocation7]  }
   0x4   :  { %s35_s25 = sshll.u32 %s4724_s24, 4  ;;  %s59_s27 = sshll.u32 %s4725_s26, 4  ;;  %s36_s25 = int_to_ptr.vmem [resolvable:$true] %s35_s25  ;;  %s4782_s27 = int_to_ptr.vmem [resolvable:$true] %s59_s27 }
   0x5   :  { %s4584_s30 = scalar_lea.hbm %s5018_s2, 131072 }
   0x6   :  { %p4585_p0 = scmp.ne.s32.totalorder %s5018_s2, %s4584_s30  ;;  %p4588_p1 = scmp.lt.u32.totalorder %s4584_s30, %s5018_s2 }
   0x8   :  { %p4590_p2 = pnand %p4588_p1, %p4585_p0 }
   0xa   :  { %4593 = shalt.err (!%p4590_p2)
}
   0xb   :  { %s4594_s12 = scalar_lea.vmem %s36_s25, 131072  ;;  %p4599_p4 = scmp.lt.s32.totalorder %s36_s25, %s36_s25 }
   0xc   :  { %p4595_p3 = scmp.ne.s32.totalorder %s36_s25, %s4594_s12  ;;  %p4600_p5 = scmp.lt.s32.totalorder %s4594_s12, %s4594_s12 }
   0xe   :  { %p4601_p6 = por %p4600_p5, %p4599_p4 }
  0x10   :  { %p4602_p7 = pnand %p4601_p6, %p4595_p3 }
  0x12   :  { %4605 = shalt.err (!%p4602_p7)
}
  0x13   :  { %s4726_s13 = smov 512   ;;  %s4727_s14 = smov 32  }
  0x14   :  { %41 = dma.hbm_to_vmem [thread:$0]  %s5018_s2, 131072, %s36_s25, [#allocation5], %s4726_s13, %s4726_s13, %s4727_s14  }
  0x15   :  { %s4606_s19 = scalar_lea.hbm %s5020_s4, 8192 }
  0x16   :  { %p4607_p8 = scmp.ne.s32.totalorder %s5020_s4, %s4606_s19  ;;  %p4610_p9 = scmp.lt.u32.totalorder %s4606_s19, %s5020_s4 }
  0x18   :  { %p4612_p10 = pnand %p4610_p9, %p4607_p8 }
  0x1a   :  { %4615 = shalt.err (!%p4612_p10)
}
  0x1b   :  { %s4616_s24 = scalar_lea.vmem %s4782_s27, 8192  ;;  %p4621_p12 = scmp.lt.s32.totalorder %s4782_s27, %s4782_s27 }
  0x1c   :  { %p4617_p11 = scmp.ne.s32.totalorder %s4782_s27, %s4616_s24  ;;  %p4622_p13 = scmp.lt.s32.totalorder %s4616_s24, %s4616_s24 }
  0x1e   :  { %p4623_p0 = por %p4622_p13, %p4621_p12 }
  0x20   :  { %p4624_p1 = pnand %p4623_p0, %p4617_p11 }
  0x22   :  { %4627 = shalt.err (!%p4624_p1)
}
  0x23   :  { %s4728_s2 = smov 128   ;;  %s4729_s25 = smov 8  }
  0x24   :  { %65 = dma.hbm_to_vmem [thread:$0]  %s5020_s4, 8192, %s4782_s27, [#allocation8], %s4728_s2, %s4728_s2, %s4729_s25  }
  0x25   :  { %s4730_s29 = smov [#allocation2]   ;;  %s4731_s8 = smov [#allocation6]  }
  0x26   :  { %s23_s30 = sshll.u32 %s4730_s29, 4  ;;  %s47_s9 = sshll.u32 %s4731_s8, 4  ;;  %s24_s30 = int_to_ptr.vmem [resolvable:$true] %s23_s30  ;;  %s4819_s9 = int_to_ptr.vmem [resolvable:$true] %s47_s9 }
  0x27   :  { %s4628_s12 = scalar_lea.hbm %s5017_s1, 1024 }
  0x28   :  { %p4629_p2 = scmp.ne.s32.totalorder %s5017_s1, %s4628_s12  ;;  %p4632_p3 = scmp.lt.u32.totalorder %s4628_s12, %s5017_s1 }
  0x2a   :  { %p4634_p4 = pnand %p4632_p3, %p4629_p2 }
  0x2c   :  { %4637 = shalt.err (!%p4634_p4)
}
  0x2d   :  { %s4638_s4 = scalar_lea.vmem %s24_s30, 1024  ;;  %p4643_p6 = scmp.lt.s32.totalorder %s24_s30, %s24_s30 }
  0x2e   :  { %p4639_p5 = scmp.ne.s32.totalorder %s24_s30, %s4638_s4  ;;  %p4644_p7 = scmp.lt.s32.totalorder %s4638_s4, %s4638_s4 }
  0x30   :  { %p4645_p8 = por %p4644_p7, %p4643_p6 }
  0x32   :  { %p4646_p9 = pnand %p4645_p8, %p4639_p5 }
  0x34   :  { %4649 = shalt.err (!%p4646_p9)
}
  0x35   :  { %29 = dma.hbm_to_vmem [thread:$0]  %s5017_s1, 1024, %s24_s30, [#allocation3], %s4726_s13, %s4726_s13, %s4727_s14  }
  0x36   :  { %s4650_s22 = scalar_lea.hbm %s5019_s3, 320 }
  0x37   :  { %p4651_p10 = scmp.ne.s32.totalorder %s5019_s3, %s4650_s22  ;;  %p4654_p11 = scmp.lt.u32.totalorder %s4650_s22, %s5019_s3 }
  0x39   :  { %p4656_p12 = pnand %p4654_p11, %p4651_p10 }
  0x3b   :  { %4659 = shalt.err (!%p4656_p12)
}
  0x3c   :  { %s4660_s29 = scalar_lea.vmem %s4819_s9, 320  ;;  %p4665_p0 = scmp.lt.s32.totalorder %s4819_s9, %s4819_s9 }
  0x3d   :  { %p4661_p13 = scmp.ne.s32.totalorder %s4819_s9, %s4660_s29  ;;  %p4666_p1 = scmp.lt.s32.totalorder %s4660_s29, %s4660_s29 }
  0x3f   :  { %p4667_p2 = por %p4666_p1, %p4665_p0 }
  0x41   :  { %p4668_p3 = pnand %p4667_p2, %p4661_p13 }
  0x43   :  { %4671 = shalt.err (!%p4668_p3)
}
  0x44   :  { %s4732_s1 = smov 64   ;;  %s4733_s13 = smov 4  }
  0x45   :  { %53 = dma.hbm_to_vmem [thread:$0]  %s5019_s3, 320, %s4819_s9, [#allocation5], %s4732_s1, %s4732_s1, %s4733_s13  }
  0x46   :  { %s4734_s8 = smov [#allocation9]   ;;  %s4735_s11 = smov [#allocation10]  }
  0x47   :  { %s71_s10 = sshll.u32 %s4734_s8, 4  ;;  %s83_s12 = sshll.u32 %s4735_s11, 4  ;;  %s72_s10 = int_to_ptr.vmem [resolvable:$true] %s71_s10  ;;  %s4853_s12 = int_to_ptr.vmem [resolvable:$true] %s83_s12 }
  0x48   :  { %s4672_s17 = scalar_lea.hbm %s5021_s5, 6144 }
  0x49   :  { %p4673_p4 = scmp.ne.s32.totalorder %s5021_s5, %s4672_s17  ;;  %p4676_p5 = scmp.lt.u32.totalorder %s4672_s17, %s5021_s5 }
  0x4b   :  { %p4678_p6 = pnand %p4676_p5, %p4673_p4 }
  0x4d   :  { %4681 = shalt.err (!%p4678_p6)
}
  0x4e   :  { %s4682_s3 = scalar_lea.vmem %s72_s10, 6144  ;;  %p4687_p8 = scmp.lt.s32.totalorder %s72_s10, %s72_s10 }
  0x4f   :  { %p4683_p7 = scmp.ne.s32.totalorder %s72_s10, %s4682_s3  ;;  %p4688_p9 = scmp.lt.s32.totalorder %s4682_s3, %s4682_s3 }
  0x51   :  { %p4689_p10 = por %p4688_p9, %p4687_p8 }
  0x53   :  { %p4690_p11 = pnand %p4689_p10, %p4683_p7 }
  0x55   :  { %4693 = shalt.err (!%p4690_p11)
}
  0x56   :  { %77 = dma.hbm_to_vmem [thread:$0]  %s5021_s5, 6144, %s72_s10, [#allocation8], %s4728_s2, %s4728_s2, %s4729_s25  }
  0x57   :  { %s4694_s23 = scalar_lea.hbm %s5022_s6, 64 }
  0x58   :  { %p4695_p12 = scmp.ne.s32.totalorder %s5022_s6, %s4694_s23  ;;  %p4698_p13 = scmp.lt.u32.totalorder %s4694_s23, %s5022_s6 }
  0x5a   :  { %p4700_p0 = pnand %p4698_p13, %p4695_p12 }
  0x5c   :  { %4703 = shalt.err (!%p4700_p0)
}
  0x5d   :  { %s4704_s1 = scalar_lea.vmem %s4853_s12, 64  ;;  %p4709_p2 = scmp.lt.s32.totalorder %s4853_s12, %s4853_s12 }
  0x5e   :  { %p4705_p1 = scmp.ne.s32.totalorder %s4853_s12, %s4704_s1  ;;  %p4710_p3 = scmp.lt.s32.totalorder %s4704_s1, %s4704_s1 }
  0x60   :  { %p4711_p4 = por %p4710_p3, %p4709_p2 }
  0x62   :  { %p4712_p5 = pnand %p4711_p4, %p4705_p1 }
  0x64   :  { %4715 = shalt.err (!%p4712_p5)
}
  0x65   :  { %s4736_s5 = smov 16   ;;  %s4737_s2 = smov 1  }
  0x66   :  { %89 = dma.hbm_to_vmem [thread:$0]  %s5022_s6, 64, %s4853_s12, [#allocation11], %s4736_s5, %s4736_s5, %s4737_s2  }
  0x67   :  { %4716 = dma.done.wait [#allocation3], 1024  }
  0x68   :  { %4717 = vsyncadd [#allocation3], 4294966272 }
  0x69   :  { %4718 = dma.done.wait [#allocation5], 131392  }
  0x6a   :  { %4719 = vsyncadd [#allocation5], 4294835904 }
  0x6b   :  { %4720 = dma.done.wait [#allocation8], 14336  }
  0x6c   :  { %4721 = vsyncadd [#allocation8], 4294952960 }
  0x6d   :  { %4722 = dma.done.wait [#allocation11], 64  }
  0x6e   :  { %4723 = vsyncadd [#allocation11], 4294967232  ;;  %v4738_v0 = vmov 0.0   ;;  %vm143_vm0 = vcmask 1046528   ;;  %vm4739_vm1 = vmmov 1   ;;  %v110_v2 = vld [vmem:[#allocation2 + $0x8] sm:$0xff] }
  0x6f   :  { %220 = vmatprep.mubr.f32.mxu1 %v4738_v0  ;;  %vm4888_vm2 = vmpackc.low %vm143_vm0, %vm4739_vm1  ;;  %v114_v3 = vld [vmem:[#allocation2 + $0x28] sm:$0x7f]  ;;  %v109_v4 = vld [vmem:[#allocation2] sm:$0xff]  ;;  %vm139_vm3 = vcmask 121856  }
  0x70   :  { %v3362_v5 = vpack.c.bf16 %v114_v3, %v110_v2  ;;  %v113_v6 = vld [vmem:[#allocation2 + $0x20] sm:$0x7f]  ;;  %v112_v7 = vld [vmem:[#allocation2 + $0x18] sm:$0xff]  ;;  %v111_v11 = vld [vmem:[#allocation2 + $0x10] sm:$0xff] }
  0x71   :  { %v3365_v8 = vpack.c.bf16 %v113_v6, %v109_v4  ;;  %v108_v9 = vld [vmem:[%s5016_s0] sm:$0xff]  ;;  %v116_v10 = vld [vmem:[#allocation2 + $0x38] sm:$0x7f]  ;;  %v115_v12 = vld [vmem:[#allocation2 + $0x30] sm:$0x7f] }
  0x72   :  { %3364 = vmatprep.subr.msk.bf16.mxu1 %vm4888_vm2, %v3362_v5  ;;  %v3368_v13 = vpack.c.bf16 %v116_v10, %v112_v7  ;;  %v311_v14 = vld [vmem:[#allocation4 + $0x8] sm:$0xff]  ;;  %v313_v16 = vld [vmem:[#allocation4 + $0x18] sm:$0xff]  ;;  %v3371_v17 = vpack.c.bf16 %v115_v12, %v111_v11  ;;  %v310_v20 = vld [vmem:[#allocation4] sm:$0xff] }
  0x73   :  { %v315_v15 = vld [vmem:[#allocation4 + $0x28] sm:$0xff]  ;;  %3367 = vmatpush1.bf16.msk.msra.mxu1 %vm4888_vm2, %v3365_v8  ;;  %v317_v19 = vld [vmem:[#allocation4 + $0x38] sm:$0xff]  ;;  %v314_v21 = vld [vmem:[#allocation4 + $0x20] sm:$0xff] }
  0x74   :  { %v3374_v18 = vpack.c.bf16 %v315_v15, %v311_v14  ;;  %3370 = vmatprep.subr.msk.bf16.mxu1 %vm4888_vm2, %v3368_v13  ;;  %v3502_v22 = vpack.c.bf16 %v317_v19, %v313_v16  ;;  %v3376_v23 = vpack.c.bf16 %v314_v21, %v310_v20  ;;  %v312_v24 = vld [vmem:[#allocation4 + $0x10] sm:$0xff]  ;;  %v319_v26 = vld [vmem:[#allocation4 + $0x48] sm:$0xff]  ;;  %v321_v28 = vld [vmem:[#allocation4 + $0x58] sm:$0xff] }
  0x75   :  { %v316_v25 = vld [vmem:[#allocation4 + $0x30] sm:$0xff]  ;;  %v323_v27 = vld [vmem:[#allocation4 + $0x68] sm:$0xff]  ;;  %v325_v29 = vld [vmem:[#allocation4 + $0x78] sm:$0xff] }
  0x76   :  { %3375 = vmatprep.subr.bf16.mxu0 %v3374_v18  ;;  %3128 = vmatmul.mubr.msk.f32.vlgmr.msra.gmra.mrb[0].mxu1 %vm139_vm3, %v108_v9  ;;  %v3378_v30 = vpack.c.bf16 %v323_v27, %v319_v26  ;;  %v318_v31 = vld [vmem:[#allocation4 + $0x40] sm:$0xff]  ;;  %v3504_v33 = vpack.c.bf16 %v316_v25, %v312_v24  ;;  %v327_v35 = vld [vmem:[#allocation4 + $0x88] sm:$0xff]  ;;  %v3506_v37 = vpack.c.bf16 %v325_v29, %v321_v28  ;;  %v320_v38 = vld [vmem:[#allocation4 + $0x50] sm:$0xff] }
  0x77   :  { %3377 = vmatpush1.bf16.msra.mxu0 %v3376_v23  ;;  %v322_v32 = vld [vmem:[#allocation4 + $0x60] sm:$0xff]  ;;  %3373 = vmatpush1.bf16.msk.msra.mxu1 %vm4888_vm2, %v3371_v17  ;;  %v331_v36 = vld [vmem:[#allocation4 + $0xa8] sm:$0xff]  ;;  %v324_v39 = vld [vmem:[#allocation4 + $0x70] sm:$0xff] }
  0x78   :  { %291 = vmatprep.mubr.f32.mxu1 %v4738_v0  ;;  %v3380_v34 = vpack.c.bf16 %v322_v32, %v318_v31  ;;  %3503 = vmatprep.subr.bf16.mxu1 %v3502_v22  ;;  %v3382_v40 = vpack.c.bf16 %v331_v36, %v327_v35  ;;  %v326_v41 = vld [vmem:[#allocation4 + $0x80] sm:$0xff]  ;;  %v329_v42 = vld [vmem:[#allocation4 + $0x98] sm:$0xff]  ;;  %v335_v46 = vld [vmem:[#allocation4 + $0xc8] sm:$0xff]  ;;  %v3508_v48 = vpack.c.bf16 %v324_v39, %v320_v38 }
  0x79   :  { %3379 = vmatprep.subr.bf16.mxu0 %v3378_v30  ;;  %v333_v43 = vld [vmem:[#allocation4 + $0xb8] sm:$0xff]  ;;  %v330_v44 = vld [vmem:[#allocation4 + $0xa0] sm:$0xff]  ;;  %v339_v47 = vld [vmem:[#allocation4 + $0xe8] sm:$0xff] }
  0x7a   :  { %3131 = vmatmul.mubr.msk.f32.vlgmr.msra.gmra.mrb[2].mxu1 %vm139_vm3, %v108_v9  ;;  %v3384_v45 = vpack.c.bf16 %v330_v44, %v326_v41  ;;  %v3386_v49 = vpack.c.bf16 %v339_v47, %v335_v46  ;;  %v334_v50 = vld [vmem:[#allocation4 + $0xc0] sm:$0xff]  ;;  %v3510_v52 = vpack.c.bf16 %v333_v43, %v329_v42  ;;  %v328_v53 = vld [vmem:[#allocation4 + $0x90] sm:$0xff]  ;;  %v343_v55 = vld [vmem:[#allocation4 + $0x108] sm:$0xff] }
  0x7b   :  { %3381 = vmatpush1.bf16.msra.mxu0 %v3380_v34  ;;  %3505 = vmatpush1.bf16.msra.mxu1 %v3504_v33  ;;  %v338_v51 = vld [vmem:[#allocation4 + $0xe0] sm:$0xff]  ;;  %v332_v54 = vld [vmem:[#allocation4 + $0xb0] sm:$0xff]  ;;  %v337_v56 = vld [vmem:[#allocation4 + $0xd8] sm:$0xff] }
  0x7c   :  { %3383 = vmatprep.subr.bf16.mxu0 %v3382_v40  ;;  %3507 = vmatprep.subr.bf16.mxu1 %v3506_v37  ;;  %v341_v57 = vld [vmem:[#allocation4 + $0xf8] sm:$0xff]  ;;  %v347_v58 = vld [vmem:[#allocation4 + $0x128] sm:$0xff]  ;;  %v3388_v59 = vpack.c.bf16 %v338_v51, %v334_v50  ;;  %v3512_v60 = vpack.c.bf16 %v332_v54, %v328_v53  ;;  %v336_v61 = vld [vmem:[#allocation4 + $0xd0] sm:$0xff] }
  0x7d   :  { %v3390_v62 = vpack.c.bf16 %v347_v58, %v343_v55  ;;  %v342_v63 = vld [vmem:[#allocation4 + $0x100] sm:$0xff]  ;;  %v3514_v2 = vpack.c.bf16 %v341_v57, %v337_v56  ;;  %v340_v3 = vld [vmem:[#allocation4 + $0xf0] sm:$0xff]  ;;  %v351_v4 = vld [vmem:[#allocation4 + $0x148] sm:$0xff] }
  0x7e   :  { %v346_v1 = vld [vmem:[#allocation4 + $0x120] sm:$0xff]  ;;  %v355_v5 = vld [vmem:[#allocation4 + $0x168] sm:$0xff]  ;;  %v345_v6 = vld [vmem:[#allocation4 + $0x118] sm:$0xff]  ;;  %v3516_v9 = vpack.c.bf16 %v340_v3, %v336_v61 }
  0x7f   :  { %3385 = vmatpush1.bf16.msra.mxu0 %v3384_v45  ;;  %3509 = vmatpush1.bf16.msra.mxu1 %v3508_v48  ;;  %v349_v7 = vld [vmem:[#allocation4 + $0x138] sm:$0xff]  ;;  %v3392_v8 = vpack.c.bf16 %v346_v1, %v342_v63  ;;  %v344_v10 = vld [vmem:[#allocation4 + $0x110] sm:$0xff]  ;;  %v3394_v11 = vpack.c.bf16 %v355_v5, %v351_v4  ;;  %v350_v12 = vld [vmem:[#allocation4 + $0x140] sm:$0xff] }
  0x80   :  { %3387 = vmatprep.subr.bf16.mxu0 %v3386_v49  ;;  %3511 = vmatprep.subr.bf16.mxu1 %v3510_v52  ;;  %v354_v13 = vld [vmem:[#allocation4 + $0x160] sm:$0xff]  ;;  %v3518_v14 = vpack.c.bf16 %v349_v7, %v345_v6  ;;  %v348_v15 = vld [vmem:[#allocation4 + $0x130] sm:$0xff]  ;;  %v359_v16 = vld [vmem:[#allocation4 + $0x188] sm:$0xff] }
  0x81   :  { %v363_v17 = vld [vmem:[#allocation4 + $0x1a8] sm:$0xff]  ;;  %v353_v18 = vld [vmem:[#allocation4 + $0x158] sm:$0xff]  ;;  %v3396_v20 = vpack.c.bf16 %v354_v13, %v350_v12  ;;  %v3520_v21 = vpack.c.bf16 %v348_v15, %v344_v10  ;;  %v352_v22 = vld [vmem:[#allocation4 + $0x150] sm:$0xff] }
  0x82   :  { %v357_v19 = vld [vmem:[#allocation4 + $0x178] sm:$0xff]  ;;  %v3398_v23 = vpack.c.bf16 %v363_v17, %v359_v16  ;;  %v358_v24 = vld [vmem:[#allocation4 + $0x180] sm:$0xff]  ;;  %v356_v27 = vld [vmem:[#allocation4 + $0x170] sm:$0xff] }
  0x83   :  { %3389 = vmatpush1.bf16.msra.mxu0 %v3388_v59  ;;  %3513 = vmatpush1.bf16.msra.mxu1 %v3512_v60  ;;  %v362_v25 = vld [vmem:[#allocation4 + $0x1a0] sm:$0xff]  ;;  %v3522_v26 = vpack.c.bf16 %v357_v19, %v353_v18  ;;  %v367_v28 = vld [vmem:[#allocation4 + $0x1c8] sm:$0xff]  ;;  %v361_v30 = vld [vmem:[#allocation4 + $0x198] sm:$0xff]  ;;  %v3524_v33 = vpack.c.bf16 %v356_v27, %v352_v22 }
  0x84   :  { %3391 = vmatprep.subr.bf16.mxu0 %v3390_v62  ;;  %3515 = vmatprep.subr.bf16.mxu1 %v3514_v2  ;;  %v371_v29 = vld [vmem:[#allocation4 + $0x1e8] sm:$0xff]  ;;  %v365_v31 = vld [vmem:[#allocation4 + $0x1b8] sm:$0xff]  ;;  %v3400_v32 = vpack.c.bf16 %v362_v25, %v358_v24  ;;  %v360_v34 = vld [vmem:[#allocation4 + $0x190] sm:$0xff] }
  0x85   :  { %v3402_v35 = vpack.c.bf16 %v371_v29, %v367_v28  ;;  %v366_v36 = vld [vmem:[#allocation4 + $0x1c0] sm:$0xff]  ;;  %v3526_v38 = vpack.c.bf16 %v365_v31, %v361_v30  ;;  %v364_v39 = vld [vmem:[#allocation4 + $0x1b0] sm:$0xff]  ;;  %v375_v40 = vld [vmem:[#allocation4 + $0x208] sm:$0xff] }
  0x86   :  { %v370_v37 = vld [vmem:[#allocation4 + $0x1e0] sm:$0xff]  ;;  %v379_v41 = vld [vmem:[#allocation4 + $0x228] sm:$0xff]  ;;  %v369_v42 = vld [vmem:[#allocation4 + $0x1d8] sm:$0xff]  ;;  %v3528_v45 = vpack.c.bf16 %v364_v39, %v360_v34 }
  0x87   :  { %3393 = vmatpush1.bf16.msra.mxu0 %v3392_v8  ;;  %3517 = vmatpush1.bf16.msra.mxu1 %v3516_v9  ;;  %v373_v43 = vld [vmem:[#allocation4 + $0x1f8] sm:$0xff]  ;;  %v3404_v44 = vpack.c.bf16 %v370_v37, %v366_v36  ;;  %v368_v46 = vld [vmem:[#allocation4 + $0x1d0] sm:$0xff]  ;;  %v3406_v47 = vpack.c.bf16 %v379_v41, %v375_v40  ;;  %v374_v48 = vld [vmem:[#allocation4 + $0x200] sm:$0xff] }
  0x88   :  { %3395 = vmatprep.subr.bf16.mxu0 %v3394_v11  ;;  %3519 = vmatprep.subr.bf16.mxu1 %v3518_v14  ;;  %v378_v49 = vld [vmem:[#allocation4 + $0x220] sm:$0xff]  ;;  %v3530_v50 = vpack.c.bf16 %v373_v43, %v369_v42  ;;  %v372_v51 = vld [vmem:[#allocation4 + $0x1f0] sm:$0xff]  ;;  %v383_v52 = vld [vmem:[#allocation4 + $0x248] sm:$0xff] }
  0x89   :  { %v387_v53 = vld [vmem:[#allocation4 + $0x268] sm:$0xff]  ;;  %v377_v54 = vld [vmem:[#allocation4 + $0x218] sm:$0xff]  ;;  %v3408_v56 = vpack.c.bf16 %v378_v49, %v374_v48  ;;  %v3532_v57 = vpack.c.bf16 %v372_v51, %v368_v46  ;;  %v376_v58 = vld [vmem:[#allocation4 + $0x210] sm:$0xff] }
  0x8a   :  { %v381_v55 = vld [vmem:[#allocation4 + $0x238] sm:$0xff]  ;;  %v3410_v59 = vpack.c.bf16 %v387_v53, %v383_v52  ;;  %v382_v60 = vld [vmem:[#allocation4 + $0x240] sm:$0xff]  ;;  %v380_v63 = vld [vmem:[#allocation4 + $0x230] sm:$0xff] }
  0x8b   :  { %3397 = vmatpush1.bf16.msra.mxu0 %v3396_v20  ;;  %3521 = vmatpush1.bf16.msra.mxu1 %v3520_v21  ;;  %v386_v61 = vld [vmem:[#allocation4 + $0x260] sm:$0xff]  ;;  %v3534_v62 = vpack.c.bf16 %v381_v55, %v377_v54  ;;  %v391_v1 = vld [vmem:[#allocation4 + $0x288] sm:$0xff]  ;;  %v385_v3 = vld [vmem:[#allocation4 + $0x258] sm:$0xff]  ;;  %v3536_v6 = vpack.c.bf16 %v380_v63, %v376_v58 }
  0x8c   :  { %3399 = vmatprep.subr.bf16.mxu0 %v3398_v23  ;;  %3523 = vmatprep.subr.bf16.mxu1 %v3522_v26  ;;  %v395_v2 = vld [vmem:[#allocation4 + $0x2a8] sm:$0xff]  ;;  %v389_v4 = vld [vmem:[#allocation4 + $0x278] sm:$0xff]  ;;  %v3412_v5 = vpack.c.bf16 %v386_v61, %v382_v60  ;;  %v384_v7 = vld [vmem:[#allocation4 + $0x250] sm:$0xff] }
  0x8d   :  { %v3414_v8 = vpack.c.bf16 %v395_v2, %v391_v1  ;;  %v390_v9 = vld [vmem:[#allocation4 + $0x280] sm:$0xff]  ;;  %v3538_v11 = vpack.c.bf16 %v389_v4, %v385_v3  ;;  %v388_v12 = vld [vmem:[#allocation4 + $0x270] sm:$0xff]  ;;  %v399_v13 = vld [vmem:[#allocation4 + $0x2c8] sm:$0xff] }
  0x8e   :  { %v394_v10 = vld [vmem:[#allocation4 + $0x2a0] sm:$0xff]  ;;  %v403_v14 = vld [vmem:[#allocation4 + $0x2e8] sm:$0xff]  ;;  %v393_v15 = vld [vmem:[#allocation4 + $0x298] sm:$0xff]  ;;  %v3540_v18 = vpack.c.bf16 %v388_v12, %v384_v7 }
  0x8f   :  { %3401 = vmatpush1.bf16.msra.mxu0 %v3400_v32  ;;  %3525 = vmatpush1.bf16.msra.mxu1 %v3524_v33  ;;  %v397_v16 = vld [vmem:[#allocation4 + $0x2b8] sm:$0xff]  ;;  %v3416_v17 = vpack.c.bf16 %v394_v10, %v390_v9  ;;  %v392_v19 = vld [vmem:[#allocation4 + $0x290] sm:$0xff]  ;;  %v3418_v20 = vpack.c.bf16 %v403_v14, %v399_v13  ;;  %v398_v21 = vld [vmem:[#allocation4 + $0x2c0] sm:$0xff] }
  0x90   :  { %3403 = vmatprep.subr.bf16.mxu0 %v3402_v35  ;;  %3527 = vmatprep.subr.bf16.mxu1 %v3526_v38  ;;  %v402_v22 = vld [vmem:[#allocation4 + $0x2e0] sm:$0xff]  ;;  %v3542_v23 = vpack.c.bf16 %v397_v16, %v393_v15  ;;  %v396_v24 = vld [vmem:[#allocation4 + $0x2b0] sm:$0xff]  ;;  %v407_v25 = vld [vmem:[#allocation4 + $0x308] sm:$0xff] }
  0x91   :  { %v411_v26 = vld [vmem:[#allocation4 + $0x328] sm:$0xff]  ;;  %v401_v27 = vld [vmem:[#allocation4 + $0x2d8] sm:$0xff]  ;;  %v3420_v29 = vpack.c.bf16 %v402_v22, %v398_v21  ;;  %v3544_v30 = vpack.c.bf16 %v396_v24, %v392_v19  ;;  %v400_v31 = vld [vmem:[#allocation4 + $0x2d0] sm:$0xff]  ;;  %v119_v24 = vlaneseq }
  0x92   :  { %v405_v28 = vld [vmem:[#allocation4 + $0x2f8] sm:$0xff]  ;;  %v3422_v32 = vpack.c.bf16 %v411_v26, %v407_v25  ;;  %v406_v33 = vld [vmem:[#allocation4 + $0x300] sm:$0xff]  ;;  %v404_v36 = vld [vmem:[#allocation4 + $0x2f0] sm:$0xff] }
  0x93   :  { %3405 = vmatpush1.bf16.msra.mxu0 %v3404_v44  ;;  %3529 = vmatpush1.bf16.msra.mxu1 %v3528_v45  ;;  %v410_v34 = vld [vmem:[#allocation4 + $0x320] sm:$0xff]  ;;  %v3546_v35 = vpack.c.bf16 %v405_v28, %v401_v27  ;;  %v415_v37 = vld [vmem:[#allocation4 + $0x348] sm:$0xff]  ;;  %v409_v39 = vld [vmem:[#allocation4 + $0x318] sm:$0xff]  ;;  %v3548_v42 = vpack.c.bf16 %v404_v36, %v400_v31  ;;  %v4906_v25 = vshrl.u32 %v119_v24, 7 }
  0x94   :  { %3407 = vmatprep.subr.bf16.mxu0 %v3406_v47  ;;  %3531 = vmatprep.subr.bf16.mxu1 %v3530_v50  ;;  %v419_v38 = vld [vmem:[#allocation4 + $0x368] sm:$0xff]  ;;  %v413_v40 = vld [vmem:[#allocation4 + $0x338] sm:$0xff]  ;;  %v3424_v41 = vpack.c.bf16 %v410_v34, %v406_v33  ;;  %v408_v43 = vld [vmem:[#allocation4 + $0x310] sm:$0xff] }
  0x95   :  { %v3426_v44 = vpack.c.bf16 %v419_v38, %v415_v37  ;;  %v414_v45 = vld [vmem:[#allocation4 + $0x340] sm:$0xff]  ;;  %v3550_v47 = vpack.c.bf16 %v413_v40, %v409_v39  ;;  %v412_v48 = vld [vmem:[#allocation4 + $0x330] sm:$0xff]  ;;  %v423_v49 = vld [vmem:[#allocation4 + $0x388] sm:$0xff]  ;;  %v4909_v26 = vsub.s32 0, %v4906_v25  ;;  %v4914_v28 = vsub.s32 1, %v4906_v25 }
  0x96   :  { %v418_v46 = vld [vmem:[#allocation4 + $0x360] sm:$0xff]  ;;  %v427_v50 = vld [vmem:[#allocation4 + $0x3a8] sm:$0xff]  ;;  %v417_v51 = vld [vmem:[#allocation4 + $0x358] sm:$0xff]  ;;  %v3552_v54 = vpack.c.bf16 %v412_v48, %v408_v43  ;;  %v4921_v31 = vsub.s32 3, %v4906_v25 }
  0x97   :  { %3409 = vmatpush1.bf16.msra.mxu0 %v3408_v56  ;;  %3533 = vmatpush1.bf16.msra.mxu1 %v3532_v57  ;;  %v421_v52 = vld [vmem:[#allocation4 + $0x378] sm:$0xff]  ;;  %v3428_v53 = vpack.c.bf16 %v418_v46, %v414_v45  ;;  %v3430_v55 = vpack.c.bf16 %v427_v50, %v423_v49  ;;  %v416_v57 = vld [vmem:[#allocation4 + $0x350] sm:$0xff]  ;;  %v422_v63 = vld [vmem:[#allocation4 + $0x380] sm:$0xff] }
  0x98   :  { %3411 = vmatprep.subr.bf16.mxu0 %v3410_v59  ;;  %3535 = vmatprep.subr.bf16.mxu1 %v3534_v62  ;;  %v3554_v56 = vpack.c.bf16 %v421_v52, %v417_v51  ;;  %v420_v58 = vld [vmem:[#allocation4 + $0x370] sm:$0xff]  ;;  %v425_v59 = vld [vmem:[#allocation4 + $0x398] sm:$0xff]  ;;  %v426_v1 = vld [vmem:[#allocation4 + $0x3a0] sm:$0xff] }
  0x99   :  { %v429_v60 = vld [vmem:[#allocation4 + $0x3b8] sm:$0xff]  ;;  %v3556_v61 = vpack.c.bf16 %v420_v58, %v416_v57  ;;  %v424_v2 = vld [vmem:[#allocation4 + $0x390] sm:$0xff]  ;;  %v3432_v3 = vpack.c.bf16 %v426_v1, %v422_v63  ;;  %v435_v7 = vld [vmem:[#allocation4 + $0x3e8] sm:$0xff] }
  0x9a   :  { %v3558_v62 = vpack.c.bf16 %v429_v60, %v425_v59  ;;  %v428_v4 = vld [vmem:[#allocation4 + $0x3b0] sm:$0xff]  ;;  %v437_v10 = vld [vmem:[#allocation4 + $0x3f8] sm:$0xff]  ;;  %v434_v12 = vld [vmem:[#allocation4 + $0x3e0] sm:$0xff] }
  0x9b   :  { %3413 = vmatpush1.bf16.msra.mxu0 %v3412_v5  ;;  %3537 = vmatpush1.bf16.msra.mxu1 %v3536_v6  ;;  %v3560_v5 = vpack.c.bf16 %v428_v4, %v424_v2  ;;  %v431_v6 = vld [vmem:[#allocation4 + $0x3c8] sm:$0xff]  ;;  %v432_v15 = vld [vmem:[#allocation4 + $0x3d0] sm:$0xff]  ;;  %v445_v22 = vld [vmem:[#allocation4 + $0x438] sm:$0xff] }
  0x9c   :  { %3415 = vmatprep.subr.bf16.mxu0 %v3414_v8  ;;  %3539 = vmatprep.subr.bf16.mxu1 %v3538_v11  ;;  %v433_v8 = vld [vmem:[#allocation4 + $0x3d8] sm:$0xff]  ;;  %v3434_v9 = vpack.c.bf16 %v435_v7, %v431_v6  ;;  %v430_v11 = vld [vmem:[#allocation4 + $0x3c0] sm:$0xff]  ;;  %v436_v16 = vld [vmem:[#allocation4 + $0x3f0] sm:$0xff] }
  0x9d   :  { %v3562_v13 = vpack.c.bf16 %v437_v10, %v433_v8  ;;  %v3436_v14 = vpack.c.bf16 %v434_v12, %v430_v11  ;;  %v443_v19 = vld [vmem:[#allocation4 + $0x428] sm:$0xff]  ;;  %v4911_v27 = vld [vmem:[#allocation6] sm:$0xf]  ;;  %v440_v38 = vld [vmem:[#allocation4 + $0x410] sm:$0xff] }
  0x9e   :  { %v442_v36 = vld [vmem:[#allocation4 + $0x420] sm:$0xff]  ;;  %v444_v39 = vld [vmem:[#allocation4 + $0x430] sm:$0xff]  ;;  %v447_v40 = vld [vmem:[#allocation4 + $0x448] sm:$0xff] }
  0x9f   :  { %3417 = vmatpush1.bf16.msra.mxu0 %v3416_v17  ;;  %3541 = vmatpush1.bf16.msra.mxu1 %v3540_v18  ;;  %v3564_v17 = vpack.c.bf16 %v436_v16, %v432_v15  ;;  %v439_v18 = vld [vmem:[#allocation4 + $0x408] sm:$0xff]  ;;  %v453_v45 = vld [vmem:[#allocation4 + $0x478] sm:$0xff]  ;;  %v3568_v49 = vpack.c.bf16 %v444_v39, %v440_v38  ;;  %v446_v50 = vld [vmem:[#allocation4 + $0x440] sm:$0xff] }
  0xa0   :  { %3419 = vmatprep.subr.bf16.mxu0 %v3418_v20  ;;  %3543 = vmatprep.subr.bf16.mxu1 %v3542_v23  ;;  %v441_v20 = vld [vmem:[#allocation4 + $0x418] sm:$0xff]  ;;  %v3438_v21 = vpack.c.bf16 %v443_v19, %v439_v18  ;;  %v451_v43 = vld [vmem:[#allocation4 + $0x468] sm:$0xff]  ;;  %v450_v51 = vld [vmem:[#allocation4 + $0x460] sm:$0xff] }
  0xa1   :  { %v3566_v23 = vpack.c.bf16 %v445_v22, %v441_v20  ;;  %v452_v57 = vld [vmem:[#allocation4 + $0x470] sm:$0xff]  ;;  %v455_v58 = vld [vmem:[#allocation4 + $0x488] sm:$0xff]  ;;  %v461_v63 = vld [vmem:[#allocation4 + $0x4b8] sm:$0xff]  ;;  %v3444_v2 = vpack.c.bf16 %v450_v51, %v446_v50 }
  0xa2   :  { %v454_v4 = vld [vmem:[#allocation4 + $0x480] sm:$0xff]  ;;  %v456_v8 = vld [vmem:[#allocation4 + $0x490] sm:$0xff]  ;;  %v463_v10 = vld [vmem:[#allocation4 + $0x4c8] sm:$0xff] }
  0xa3   :  { %3421 = vmatpush1.bf16.msra.mxu0 %v3420_v29  ;;  %3545 = vmatpush1.bf16.msra.mxu1 %v3544_v30  ;;  %v122_v29 = vrot.slane %v4911_v27, %v4909_v26  ;;  %v126_v30 = vrot.slane %v4911_v27, %v4914_v28  ;;  %v467_v12 = vld [vmem:[#allocation4 + $0x4e8] sm:$0xff]  ;;  %v466_v18 = vld [vmem:[#allocation4 + $0x4e0] sm:$0xff]  ;;  %v468_v22 = vld [vmem:[#allocation4 + $0x4f0] sm:$0xff] }
  0xa4   :  { %3423 = vmatprep.subr.bf16.mxu0 %v3422_v32  ;;  %3547 = vmatprep.subr.bf16.mxu1 %v3546_v35  ;;  %v438_v35 = vld [vmem:[#allocation4 + $0x400] sm:$0xff]  ;;  %v3450_v19 = vpack.c.bf16 %v467_v12, %v463_v10  ;;  %v475_v24 = vld [vmem:[#allocation4 + $0x528] sm:$0xff]  ;;  %v472_v38 = vld [vmem:[#allocation4 + $0x510] sm:$0xff] }
  0xa5   :  { %v3440_v48 = vpack.c.bf16 %v442_v36, %v438_v35  ;;  %v474_v35 = vld [vmem:[#allocation4 + $0x520] sm:$0xff]  ;;  %v476_v39 = vld [vmem:[#allocation4 + $0x530] sm:$0xff] }
  0xa6   :  { %v480_v51 = vld [vmem:[#allocation4 + $0x550] sm:$0xff] }
  0xa7   :  { %3425 = vmatpush1.bf16.msra.mxu0 %v3424_v41  ;;  %3549 = vmatpush1.bf16.msra.mxu1 %v3548_v42  ;;  %v134_v41 = vrot.slane %v4911_v27, %v4921_v31  ;;  %v496_v12 = vld [vmem:[#allocation4 + $0x5d0] sm:$0xff] }
  0xa8   :  { %3427 = vmatprep.subr.bf16.mxu0 %v3426_v44  ;;  %3551 = vmatprep.subr.bf16.mxu1 %v3550_v47  ;;  %v449_v44 = vld [vmem:[#allocation4 + $0x458] sm:$0xff] }
  0xab   :  { %3429 = vmatpush1.bf16.msra.mxu0 %v3428_v53  ;;  %3553 = vmatpush1.bf16.msra.mxu1 %v3552_v54  ;;  %v3442_v54 = vpack.c.bf16 %v451_v43, %v447_v40  ;;  %v479_v40 = vld [vmem:[#allocation4 + $0x548] sm:$0xff]  ;;  %v485_v43 = vld [vmem:[#allocation4 + $0x578] sm:$0xff] }
  0xac   :  { %3431 = vmatprep.subr.bf16.mxu0 %v3430_v55  ;;  %3555 = vmatprep.subr.bf16.mxu1 %v3554_v56  ;;  %v3570_v55 = vpack.c.bf16 %v453_v45, %v449_v44  ;;  %v448_v56 = vld [vmem:[#allocation4 + $0x450] sm:$0xff]  ;;  %v3584_v45 = vpack.c.bf16 %v476_v39, %v472_v38  ;;  %v514_v38 = vld [vmem:[#allocation4 + $0x660] sm:$0xff] }
  0xaf   :  { %3557 = vmatpush1.bf16.msra.mxu1 %v3556_v61  ;;  %3433 = vmatpush1.bf16.msra.mxu0 %v3432_v3  ;;  %v459_v61 = vld [vmem:[#allocation4 + $0x4a8] sm:$0xff]  ;;  %v3572_v3 = vpack.c.bf16 %v452_v57, %v448_v56  ;;  %v493_v56 = vld [vmem:[#allocation4 + $0x5b8] sm:$0xff] }
  0xb0   :  { %3559 = vmatprep.subr.bf16.mxu1 %v3558_v62  ;;  %3435 = vmatprep.subr.bf16.mxu0 %v3434_v9  ;;  %v457_v62 = vld [vmem:[#allocation4 + $0x498] sm:$0xff]  ;;  %v3446_v6 = vpack.c.bf16 %v459_v61, %v455_v58  ;;  %v460_v9 = vld [vmem:[#allocation4 + $0x4b0] sm:$0xff] }
  0xb1   :  { %v3574_v7 = vpack.c.bf16 %v461_v63, %v457_v62  ;;  %v3576_v16 = vpack.c.bf16 %v460_v9, %v456_v8  ;;  %v488_v63 = vld [vmem:[#allocation4 + $0x590] sm:$0xff]  ;;  %v494_v8 = vld [vmem:[#allocation4 + $0x5c0] sm:$0xff] }
  0xb2   :  { %v498_v9 = vld [vmem:[#allocation4 + $0x5e0] sm:$0xff] }
  0xb3   :  { %3561 = vmatpush1.bf16.msra.mxu1 %v3560_v5  ;;  %3437 = vmatpush1.bf16.msra.mxu0 %v3436_v14  ;;  %v458_v5 = vld [vmem:[#allocation4 + $0x4a0] sm:$0xff]  ;;  %v469_v14 = vld [vmem:[#allocation4 + $0x4f8] sm:$0xff] }
  0xb4   :  { %3563 = vmatprep.subr.bf16.mxu1 %v3562_v13  ;;  %3439 = vmatprep.subr.bf16.mxu0 %v3438_v21  ;;  %v465_v13 = vld [vmem:[#allocation4 + $0x4d8] sm:$0xff]  ;;  %v3448_v15 = vpack.c.bf16 %v458_v5, %v454_v4  ;;  %v464_v21 = vld [vmem:[#allocation4 + $0x4d0] sm:$0xff] }
  0xb5   :  { %v3578_v20 = vpack.c.bf16 %v469_v14, %v465_v13  ;;  %v497_v4 = vld [vmem:[#allocation4 + $0x5d8] sm:$0xff]  ;;  %v500_v13 = vld [vmem:[#allocation4 + $0x5f0] sm:$0xff]  ;;  %v503_v14 = vld [vmem:[#allocation4 + $0x608] sm:$0xff] }
  0xb6   :  { %v501_v5 = vld [vmem:[#allocation4 + $0x5f8] sm:$0xff] }
  0xb7   :  { %3565 = vmatpush1.bf16.msra.mxu1 %v3564_v17  ;;  %v462_v17 = vld [vmem:[#allocation4 + $0x4c0] sm:$0xff] }
  0xb8   :  { %3567 = vmatprep.subr.bf16.mxu1 %v3566_v23  ;;  %v471_v23 = vld [vmem:[#allocation4 + $0x508] sm:$0xff] }
  0xb9   :  { %v3454_v36 = vpack.c.bf16 %v475_v24, %v471_v23  ;;  %v504_v24 = vld [vmem:[#allocation4 + $0x610] sm:$0xff] }
 0x149   :  { %v222_v32 = vpop.f32.mrb[0].mxu1 }
 0x14a   :  { %v223_v33 = vadd.f32 %v222_v32, %v122_v29  ;;  %v224_v34 = vpop.f32.mrb[1].mxu1  ;;  %v473_v29 = vld [vmem:[#allocation4 + $0x518] sm:$0xff]  ;;  %v3452_v32 = vpack.c.bf16 %v466_v18, %v462_v17  ;;  %v3468_v18 = vpack.c.bf16 %v498_v9, %v494_v8 }
 0x14b   :  { %v225_v37 = vadd.f32 %v224_v34, %v126_v30  ;;  %v477_v30 = vld [vmem:[#allocation4 + $0x538] sm:$0xff]  ;;  %v470_v34 = vld [vmem:[#allocation4 + $0x500] sm:$0xff] }
 0x14c   :  { %v302_v42 = vmul.f32 0.01, %v223_v33  ;;  %vm298_vm5 = vcmp.ge.f32.partialorder %v223_v33, 0.0  ;;  %v3456_v44 = vpack.c.bf16 %v474_v35, %v470_v34  ;;  %v509_v17 = vld [vmem:[#allocation4 + $0x638] sm:$0xff] }
 0x14d   :  { %vm299_vm4 = vcmp.ge.f32.partialorder %v225_v37, 0.0  ;;  %v303_v46 = vmul.f32 0.01, %v225_v37  ;;  %v4925_v47 = vpop.f32.mrb[2].mxu1  ;;  %v517_v34 = vld [vmem:[#allocation4 + $0x678] sm:$0xff] }
 0x14e   :  { %v295_v52 = vpop.f32.mrb[3].mxu1  ;;  %v306_v60 = vsel %vm298_vm5, %v223_v33, %v302_v42  ;;  %v3580_v33 = vpack.c.bf16 %v468_v22, %v464_v21  ;;  %v481_v42 = vld [vmem:[#allocation4 + $0x558] sm:$0xff]  ;;  %v506_v21 = vld [vmem:[#allocation4 + $0x620] sm:$0xff] }
 0x14f   :  { %v307_v53 = vsel %vm299_vm4, %v225_v37, %v303_v46  ;;  %v296_v59 = vadd.f32 %v295_v52, %v134_v41  ;;  %v3582_v37 = vpack.c.bf16 %v477_v30, %v473_v29  ;;  %v483_v41 = vld [vmem:[#allocation4 + $0x568] sm:$0xff]  ;;  %v478_v46 = vld [vmem:[#allocation4 + $0x540] sm:$0xff]  ;;  %v3586_v50 = vpack.c.bf16 %v485_v43, %v481_v42  ;;  %v484_v52 = vld [vmem:[#allocation4 + $0x570] sm:$0xff] }
 0x150   :  { %653 = vmatprep.mubr.f32.mxu0 %v307_v53  ;;  %795 = vmatprep.mubr.f32.mxu1 %v307_v53  ;;  %v487_v53 = vld [vmem:[#allocation4 + $0x588] sm:$0xff]  ;;  %v3588_v58 = vpack.c.bf16 %v484_v52, %v480_v51  ;;  %v508_v29 = vld [vmem:[#allocation4 + $0x630] sm:$0xff]  ;;  %v522_v51 = vld [vmem:[#allocation4 + $0x6a0] sm:$0xff] }
 0x151   :  { %654 = vmatmul.mubr.f32.vlgmr.msra.gmra.mrb[0].mxu0 %v306_v60  ;;  %796 = vmatmul.mubr.f32.vlgmr.msra.gmra.mrb[4].mxu1 %v306_v60  ;;  %v305_v1 = vmul.f32 0.01, %v296_v59  ;;  %vm301_vm6 = vcmp.ge.f32.partialorder %v296_v59, 0.0  ;;  %v490_v60 = vld [vmem:[#allocation4 + $0x5a0] sm:$0xff]  ;;  %v511_v30 = vld [vmem:[#allocation4 + $0x648] sm:$0xff]  ;;  %v516_v42 = vld [vmem:[#allocation4 + $0x670] sm:$0xff] }
 0x152   :  { %3441 = vmatpush1.bf16.msra.mxu0 %v3440_v48  ;;  %3569 = vmatpush1.bf16.msra.mxu1 %v3568_v49  ;;  %v482_v48 = vld [vmem:[#allocation4 + $0x560] sm:$0xff]  ;;  %v3458_v49 = vpack.c.bf16 %v483_v41, %v479_v40  ;;  %v512_v41 = vld [vmem:[#allocation4 + $0x650] sm:$0xff]  ;;  %v519_v43 = vld [vmem:[#allocation4 + $0x688] sm:$0xff] }
 0x153   :  { %3443 = vmatprep.subr.bf16.mxu0 %v3442_v54  ;;  %3571 = vmatprep.subr.bf16.mxu1 %v3570_v55  ;;  %v309_v11 = vsel %vm301_vm6, %v296_v59, %v305_v1  ;;  %v491_v54 = vld [vmem:[#allocation4 + $0x5a8] sm:$0xff]  ;;  %v489_v55 = vld [vmem:[#allocation4 + $0x598] sm:$0xff]  ;;  %v3460_v57 = vpack.c.bf16 %v482_v48, %v478_v46  ;;  %v486_v59 = vld [vmem:[#allocation4 + $0x580] sm:$0xff] }
 0x154   :  { %724 = vmatprep.mubr.f32.mxu0 %v309_v11  ;;  %866 = vmatprep.mubr.f32.mxu1 %v309_v11  ;;  %v3462_v61 = vpack.c.bf16 %v491_v54, %v487_v53  ;;  %v3590_v62 = vpack.c.bf16 %v493_v56, %v489_v55  ;;  %v492_v1 = vld [vmem:[#allocation4 + $0x5b0] sm:$0xff]  ;;  %v3594_v11 = vpack.c.bf16 %v501_v5, %v497_v4  ;;  %v525_v46 = vld [vmem:[#allocation4 + $0x6b8] sm:$0xff]  ;;  %v527_v56 = vld [vmem:[#allocation4 + $0x6c8] sm:$0xff] }
 0x155   :  { %v520_v54 = vld [vmem:[#allocation4 + $0x690] sm:$0xff]  ;;  %v535_v5 = vld [vmem:[#allocation4 + $0x708] sm:$0xff]  ;;  %v541_v8 = vld [vmem:[#allocation4 + $0x738] sm:$0xff] }
 0x156   :  { %3445 = vmatpush1.bf16.msra.mxu0 %v3444_v2  ;;  %3573 = vmatpush1.bf16.msra.mxu1 %v3572_v3  ;;  %v495_v2 = vld [vmem:[#allocation4 + $0x5c8] sm:$0xff]  ;;  %v524_v55 = vld [vmem:[#allocation4 + $0x6b0] sm:$0xff] }
 0x157   :  { %3447 = vmatprep.subr.bf16.mxu0 %v3446_v6  ;;  %3575 = vmatprep.subr.bf16.mxu1 %v3574_v7  ;;  %v499_v3 = vld [vmem:[#allocation4 + $0x5e8] sm:$0xff]  ;;  %v3464_v6 = vpack.c.bf16 %v490_v60, %v486_v59  ;;  %v3592_v7 = vpack.c.bf16 %v492_v1, %v488_v63  ;;  %v533_v59 = vld [vmem:[#allocation4 + $0x6f8] sm:$0xff]  ;;  %v530_v63 = vld [vmem:[#allocation4 + $0x6e0] sm:$0xff] }
 0x158   :  { %v3466_v10 = vpack.c.bf16 %v499_v3, %v495_v2  ;;  %v528_v3 = vld [vmem:[#allocation4 + $0x6d0] sm:$0xff] }
 0x159   :  { %v532_v4 = vld [vmem:[#allocation4 + $0x6f0] sm:$0xff] }
 0x15a   :  { %3449 = vmatpush1.bf16.msra.mxu0 %v3448_v15  ;;  %3577 = vmatpush1.bf16.msra.mxu1 %v3576_v16  ;;  %v507_v15 = vld [vmem:[#allocation4 + $0x628] sm:$0xff]  ;;  %v505_v16 = vld [vmem:[#allocation4 + $0x618] sm:$0xff] }
 0x15b   :  { %3451 = vmatprep.subr.bf16.mxu0 %v3450_v19  ;;  %3579 = vmatprep.subr.bf16.mxu1 %v3578_v20  ;;  %v3596_v19 = vpack.c.bf16 %v500_v13, %v496_v12  ;;  %v502_v20 = vld [vmem:[#allocation4 + $0x600] sm:$0xff]  ;;  %v3470_v22 = vpack.c.bf16 %v507_v15, %v503_v14  ;;  %v3598_v23 = vpack.c.bf16 %v509_v17, %v505_v16  ;;  %v536_v15 = vld [vmem:[#allocation4 + $0x710] sm:$0xff]  ;;  %v543_v17 = vld [vmem:[#allocation4 + $0x748] sm:$0xff] }
 0x15c   :  { %v3472_v35 = vpack.c.bf16 %v506_v21, %v502_v20  ;;  %v538_v12 = vld [vmem:[#allocation4 + $0x720] sm:$0xff]  ;;  %v540_v16 = vld [vmem:[#allocation4 + $0x730] sm:$0xff]  ;;  %v549_v20 = vld [vmem:[#allocation4 + $0x778] sm:$0xff] }
 0x15e   :  { %3453 = vmatpush1.bf16.msra.mxu0 %v3452_v32  ;;  %3581 = vmatpush1.bf16.msra.mxu1 %v3580_v33  ;;  %v515_v32 = vld [vmem:[#allocation4 + $0x668] sm:$0xff]  ;;  %v513_v33 = vld [vmem:[#allocation4 + $0x658] sm:$0xff] }
 0x15f   :  { %3455 = vmatprep.subr.bf16.mxu0 %v3454_v36  ;;  %3583 = vmatprep.subr.bf16.mxu1 %v3582_v37  ;;  %v3600_v36 = vpack.c.bf16 %v508_v29, %v504_v24  ;;  %v510_v37 = vld [vmem:[#allocation4 + $0x640] sm:$0xff]  ;;  %v3474_v39 = vpack.c.bf16 %v515_v32, %v511_v30  ;;  %v3602_v40 = vpack.c.bf16 %v517_v34, %v513_v33  ;;  %v544_v32 = vld [vmem:[#allocation4 + $0x750] sm:$0xff]  ;;  %v551_v34 = vld [vmem:[#allocation4 + $0x788] sm:$0xff] }
 0x160   :  { %v3476_v48 = vpack.c.bf16 %v514_v38, %v510_v37  ;;  %v546_v24 = vld [vmem:[#allocation4 + $0x760] sm:$0xff]  ;;  %v548_v33 = vld [vmem:[#allocation4 + $0x770] sm:$0xff]  ;;  %v553_v37 = vld [vmem:[#allocation4 + $0x798] sm:$0xff] }
 0x161   :  { %v557_v38 = vld [vmem:[#allocation4 + $0x7b8] sm:$0xff] }
 0x162   :  { %3457 = vmatpush1.bf16.msra.mxu0 %v3456_v44  ;;  %3585 = vmatpush1.bf16.msra.mxu1 %v3584_v45  ;;  %v523_v44 = vld [vmem:[#allocation4 + $0x6a8] sm:$0xff]  ;;  %v521_v45 = vld [vmem:[#allocation4 + $0x698] sm:$0xff] }
 0x163   :  { %3459 = vmatprep.subr.bf16.mxu0 %v3458_v49  ;;  %3587 = vmatprep.subr.bf16.mxu1 %v3586_v50  ;;  %v3604_v49 = vpack.c.bf16 %v516_v42, %v512_v41  ;;  %v518_v50 = vld [vmem:[#allocation4 + $0x680] sm:$0xff]  ;;  %v3478_v52 = vpack.c.bf16 %v523_v44, %v519_v43  ;;  %v3606_v53 = vpack.c.bf16 %v525_v46, %v521_v45  ;;  %v552_v45 = vld [vmem:[#allocation4 + $0x790] sm:$0xff] }
 0x164   :  { %v3480_v60 = vpack.c.bf16 %v522_v51, %v518_v50  ;;  %v550_v41 = vld [vmem:[#allocation4 + $0x780] sm:$0xff]  ;;  %v3622_v44 = vpack.c.bf16 %v557_v38, %v553_v37  ;;  %v556_v46 = vld [vmem:[#allocation4 + $0x7b0] sm:$0xff]  ;;  %v561_v50 = vld [vmem:[#allocation4 + $0x7d8] sm:$0xff] }
 0x165   :  { %v554_v42 = vld [vmem:[#allocation4 + $0x7a0] sm:$0xff]  ;;  %v565_v51 = vld [vmem:[#allocation4 + $0x7f8] sm:$0xff]  ;;  %v904_v38 = vld [vmem:[#allocation4 + $0x890] sm:$0xff] }
 0x166   :  { %3461 = vmatpush1.bf16.msra.mxu0 %v3460_v57  ;;  %3589 = vmatpush1.bf16.msra.mxu1 %v3588_v58  ;;  %v531_v57 = vld [vmem:[#allocation4 + $0x6e8] sm:$0xff]  ;;  %v529_v58 = vld [vmem:[#allocation4 + $0x6d8] sm:$0xff] }
 0x167   :  { %3463 = vmatprep.subr.bf16.mxu0 %v3462_v61  ;;  %3591 = vmatprep.subr.bf16.mxu1 %v3590_v62  ;;  %v3608_v61 = vpack.c.bf16 %v524_v55, %v520_v54  ;;  %v526_v62 = vld [vmem:[#allocation4 + $0x6c0] sm:$0xff]  ;;  %v3482_v1 = vpack.c.bf16 %v531_v57, %v527_v56  ;;  %v3610_v2 = vpack.c.bf16 %v533_v59, %v529_v58  ;;  %v560_v58 = vld [vmem:[#allocation4 + $0x7d0] sm:$0xff] }
 0x168   :  { %v3484_v9 = vpack.c.bf16 %v530_v63, %v526_v62  ;;  %v558_v54 = vld [vmem:[#allocation4 + $0x7c0] sm:$0xff]  ;;  %v3626_v57 = vpack.c.bf16 %v565_v51, %v561_v50  ;;  %v564_v59 = vld [vmem:[#allocation4 + $0x7f0] sm:$0xff]  ;;  %v891_v62 = vld [vmem:[#allocation4 + $0x828] sm:$0xff] }
 0x169   :  { %v562_v55 = vld [vmem:[#allocation4 + $0x7e0] sm:$0xff]  ;;  %v893_v63 = vld [vmem:[#allocation4 + $0x838] sm:$0xff]  ;;  %v912_v50 = vld [vmem:[#allocation4 + $0x8d0] sm:$0xff] }
 0x16a   :  { %3465 = vmatpush1.bf16.msra.mxu0 %v3464_v6  ;;  %3593 = vmatpush1.bf16.msra.mxu1 %v3592_v7  ;;  %v539_v6 = vld [vmem:[#allocation4 + $0x728] sm:$0xff]  ;;  %v537_v7 = vld [vmem:[#allocation4 + $0x718] sm:$0xff]  ;;  %v916_v51 = vld [vmem:[#allocation4 + $0x8f0] sm:$0xff] }
 0x16b   :  { %3467 = vmatprep.subr.bf16.mxu0 %v3466_v10  ;;  %3595 = vmatprep.subr.bf16.mxu1 %v3594_v11  ;;  %v3612_v10 = vpack.c.bf16 %v532_v4, %v528_v3  ;;  %v534_v11 = vld [vmem:[#allocation4 + $0x700] sm:$0xff]  ;;  %v3486_v13 = vpack.c.bf16 %v539_v6, %v535_v5  ;;  %v3614_v14 = vpack.c.bf16 %v541_v8, %v537_v7  ;;  %v888_v7 = vld [vmem:[#allocation4 + $0x810] sm:$0xff] }
 0x16c   :  { %v3488_v21 = vpack.c.bf16 %v538_v12, %v534_v11  ;;  %v886_v3 = vld [vmem:[#allocation4 + $0x800] sm:$0xff]  ;;  %v892_v8 = vld [vmem:[#allocation4 + $0x830] sm:$0xff]  ;;  %v899_v11 = vld [vmem:[#allocation4 + $0x868] sm:$0xff] }
 0x16d   :  { %v890_v4 = vld [vmem:[#allocation4 + $0x820] sm:$0xff]  ;;  %v897_v12 = vld [vmem:[#allocation4 + $0x858] sm:$0xff] }
 0x16e   :  { %3469 = vmatpush1.bf16.msra.mxu0 %v3468_v18  ;;  %3597 = vmatpush1.bf16.msra.mxu1 %v3596_v19  ;;  %v547_v18 = vld [vmem:[#allocation4 + $0x768] sm:$0xff]  ;;  %v545_v19 = vld [vmem:[#allocation4 + $0x758] sm:$0xff] }
 0x16f   :  { %3471 = vmatprep.subr.bf16.mxu0 %v3470_v22  ;;  %3599 = vmatprep.subr.bf16.mxu1 %v3598_v23  ;;  %v3616_v22 = vpack.c.bf16 %v540_v16, %v536_v15  ;;  %v542_v23 = vld [vmem:[#allocation4 + $0x740] sm:$0xff]  ;;  %v3490_v29 = vpack.c.bf16 %v547_v18, %v543_v17  ;;  %v3618_v30 = vpack.c.bf16 %v549_v20, %v545_v19  ;;  %v896_v19 = vld [vmem:[#allocation4 + $0x850] sm:$0xff] }
 0x170   :  { %v894_v15 = vld [vmem:[#allocation4 + $0x840] sm:$0xff]  ;;  %v900_v20 = vld [vmem:[#allocation4 + $0x870] sm:$0xff] }
 0x171   :  { %v898_v16 = vld [vmem:[#allocation4 + $0x860] sm:$0xff] }
 0x172   :  { %3473 = vmatpush1.bf16.msra.mxu0 %v3472_v35  ;;  %3601 = vmatpush1.bf16.msra.mxu1 %v3600_v36  ;;  %v4929_v35 = vsub.s32 2, %v4906_v25  ;;  %v555_v36 = vld [vmem:[#allocation4 + $0x7a8] sm:$0xff] }
 0x173   :  { %3475 = vmatprep.subr.bf16.mxu0 %v3474_v39  ;;  %3603 = vmatprep.subr.bf16.mxu1 %v3602_v40  ;;  %v3492_v39 = vpack.c.bf16 %v546_v24, %v542_v23  ;;  %v3620_v40 = vpack.c.bf16 %v548_v33, %v544_v32  ;;  %v3494_v43 = vpack.c.bf16 %v555_v36, %v551_v34  ;;  %v907_v23 = vld [vmem:[#allocation4 + $0x8a8] sm:$0xff]  ;;  %v905_v24 = vld [vmem:[#allocation4 + $0x898] sm:$0xff]  ;;  %v902_v33 = vld [vmem:[#allocation4 + $0x880] sm:$0xff] }
 0x174   :  { %v130_v25 = vrot.slane %v4911_v27, %v4929_v35  ;;  %v889_v27 = vld [vmem:[#allocation4 + $0x818] sm:$0xff]  ;;  %v3764_v32 = vpack.c.bf16 %v900_v20, %v896_v19  ;;  %v906_v34 = vld [vmem:[#allocation4 + $0x8a0] sm:$0xff] }
 0x175   :  { %v3758_v6 = vpack.c.bf16 %v893_v63, %v889_v27  ;;  %v924_v27 = vld [vmem:[#allocation4 + $0x930] sm:$0xff]  ;;  %v927_v63 = vld [vmem:[#allocation4 + $0x948] sm:$0xff] }
 0x176   :  { %3477 = vmatpush1.bf16.msra.mxu0 %v3476_v48  ;;  %3605 = vmatpush1.bf16.msra.mxu1 %v3604_v49  ;;  %v559_v48 = vld [vmem:[#allocation4 + $0x7c8] sm:$0xff] }
 0x177   :  { %3479 = vmatprep.subr.bf16.mxu0 %v3478_v52  ;;  %3607 = vmatprep.subr.bf16.mxu1 %v3606_v53  ;;  %v563_v49 = vld [vmem:[#allocation4 + $0x7e8] sm:$0xff]  ;;  %v3496_v52 = vpack.c.bf16 %v554_v42, %v550_v41  ;;  %v3624_v53 = vpack.c.bf16 %v556_v46, %v552_v45  ;;  %v913_v42 = vld [vmem:[#allocation4 + $0x8d8] sm:$0xff]  ;;  %v910_v46 = vld [vmem:[#allocation4 + $0x8c0] sm:$0xff] }
 0x178   :  { %v3498_v56 = vpack.c.bf16 %v563_v49, %v559_v48  ;;  %v915_v41 = vld [vmem:[#allocation4 + $0x8e8] sm:$0xff]  ;;  %v914_v48 = vld [vmem:[#allocation4 + $0x8e0] sm:$0xff] }
 0x17a   :  { %3481 = vmatpush1.bf16.msra.mxu0 %v3480_v60  ;;  %3609 = vmatpush1.bf16.msra.mxu1 %v3608_v61  ;;  %v887_v60 = vld [vmem:[#allocation4 + $0x808] sm:$0xff]  ;;  %v294_v61 = vadd.f32 %v4925_v47, %v130_v25  ;;  %v901_v47 = vld [vmem:[#allocation4 + $0x878] sm:$0xff] }
 0x17b   :  { %3483 = vmatprep.subr.bf16.mxu0 %v3482_v1  ;;  %3611 = vmatprep.subr.bf16.mxu1 %v3610_v2  ;;  %v3500_v1 = vpack.c.bf16 %v562_v55, %v558_v54  ;;  %v3628_v2 = vpack.c.bf16 %v564_v59, %v560_v58  ;;  %v3630_v5 = vpack.c.bf16 %v891_v62, %v887_v60  ;;  %v921_v54 = vld [vmem:[#allocation4 + $0x918] sm:$0xff]  ;;  %v918_v58 = vld [vmem:[#allocation4 + $0x900] sm:$0xff]  ;;  %v920_v62 = vld [vmem:[#allocation4 + $0x910] sm:$0xff] }
 0x17c   :  { %vm300_vm7 = vcmp.ge.f32.partialorder %v294_v61, 0.0  ;;  %v3762_v18 = vpack.c.bf16 %v901_v47, %v897_v12  ;;  %v925_v55 = vld [vmem:[#allocation4 + $0x938] sm:$0xff]  ;;  %v922_v59 = vld [vmem:[#allocation4 + $0x920] sm:$0xff]  ;;  %v935_v12 = vld [vmem:[#allocation4 + $0x988] sm:$0xff] }
 0x17d   :  { %v939_v47 = vld [vmem:[#allocation4 + $0x9a8] sm:$0xff] }
 0x17e   :  { %3485 = vmatpush1.bf16.msra.mxu0 %v3484_v9  ;;  %3613 = vmatpush1.bf16.msra.mxu1 %v3612_v10  ;;  %v895_v9 = vld [vmem:[#allocation4 + $0x848] sm:$0xff]  ;;  %v304_v10 = vmul.f32 0.01, %v294_v61  ;;  %v3654_v19 = vpack.c.bf16 %v939_v47, %v935_v12  ;;  %v972_v12 = vld [vmem:[#allocation4 + $0xab0] sm:$0xff] }
 0x17f   :  { %3487 = vmatprep.subr.bf16.mxu0 %v3486_v13  ;;  %3615 = vmatprep.subr.bf16.mxu1 %v3614_v14  ;;  %v3632_v13 = vpack.c.bf16 %v890_v4, %v886_v3  ;;  %v3760_v14 = vpack.c.bf16 %v892_v8, %v888_v7  ;;  %v3634_v17 = vpack.c.bf16 %v899_v11, %v895_v9  ;;  %v933_v3 = vld [vmem:[#allocation4 + $0x978] sm:$0xff]  ;;  %v930_v7 = vld [vmem:[#allocation4 + $0x960] sm:$0xff]  ;;  %v932_v11 = vld [vmem:[#allocation4 + $0x970] sm:$0xff] }
 0x180   :  { %v3648_v4 = vpack.c.bf16 %v922_v59, %v918_v58  ;;  %v958_v59 = vld [vmem:[#allocation4 + $0xa40] sm:$0xff]  ;;  %v975_v47 = vld [vmem:[#allocation4 + $0xac8] sm:$0xff] }
 0x182   :  { %3489 = vmatpush1.bf16.msra.mxu0 %v3488_v21  ;;  %3617 = vmatpush1.bf16.msra.mxu1 %v3616_v22  ;;  %v903_v21 = vld [vmem:[#allocation4 + $0x888] sm:$0xff]  ;;  %v308_v22 = vsel %vm300_vm7, %v294_v61, %v304_v10  ;;  %v3774_v61 = vpack.c.bf16 %v925_v55, %v921_v54  ;;  %v928_v10 = vld [vmem:[#allocation4 + $0x950] sm:$0xff]  ;;  %v961_v55 = vld [vmem:[#allocation4 + $0xa58] sm:$0xff] }
 0x183   :  { %3491 = vmatprep.subr.bf16.mxu0 %v3490_v29  ;;  %3619 = vmatprep.subr.bf16.mxu1 %v3618_v30  ;;  %v909_v29 = vld [vmem:[#allocation4 + $0x8b8] sm:$0xff]  ;;  %v3636_v30 = vpack.c.bf16 %v898_v16, %v894_v15  ;;  %v3638_v36 = vpack.c.bf16 %v907_v23, %v903_v21  ;;  %v3780_v16 = vpack.c.bf16 %v932_v11, %v928_v10  ;;  %v936_v21 = vld [vmem:[#allocation4 + $0x990] sm:$0xff]  ;;  %v943_v23 = vld [vmem:[#allocation4 + $0x9c8] sm:$0xff] }
 0x184   :  { %v3766_v37 = vpack.c.bf16 %v909_v29, %v905_v24  ;;  %v947_v24 = vld [vmem:[#allocation4 + $0x9e8] sm:$0xff]  ;;  %v945_v29 = vld [vmem:[#allocation4 + $0x9d8] sm:$0xff]  ;;  %v968_v11 = vld [vmem:[#allocation4 + $0xa90] sm:$0xff] }
 0x185   :  { %v963_v54 = vld [vmem:[#allocation4 + $0xa68] sm:$0xff] }
 0x186   :  { %3493 = vmatpush1.bf16.msra.mxu0 %v3492_v39  ;;  %3621 = vmatpush1.bf16.msra.mxu1 %v3620_v40  ;;  %v908_v39 = vld [vmem:[#allocation4 + $0x8b0] sm:$0xff]  ;;  %v911_v40 = vld [vmem:[#allocation4 + $0x8c8] sm:$0xff] }
 0x187   :  { %3495 = vmatprep.subr.bf16.mxu0 %v3494_v43  ;;  %3623 = vmatprep.subr.bf16.mxu1 %v3622_v44  ;;  %v917_v43 = vld [vmem:[#allocation4 + $0x8f8] sm:$0xff]  ;;  %v3640_v44 = vpack.c.bf16 %v906_v34, %v902_v33  ;;  %v3768_v45 = vpack.c.bf16 %v908_v39, %v904_v38  ;;  %v3642_v25 = vpack.c.bf16 %v915_v41, %v911_v40  ;;  %v942_v34 = vld [vmem:[#allocation4 + $0x9c0] sm:$0xff]  ;;  %v944_v39 = vld [vmem:[#allocation4 + $0x9d0] sm:$0xff] }
 0x188   :  { %v3770_v49 = vpack.c.bf16 %v917_v43, %v913_v42  ;;  %v948_v40 = vld [vmem:[#allocation4 + $0x9f0] sm:$0xff]  ;;  %v951_v41 = vld [vmem:[#allocation4 + $0xa08] sm:$0xff]  ;;  %v953_v43 = vld [vmem:[#allocation4 + $0xa18] sm:$0xff] }
 0x189   :  { %v955_v42 = vld [vmem:[#allocation4 + $0xa28] sm:$0xff] }
 0x18a   :  { %3497 = vmatpush1.bf16.msra.mxu0 %v3496_v52  ;;  %3625 = vmatpush1.bf16.msra.mxu1 %v3624_v53  ;;  %v919_v52 = vld [vmem:[#allocation4 + $0x908] sm:$0xff] }
 0x18b   :  { %3499 = vmatprep.subr.bf16.mxu0 %v3498_v56  ;;  %3627 = vmatprep.subr.bf16.mxu1 %v3626_v57  ;;  %v923_v53 = vld [vmem:[#allocation4 + $0x928] sm:$0xff]  ;;  %v3644_v56 = vpack.c.bf16 %v914_v48, %v910_v46  ;;  %v3772_v57 = vpack.c.bf16 %v916_v51, %v912_v50  ;;  %v3788_v46 = vpack.c.bf16 %v948_v40, %v944_v39  ;;  %v950_v48 = vld [vmem:[#allocation4 + $0xa00] sm:$0xff]  ;;  %v952_v51 = vld [vmem:[#allocation4 + $0xa10] sm:$0xff] }
 0x18c   :  { %v3646_v60 = vpack.c.bf16 %v923_v53, %v919_v52  ;;  %v956_v52 = vld [vmem:[#allocation4 + $0xa30] sm:$0xff]  ;;  %v959_v53 = vld [vmem:[#allocation4 + $0xa48] sm:$0xff] }
 0x18d   :  { %v3792_v58 = vpack.c.bf16 %v956_v52, %v952_v51  ;;  %v984_v40 = vld [vmem:[#allocation4 + $0xb10] sm:$0xff] }
 0x18e   :  { %3501 = vmatpush1.bf16.msra.mxu0 %v3500_v1  ;;  %3629 = vmatpush1.bf16.msra.mxu1 %v3628_v2  ;;  %v931_v1 = vld [vmem:[#allocation4 + $0x968] sm:$0xff]  ;;  %v929_v2 = vld [vmem:[#allocation4 + $0x958] sm:$0xff]  ;;  %v992_v52 = vld [vmem:[#allocation4 + $0xb50] sm:$0xff] }
 0x18f   :  { %3631 = vmatprep.subr.bf16.mxu0 %v3630_v5  ;;  %3759 = vmatprep.subr.bf16.mxu1 %v3758_v6  ;;  %v3776_v5 = vpack.c.bf16 %v924_v27, %v920_v62  ;;  %v926_v6 = vld [vmem:[#allocation4 + $0x940] sm:$0xff]  ;;  %v3650_v8 = vpack.c.bf16 %v931_v1, %v927_v63  ;;  %v3778_v9 = vpack.c.bf16 %v933_v3, %v929_v2  ;;  %v960_v27 = vld [vmem:[#allocation4 + $0xa50] sm:$0xff]  ;;  %v967_v1 = vld [vmem:[#allocation4 + $0xa88] sm:$0xff] }
 0x190   :  { %v3652_v15 = vpack.c.bf16 %v930_v7, %v926_v6  ;;  %v964_v63 = vld [vmem:[#allocation4 + $0xa70] sm:$0xff]  ;;  %v971_v2 = vld [vmem:[#allocation4 + $0xaa8] sm:$0xff]  ;;  %v969_v3 = vld [vmem:[#allocation4 + $0xa98] sm:$0xff] }
 0x191   :  { %725 = vmatmul.mubr.f32.vlgmr.msra.gmra.mrb[0].mxu0 %v308_v22  ;;  %867 = vmatmul.mubr.f32.vlgmr.msra.gmra.mrb[4].mxu1 %v308_v22  ;;  %v940_v22 = vld [vmem:[#allocation4 + $0x9b0] sm:$0xff]  ;;  %v3796_v6 = vpack.c.bf16 %v964_v63, %v960_v27  ;;  %v966_v7 = vld [vmem:[#allocation4 + $0xa80] sm:$0xff] }
 0x192   :  { %3633 = vmatpush1.bf16.msra.mxu0 %v3632_v13  ;;  %3761 = vmatpush1.bf16.msra.mxu1 %v3760_v14  ;;  %v937_v13 = vld [vmem:[#allocation4 + $0x998] sm:$0xff]  ;;  %v3784_v33 = vpack.c.bf16 %v940_v22, %v936_v21  ;;  %v976_v22 = vld [vmem:[#allocation4 + $0xad0] sm:$0xff]  ;;  %v1002_v27 = vld [vmem:[#allocation4 + $0xba0] sm:$0xff] }
 0x193   :  { %3635 = vmatprep.subr.bf16.mxu0 %v3634_v17  ;;  %3763 = vmatprep.subr.bf16.mxu1 %v3762_v18  ;;  %v941_v14 = vld [vmem:[#allocation4 + $0x9b8] sm:$0xff]  ;;  %v934_v17 = vld [vmem:[#allocation4 + $0x980] sm:$0xff]  ;;  %v1000_v63 = vld [vmem:[#allocation4 + $0xb90] sm:$0xff] }
 0x194   :  { %v938_v18 = vld [vmem:[#allocation4 + $0x9a0] sm:$0xff]  ;;  %v3782_v20 = vpack.c.bf16 %v941_v14, %v937_v13  ;;  %v979_v13 = vld [vmem:[#allocation4 + $0xae8] sm:$0xff]  ;;  %v977_v14 = vld [vmem:[#allocation4 + $0xad8] sm:$0xff] }
 0x196   :  { %3637 = vmatpush1.bf16.msra.mxu0 %v3636_v30  ;;  %3765 = vmatpush1.bf16.msra.mxu1 %v3764_v32  ;;  %v949_v30 = vld [vmem:[#allocation4 + $0x9f8] sm:$0xff]  ;;  %v3656_v32 = vpack.c.bf16 %v938_v18, %v934_v17  ;;  %v3800_v17 = vpack.c.bf16 %v972_v12, %v968_v11  ;;  %v974_v18 = vld [vmem:[#allocation4 + $0xac0] sm:$0xff] }
 0x197   :  { %3639 = vmatprep.subr.bf16.mxu0 %v3638_v36  ;;  %3767 = vmatprep.subr.bf16.mxu1 %v3766_v37  ;;  %v946_v36 = vld [vmem:[#allocation4 + $0x9e0] sm:$0xff]  ;;  %v3658_v37 = vpack.c.bf16 %v947_v24, %v943_v23  ;;  %v3786_v38 = vpack.c.bf16 %v949_v30, %v945_v29  ;;  %v980_v23 = vld [vmem:[#allocation4 + $0xaf0] sm:$0xff]  ;;  %v983_v24 = vld [vmem:[#allocation4 + $0xb08] sm:$0xff] }
 0x198   :  { %v987_v29 = vld [vmem:[#allocation4 + $0xb28] sm:$0xff]  ;;  %v985_v30 = vld [vmem:[#allocation4 + $0xb18] sm:$0xff] }
 0x19a   :  { %3641 = vmatpush1.bf16.msra.mxu0 %v3640_v44  ;;  %3769 = vmatpush1.bf16.msra.mxu1 %v3768_v45  ;;  %v957_v44 = vld [vmem:[#allocation4 + $0xa38] sm:$0xff]  ;;  %v3660_v45 = vpack.c.bf16 %v946_v36, %v942_v34  ;;  %v3804_v34 = vpack.c.bf16 %v980_v23, %v976_v22  ;;  %v982_v36 = vld [vmem:[#allocation4 + $0xb00] sm:$0xff] }
 0x19b   :  { %3643 = vmatprep.subr.bf16.mxu0 %v3642_v25  ;;  %3771 = vmatprep.subr.bf16.mxu1 %v3770_v49  ;;  %v954_v25 = vld [vmem:[#allocation4 + $0xa20] sm:$0xff]  ;;  %v3662_v49 = vpack.c.bf16 %v955_v42, %v951_v41  ;;  %v3790_v50 = vpack.c.bf16 %v957_v44, %v953_v43  ;;  %v988_v41 = vld [vmem:[#allocation4 + $0xb30] sm:$0xff]  ;;  %v991_v42 = vld [vmem:[#allocation4 + $0xb48] sm:$0xff] }
 0x19c   :  { %v995_v43 = vld [vmem:[#allocation4 + $0xb68] sm:$0xff]  ;;  %v993_v44 = vld [vmem:[#allocation4 + $0xb58] sm:$0xff] }
 0x19e   :  { %3645 = vmatpush1.bf16.msra.mxu0 %v3644_v56  ;;  %3773 = vmatpush1.bf16.msra.mxu1 %v3772_v57  ;;  %v965_v56 = vld [vmem:[#allocation4 + $0xa78] sm:$0xff]  ;;  %v3664_v57 = vpack.c.bf16 %v954_v25, %v950_v48  ;;  %v3808_v48 = vpack.c.bf16 %v988_v41, %v984_v40  ;;  %v990_v25 = vld [vmem:[#allocation4 + $0xb40] sm:$0xff]  ;;  %v1016_v40 = vld [vmem:[#allocation4 + $0xc10] sm:$0xff] }
 0x19f   :  { %3647 = vmatprep.subr.bf16.mxu0 %v3646_v60  ;;  %3775 = vmatprep.subr.bf16.mxu1 %v3774_v61  ;;  %v962_v60 = vld [vmem:[#allocation4 + $0xa60] sm:$0xff]  ;;  %v3666_v61 = vpack.c.bf16 %v963_v54, %v959_v53  ;;  %v3794_v62 = vpack.c.bf16 %v965_v56, %v961_v55  ;;  %v996_v53 = vld [vmem:[#allocation4 + $0xb70] sm:$0xff]  ;;  %v999_v54 = vld [vmem:[#allocation4 + $0xb88] sm:$0xff] }
 0x1a0   :  { %v1003_v55 = vld [vmem:[#allocation4 + $0xba8] sm:$0xff]  ;;  %v1001_v56 = vld [vmem:[#allocation4 + $0xb98] sm:$0xff]  ;;  %v1020_v41 = vld [vmem:[#allocation4 + $0xc30] sm:$0xff] }
 0x1a2   :  { %3649 = vmatpush1.bf16.msra.mxu0 %v3648_v4  ;;  %3777 = vmatpush1.bf16.msra.mxu1 %v3776_v5  ;;  %v973_v4 = vld [vmem:[#allocation4 + $0xab8] sm:$0xff]  ;;  %v3668_v5 = vpack.c.bf16 %v962_v60, %v958_v59  ;;  %v3812_v59 = vpack.c.bf16 %v996_v53, %v992_v52  ;;  %v3686_v60 = vpack.c.bf16 %v1003_v55, %v999_v54  ;;  %v1026_v52 = vld [vmem:[#allocation4 + $0xc60] sm:$0xff]  ;;  %v1024_v54 = vld [vmem:[#allocation4 + $0xc50] sm:$0xff] }
 0x1a3   :  { %3651 = vmatprep.subr.bf16.mxu0 %v3650_v8  ;;  %3779 = vmatprep.subr.bf16.mxu1 %v3778_v9  ;;  %v970_v8 = vld [vmem:[#allocation4 + $0xaa0] sm:$0xff]  ;;  %v3670_v9 = vpack.c.bf16 %v971_v2, %v967_v1  ;;  %v3798_v10 = vpack.c.bf16 %v973_v4, %v969_v3  ;;  %v1004_v2 = vld [vmem:[#allocation4 + $0xbb0] sm:$0xff]  ;;  %v1007_v4 = vld [vmem:[#allocation4 + $0xbc8] sm:$0xff] }
 0x1a4   :  { %v3816_v3 = vpack.c.bf16 %v1004_v2, %v1000_v63  ;;  %v1028_v55 = vld [vmem:[#allocation4 + $0xc70] sm:$0xff]  ;;  %v1030_v2 = vld [vmem:[#allocation4 + $0xc80] sm:$0xff] }
 0x1a6   :  { %3653 = vmatpush1.bf16.msra.mxu0 %v3652_v15  ;;  %3781 = vmatpush1.bf16.msra.mxu1 %v3780_v16  ;;  %v981_v15 = vld [vmem:[#allocation4 + $0xaf8] sm:$0xff]  ;;  %v3672_v16 = vpack.c.bf16 %v970_v8, %v966_v7 }
 0x1a7   :  { %3655 = vmatprep.subr.bf16.mxu0 %v3654_v19  ;;  %3783 = vmatprep.subr.bf16.mxu1 %v3782_v20  ;;  %v978_v19 = vld [vmem:[#allocation4 + $0xae0] sm:$0xff]  ;;  %v3674_v20 = vpack.c.bf16 %v979_v13, %v975_v47  ;;  %v3802_v21 = vpack.c.bf16 %v981_v15, %v977_v14  ;;  %v1013_v8 = vld [vmem:[#allocation4 + $0xbf8] sm:$0xff]  ;;  %v1008_v47 = vld [vmem:[#allocation4 + $0xbd0] sm:$0xff] }
 0x1a8   :  { %v1012_v13 = vld [vmem:[#allocation4 + $0xbf0] sm:$0xff]  ;;  %v1015_v15 = vld [vmem:[#allocation4 + $0xc08] sm:$0xff] }
 0x1a9   :  { %v3820_v14 = vpack.c.bf16 %v1012_v13, %v1008_v47  ;;  %v1038_v13 = vld [vmem:[#allocation4 + $0xcc0] sm:$0xff] }
 0x1aa   :  { %3657 = vmatpush1.bf16.msra.mxu0 %v3656_v32  ;;  %3785 = vmatpush1.bf16.msra.mxu1 %v3784_v33  ;;  %v989_v32 = vld [vmem:[#allocation4 + $0xb38] sm:$0xff]  ;;  %v3676_v33 = vpack.c.bf16 %v978_v19, %v974_v18 }
 0x1ab   :  { %3659 = vmatprep.subr.bf16.mxu0 %v3658_v37  ;;  %3787 = vmatprep.subr.bf16.mxu1 %v3786_v38  ;;  %v986_v37 = vld [vmem:[#allocation4 + $0xb20] sm:$0xff]  ;;  %v3678_v38 = vpack.c.bf16 %v987_v29, %v983_v24  ;;  %v3806_v39 = vpack.c.bf16 %v989_v32, %v985_v30  ;;  %v1021_v19 = vld [vmem:[#allocation4 + $0xc38] sm:$0xff] }
 0x1ae   :  { %3661 = vmatpush1.bf16.msra.mxu0 %v3660_v45  ;;  %3789 = vmatpush1.bf16.msra.mxu1 %v3788_v46  ;;  %v997_v45 = vld [vmem:[#allocation4 + $0xb78] sm:$0xff]  ;;  %v3680_v46 = vpack.c.bf16 %v986_v37, %v982_v36  ;;  %v1014_v36 = vld [vmem:[#allocation4 + $0xc00] sm:$0xff] }
 0x1af   :  { %3663 = vmatprep.subr.bf16.mxu0 %v3662_v49  ;;  %3791 = vmatprep.subr.bf16.mxu1 %v3790_v50  ;;  %v994_v49 = vld [vmem:[#allocation4 + $0xb60] sm:$0xff]  ;;  %v3682_v50 = vpack.c.bf16 %v995_v43, %v991_v42  ;;  %v3810_v51 = vpack.c.bf16 %v997_v45, %v993_v44  ;;  %v1023_v43 = vld [vmem:[#allocation4 + $0xc48] sm:$0xff] }
 0x1b0   :  { %v1027_v44 = vld [vmem:[#allocation4 + $0xc68] sm:$0xff] }
 0x1b2   :  { %3665 = vmatpush1.bf16.msra.mxu0 %v3664_v57  ;;  %3793 = vmatpush1.bf16.msra.mxu1 %v3792_v58  ;;  %v1005_v57 = vld [vmem:[#allocation4 + $0xbb8] sm:$0xff]  ;;  %v3684_v58 = vpack.c.bf16 %v994_v49, %v990_v25 }
 0x1b3   :  { %3667 = vmatprep.subr.bf16.mxu0 %v3666_v61  ;;  %3795 = vmatprep.subr.bf16.mxu1 %v3794_v62  ;;  %v3814_v61 = vpack.c.bf16 %v1005_v57, %v1001_v56  ;;  %v998_v62 = vld [vmem:[#allocation4 + $0xb80] sm:$0xff]  ;;  %v1031_v56 = vld [vmem:[#allocation4 + $0xc88] sm:$0xff] }
 0x1b4   :  { %v3688_v1 = vpack.c.bf16 %v1002_v27, %v998_v62  ;;  %v1037_v62 = vld [vmem:[#allocation4 + $0xcb8] sm:$0xff] }
 0x1b6   :  { %3669 = vmatpush1.bf16.msra.mxu0 %v3668_v5  ;;  %3797 = vmatpush1.bf16.msra.mxu1 %v3796_v6  ;;  %v1011_v5 = vld [vmem:[#allocation4 + $0xbe8] sm:$0xff]  ;;  %v1009_v6 = vld [vmem:[#allocation4 + $0xbd8] sm:$0xff] }
 0x1b7   :  { %3671 = vmatprep.subr.bf16.mxu0 %v3670_v9  ;;  %3799 = vmatprep.subr.bf16.mxu1 %v3798_v10  ;;  %v3690_v7 = vpack.c.bf16 %v1011_v5, %v1007_v4  ;;  %v1006_v9 = vld [vmem:[#allocation4 + $0xbc0] sm:$0xff]  ;;  %v3818_v11 = vpack.c.bf16 %v1013_v8, %v1009_v6  ;;  %v1032_v6 = vld [vmem:[#allocation4 + $0xc90] sm:$0xff]  ;;  %v1039_v8 = vld [vmem:[#allocation4 + $0xcc8] sm:$0xff] }
 0x1b8   :  { %v1010_v10 = vld [vmem:[#allocation4 + $0xbe0] sm:$0xff] }
 0x1b9   :  { %v3692_v12 = vpack.c.bf16 %v1010_v10, %v1006_v9  ;;  %v1043_v9 = vld [vmem:[#allocation4 + $0xce8] sm:$0xff]  ;;  %v1041_v10 = vld [vmem:[#allocation4 + $0xcd8] sm:$0xff] }
 0x1ba   :  { %3673 = vmatpush1.bf16.msra.mxu0 %v3672_v16  ;;  %3801 = vmatpush1.bf16.msra.mxu1 %v3800_v17  ;;  %v1019_v16 = vld [vmem:[#allocation4 + $0xc28] sm:$0xff]  ;;  %v1017_v17 = vld [vmem:[#allocation4 + $0xc18] sm:$0xff] }
 0x1bb   :  { %3675 = vmatprep.subr.bf16.mxu0 %v3674_v20  ;;  %3803 = vmatprep.subr.bf16.mxu1 %v3802_v21  ;;  %v3694_v18 = vpack.c.bf16 %v1019_v16, %v1015_v15  ;;  %v3822_v20 = vpack.c.bf16 %v1021_v19, %v1017_v17  ;;  %v4934_v21 = vld [vmem:[#allocation6 + $0x4] sm:$0xf]  ;;  %v3706_v15 = vpack.c.bf16 %v1043_v9, %v1039_v8  ;;  %v1040_v17 = vld [vmem:[#allocation4 + $0xcd0] sm:$0xff]  ;;  %v1047_v19 = vld [vmem:[#allocation4 + $0xd08] sm:$0xff] }
 0x1bc   :  { %v572_v22 = vrot.slane %v4934_v21, %v4909_v26  ;;  %v576_v23 = vrot.slane %v4934_v21, %v4914_v28  ;;  %v584_v24 = vrot.slane %v4934_v21, %v4921_v31  ;;  %v1072_v9 = vld [vmem:[#allocation4 + $0xdd0] sm:$0xff] }
 0x1be   :  { %3677 = vmatpush1.bf16.msra.mxu0 %v3676_v33  ;;  %3805 = vmatpush1.bf16.msra.mxu1 %v3804_v34 }
 0x1bf   :  { %3679 = vmatprep.subr.bf16.mxu0 %v3678_v38  ;;  %3807 = vmatprep.subr.bf16.mxu1 %v3806_v39  ;;  %v1018_v39 = vld [vmem:[#allocation4 + $0xc20] sm:$0xff] }
 0x1c0   :  { %v3696_v49 = vpack.c.bf16 %v1018_v39, %v1014_v36  ;;  %v1055_v39 = vld [vmem:[#allocation4 + $0xd48] sm:$0xff] }
 0x1c2   :  { %3681 = vmatpush1.bf16.msra.mxu0 %v3680_v46  ;;  %3809 = vmatpush1.bf16.msra.mxu1 %v3808_v48  ;;  %v1025_v46 = vld [vmem:[#allocation4 + $0xc58] sm:$0xff] }
 0x1c3   :  { %3683 = vmatprep.subr.bf16.mxu0 %v3682_v50  ;;  %3811 = vmatprep.subr.bf16.mxu1 %v3810_v51  ;;  %v1029_v48 = vld [vmem:[#allocation4 + $0xc78] sm:$0xff]  ;;  %v3824_v50 = vpack.c.bf16 %v1020_v41, %v1016_v40  ;;  %v1022_v51 = vld [vmem:[#allocation4 + $0xc40] sm:$0xff]  ;;  %v1059_v40 = vld [vmem:[#allocation4 + $0xd68] sm:$0xff] }
 0x1c4   :  { %v3700_v63 = vpack.c.bf16 %v1026_v52, %v1022_v51  ;;  %v1057_v41 = vld [vmem:[#allocation4 + $0xd58] sm:$0xff]  ;;  %v1063_v51 = vld [vmem:[#allocation4 + $0xd88] sm:$0xff] }
 0x1c5   :  { %v1067_v52 = vld [vmem:[#allocation4 + $0xda8] sm:$0xff] }
 0x1c6   :  { %3685 = vmatpush1.bf16.msra.mxu0 %v3684_v58  ;;  %3813 = vmatpush1.bf16.msra.mxu1 %v3812_v59  ;;  %v3698_v58 = vpack.c.bf16 %v1027_v44, %v1023_v43  ;;  %v3826_v59 = vpack.c.bf16 %v1029_v48, %v1025_v46  ;;  %v1058_v46 = vld [vmem:[#allocation4 + $0xd60] sm:$0xff]  ;;  %v3714_v48 = vpack.c.bf16 %v1059_v40, %v1055_v39  ;;  %v1088_v40 = vld [vmem:[#allocation4 + $0xe50] sm:$0xff] }
 0x1c7   :  { %3687 = vmatprep.subr.bf16.mxu0 %v3686_v60  ;;  %3815 = vmatprep.subr.bf16.mxu1 %v3814_v61  ;;  %v1035_v60 = vld [vmem:[#allocation4 + $0xca8] sm:$0xff]  ;;  %v1033_v61 = vld [vmem:[#allocation4 + $0xc98] sm:$0xff] }
 0x1c8   :  { %v3702_v4 = vpack.c.bf16 %v1035_v60, %v1031_v56  ;;  %v3830_v5 = vpack.c.bf16 %v1037_v62, %v1033_v61  ;;  %v1064_v61 = vld [vmem:[#allocation4 + $0xd90] sm:$0xff] }
 0x1c9   :  { %v1068_v62 = vld [vmem:[#allocation4 + $0xdb0] sm:$0xff] }
 0x1ca   :  { %3689 = vmatpush1.bf16.msra.mxu0 %v3688_v1  ;;  %3817 = vmatpush1.bf16.msra.mxu1 %v3816_v3  ;;  %v3828_v1 = vpack.c.bf16 %v1028_v55, %v1024_v54  ;;  %v1034_v3 = vld [vmem:[#allocation4 + $0xca0] sm:$0xff]  ;;  %v1069_v54 = vld [vmem:[#allocation4 + $0xdb8] sm:$0xff] }
 0x1cb   :  { %3691 = vmatprep.subr.bf16.mxu0 %v3690_v7  ;;  %3819 = vmatprep.subr.bf16.mxu1 %v3818_v11  ;;  %v1036_v7 = vld [vmem:[#allocation4 + $0xcb0] sm:$0xff]  ;;  %v1045_v11 = vld [vmem:[#allocation4 + $0xcf8] sm:$0xff] }
 0x1cc   :  { %v3832_v47 = vpack.c.bf16 %v1036_v7, %v1032_v6  ;;  %v3834_v16 = vpack.c.bf16 %v1045_v11, %v1041_v10  ;;  %v1074_v6 = vld [vmem:[#allocation4 + $0xde0] sm:$0xff]  ;;  %v1076_v10 = vld [vmem:[#allocation4 + $0xdf0] sm:$0xff]  ;;  %v1079_v11 = vld [vmem:[#allocation4 + $0xe08] sm:$0xff] }
 0x1ce   :  { %3693 = vmatpush1.bf16.msra.mxu0 %v3692_v12  ;;  %3821 = vmatpush1.bf16.msra.mxu1 %v3820_v14  ;;  %v3704_v12 = vpack.c.bf16 %v1034_v3, %v1030_v2  ;;  %v1042_v14 = vld [vmem:[#allocation4 + $0xce0] sm:$0xff]  ;;  %v1077_v2 = vld [vmem:[#allocation4 + $0xdf8] sm:$0xff] }
 0x1cf   :  { %3695 = vmatprep.subr.bf16.mxu0 %v3694_v18  ;;  %3823 = vmatprep.subr.bf16.mxu1 %v3822_v20  ;;  %v1044_v18 = vld [vmem:[#allocation4 + $0xcf0] sm:$0xff]  ;;  %v1051_v20 = vld [vmem:[#allocation4 + $0xd28] sm:$0xff] }
 0x264   :  { %v726_v29 = vpop.f32.mrb[0].mxu0  ;;  %v4942_v30 = vpop.f32.mrb[4].mxu1 }
 0x265   :  { %v4534_v32 = vadd.f32 %v726_v29, %v572_v22  ;;  %v728_v33 = vpop.f32.mrb[1].mxu0  ;;  %v870_v34 = vpop.f32.mrb[5].mxu1  ;;  %v1049_v22 = vld [vmem:[#allocation4 + $0xd18] sm:$0xff]  ;;  %v3836_v29 = vpack.c.bf16 %v1044_v18, %v1040_v17  ;;  %v1082_v17 = vld [vmem:[#allocation4 + $0xe20] sm:$0xff] }
 0x266   :  { %v4535_v37 = vadd.f32 %v728_v33, %v576_v23  ;;  %v4537_v38 = vadd.f32 %v870_v34, %v584_v24  ;;  %v1053_v23 = vld [vmem:[#allocation4 + $0xd38] sm:$0xff]  ;;  %v3708_v24 = vpack.c.bf16 %v1042_v14, %v1038_v13  ;;  %v1050_v33 = vld [vmem:[#allocation4 + $0xd20] sm:$0xff]  ;;  %v3710_v34 = vpack.c.bf16 %v1051_v20, %v1047_v19  ;;  %v1080_v20 = vld [vmem:[#allocation4 + $0xe10] sm:$0xff] }
 0x267   :  { %v877_v42 = vmul.f32 0.01, %v4534_v32  ;;  %vm873_vm8 = vcmp.ge.f32.partialorder %v4534_v32, 0.0  ;;  %v3838_v36 = vpack.c.bf16 %v1053_v23, %v1049_v22  ;;  %v1085_v13 = vld [vmem:[#allocation4 + $0xe38] sm:$0xff]  ;;  %v1084_v22 = vld [vmem:[#allocation4 + $0xe30] sm:$0xff]  ;;  %v1087_v23 = vld [vmem:[#allocation4 + $0xe48] sm:$0xff] }
 0x268   :  { %v878_v45 = vmul.f32 0.01, %v4535_v37  ;;  %vm874_vm9 = vcmp.ge.f32.partialorder %v4535_v37, 0.0  ;;  %v880_v25 = vmul.f32 0.01, %v4537_v38  ;;  %vm876_vm10 = vcmp.ge.f32.partialorder %v4537_v38, 0.0 }
 0x269   :  { %v881_v57 = vsel %vm873_vm8, %v4534_v32, %v877_v42  ;;  %v1046_v32 = vld [vmem:[#allocation4 + $0xd00] sm:$0xff]  ;;  %v1061_v42 = vld [vmem:[#allocation4 + $0xd78] sm:$0xff]  ;;  %vm4741_vm8 = vmmov 0  }
 0x26a   :  { %v882_v53 = vsel %vm874_vm9, %v4535_v37, %v878_v45  ;;  %v884_v27 = vsel %vm876_vm10, %v4537_v38, %v880_v25  ;;  %v1048_v37 = vld [vmem:[#allocation4 + $0xd10] sm:$0xff]  ;;  %v3712_v43 = vpack.c.bf16 %v1050_v33, %v1046_v32  ;;  %v1054_v45 = vld [vmem:[#allocation4 + $0xd40] sm:$0xff]  ;;  %v3842_v25 = vpack.c.bf16 %v1061_v42, %v1057_v41  ;;  %v1093_v32 = vld [vmem:[#allocation4 + $0xe78] sm:$0xff] }
 0x26b   :  { %1229 = vmatprep.mubr.f32.mxu0 %v882_v53  ;;  %1371 = vmatprep.mubr.f32.mxu1 %v882_v53  ;;  %v1052_v38 = vld [vmem:[#allocation4 + $0xd30] sm:$0xff]  ;;  %v1065_v53 = vld [vmem:[#allocation4 + $0xd98] sm:$0xff]  ;;  %v3716_v55 = vpack.c.bf16 %v1058_v46, %v1054_v45  ;;  %v1095_v42 = vld [vmem:[#allocation4 + $0xe88] sm:$0xff] }
 0x26c   :  { %1230 = vmatmul.mubr.f32.vlgmr.msra.gmra.mrb[2].mxu0 %v881_v57  ;;  %1372 = vmatmul.mubr.f32.vlgmr.msra.gmra.mrb[6].mxu1 %v881_v57  ;;  %v3840_v44 = vpack.c.bf16 %v1052_v38, %v1048_v37  ;;  %v1062_v57 = vld [vmem:[#allocation4 + $0xd80] sm:$0xff]  ;;  %v3846_v60 = vpack.c.bf16 %v1069_v54, %v1065_v53  ;;  %v1092_v41 = vld [vmem:[#allocation4 + $0xe70] sm:$0xff]  ;;  %v1101_v45 = vld [vmem:[#allocation4 + $0xeb8] sm:$0xff] }
 0x26d   :  { %3697 = vmatpush1.bf16.msra.mxu0 %v3696_v49  ;;  %3825 = vmatpush1.bf16.msra.mxu1 %v3824_v50  ;;  %v1056_v49 = vld [vmem:[#allocation4 + $0xd50] sm:$0xff]  ;;  %v1090_v37 = vld [vmem:[#allocation4 + $0xe60] sm:$0xff]  ;;  %v1103_v54 = vld [vmem:[#allocation4 + $0xec8] sm:$0xff] }
 0x26e   :  { %1300 = vmatprep.mubr.f32.mxu0 %v884_v27  ;;  %1442 = vmatprep.mubr.f32.mxu1 %v884_v27  ;;  %v1060_v50 = vld [vmem:[#allocation4 + $0xd70] sm:$0xff]  ;;  %v1071_v27 = vld [vmem:[#allocation4 + $0xdc8] sm:$0xff] }
 0x26f   :  { %3699 = vmatprep.subr.bf16.mxu0 %v3698_v58  ;;  %3827 = vmatprep.subr.bf16.mxu1 %v3826_v59  ;;  %v3844_v56 = vpack.c.bf16 %v1060_v50, %v1056_v49  ;;  %v1066_v58 = vld [vmem:[#allocation4 + $0xda0] sm:$0xff]  ;;  %v3718_v59 = vpack.c.bf16 %v1067_v52, %v1063_v51  ;;  %v1096_v52 = vld [vmem:[#allocation4 + $0xe90] sm:$0xff] }
 0x270   :  { %v3720_v3 = vpack.c.bf16 %v1066_v58, %v1062_v57  ;;  %v1098_v49 = vld [vmem:[#allocation4 + $0xea0] sm:$0xff]  ;;  %v1100_v53 = vld [vmem:[#allocation4 + $0xeb0] sm:$0xff]  ;;  %v1109_v57 = vld [vmem:[#allocation4 + $0xef8] sm:$0xff] }
 0x271   :  { %3701 = vmatpush1.bf16.msra.mxu0 %v3700_v63  ;;  %3829 = vmatpush1.bf16.msra.mxu1 %v3828_v1  ;;  %v1075_v63 = vld [vmem:[#allocation4 + $0xde8] sm:$0xff]  ;;  %v1073_v1 = vld [vmem:[#allocation4 + $0xdd8] sm:$0xff] }
 0x272   :  { %3703 = vmatprep.subr.bf16.mxu0 %v3702_v4  ;;  %3831 = vmatprep.subr.bf16.mxu1 %v3830_v5  ;;  %v3848_v4 = vpack.c.bf16 %v1068_v62, %v1064_v61  ;;  %v1070_v5 = vld [vmem:[#allocation4 + $0xdc0] sm:$0xff]  ;;  %v3722_v7 = vpack.c.bf16 %v1075_v63, %v1071_v27  ;;  %v3850_v8 = vpack.c.bf16 %v1077_v2, %v1073_v1  ;;  %v1104_v63 = vld [vmem:[#allocation4 + $0xed0] sm:$0xff]  ;;  %v1111_v2 = vld [vmem:[#allocation4 + $0xf08] sm:$0xff] }
 0x273   :  { %v3724_v14 = vpack.c.bf16 %v1074_v6, %v1070_v5  ;;  %v1106_v61 = vld [vmem:[#allocation4 + $0xee0] sm:$0xff]  ;;  %v1108_v1 = vld [vmem:[#allocation4 + $0xef0] sm:$0xff]  ;;  %v1117_v5 = vld [vmem:[#allocation4 + $0xf38] sm:$0xff] }
 0x275   :  { %3705 = vmatpush1.bf16.msra.mxu0 %v3704_v12  ;;  %3833 = vmatpush1.bf16.msra.mxu1 %v3832_v47  ;;  %v1083_v12 = vld [vmem:[#allocation4 + $0xe28] sm:$0xff]  ;;  %v1081_v47 = vld [vmem:[#allocation4 + $0xe18] sm:$0xff] }
 0x276   :  { %3707 = vmatprep.subr.bf16.mxu0 %v3706_v15  ;;  %3835 = vmatprep.subr.bf16.mxu1 %v3834_v16  ;;  %v3852_v15 = vpack.c.bf16 %v1076_v10, %v1072_v9  ;;  %v1078_v16 = vld [vmem:[#allocation4 + $0xe00] sm:$0xff]  ;;  %v3726_v18 = vpack.c.bf16 %v1083_v12, %v1079_v11  ;;  %v3854_v19 = vpack.c.bf16 %v1085_v13, %v1081_v47  ;;  %v1112_v12 = vld [vmem:[#allocation4 + $0xf10] sm:$0xff]  ;;  %v1119_v13 = vld [vmem:[#allocation4 + $0xf48] sm:$0xff] }
 0x277   :  { %v3728_v33 = vpack.c.bf16 %v1082_v17, %v1078_v16  ;;  %v1114_v9 = vld [vmem:[#allocation4 + $0xf20] sm:$0xff]  ;;  %v1116_v47 = vld [vmem:[#allocation4 + $0xf30] sm:$0xff]  ;;  %v1125_v16 = vld [vmem:[#allocation4 + $0xf78] sm:$0xff] }
 0x279   :  { %3709 = vmatpush1.bf16.msra.mxu0 %v3708_v24  ;;  %3837 = vmatpush1.bf16.msra.mxu1 %v3836_v29  ;;  %v1091_v24 = vld [vmem:[#allocation4 + $0xe68] sm:$0xff]  ;;  %v1089_v29 = vld [vmem:[#allocation4 + $0xe58] sm:$0xff] }
 0x27a   :  { %3711 = vmatprep.subr.bf16.mxu0 %v3710_v34  ;;  %3839 = vmatprep.subr.bf16.mxu1 %v3838_v36  ;;  %v3856_v34 = vpack.c.bf16 %v1084_v22, %v1080_v20  ;;  %v1086_v36 = vld [vmem:[#allocation4 + $0xe40] sm:$0xff]  ;;  %v3730_v38 = vpack.c.bf16 %v1091_v24, %v1087_v23  ;;  %v3858_v39 = vpack.c.bf16 %v1093_v32, %v1089_v29  ;;  %v1120_v24 = vld [vmem:[#allocation4 + $0xf50] sm:$0xff]  ;;  %v1127_v32 = vld [vmem:[#allocation4 + $0xf88] sm:$0xff] }
 0x27b   :  { %v3732_v46 = vpack.c.bf16 %v1090_v37, %v1086_v36  ;;  %v1122_v20 = vld [vmem:[#allocation4 + $0xf60] sm:$0xff]  ;;  %v1124_v29 = vld [vmem:[#allocation4 + $0xf70] sm:$0xff]  ;;  %v1133_v36 = vld [vmem:[#allocation4 + $0xfb8] sm:$0xff] }
 0x27d   :  { %3713 = vmatpush1.bf16.msra.mxu0 %v3712_v43  ;;  %3841 = vmatpush1.bf16.msra.mxu1 %v3840_v44  ;;  %v1099_v43 = vld [vmem:[#allocation4 + $0xea8] sm:$0xff]  ;;  %v1097_v44 = vld [vmem:[#allocation4 + $0xe98] sm:$0xff] }
 0x27e   :  { %3715 = vmatprep.subr.bf16.mxu0 %v3714_v48  ;;  %3843 = vmatprep.subr.bf16.mxu1 %v3842_v25  ;;  %v3860_v48 = vpack.c.bf16 %v1092_v41, %v1088_v40  ;;  %v1094_v25 = vld [vmem:[#allocation4 + $0xe80] sm:$0xff]  ;;  %v3734_v50 = vpack.c.bf16 %v1099_v43, %v1095_v42  ;;  %v3862_v51 = vpack.c.bf16 %v1101_v45, %v1097_v44  ;;  %v1128_v43 = vld [vmem:[#allocation4 + $0xf90] sm:$0xff]  ;;  %v1135_v45 = vld [vmem:[#allocation4 + $0xfc8] sm:$0xff] }
 0x27f   :  { %v3736_v58 = vpack.c.bf16 %v1098_v49, %v1094_v25  ;;  %v1130_v40 = vld [vmem:[#allocation4 + $0xfa0] sm:$0xff]  ;;  %v1132_v44 = vld [vmem:[#allocation4 + $0xfb0] sm:$0xff]  ;;  %v1137_v25 = vld [vmem:[#allocation4 + $0xfd8] sm:$0xff] }
 0x280   :  { %v1141_v49 = vld [vmem:[#allocation4 + $0xff8] sm:$0xff] }
 0x281   :  { %3717 = vmatpush1.bf16.msra.mxu0 %v3716_v55  ;;  %3845 = vmatpush1.bf16.msra.mxu1 %v3844_v56  ;;  %v1107_v55 = vld [vmem:[#allocation4 + $0xee8] sm:$0xff]  ;;  %v1105_v56 = vld [vmem:[#allocation4 + $0xed8] sm:$0xff] }
 0x282   :  { %3719 = vmatprep.subr.bf16.mxu0 %v3718_v59  ;;  %3847 = vmatprep.subr.bf16.mxu1 %v3846_v60  ;;  %v3864_v59 = vpack.c.bf16 %v1100_v53, %v1096_v52  ;;  %v1102_v60 = vld [vmem:[#allocation4 + $0xec0] sm:$0xff]  ;;  %v3738_v62 = vpack.c.bf16 %v1107_v55, %v1103_v54  ;;  %v3866_v27 = vpack.c.bf16 %v1109_v57, %v1105_v56  ;;  %v1136_v56 = vld [vmem:[#allocation4 + $0xfd0] sm:$0xff] }
 0x283   :  { %v3740_v6 = vpack.c.bf16 %v1106_v61, %v1102_v60  ;;  %v1134_v52 = vld [vmem:[#allocation4 + $0xfc0] sm:$0xff]  ;;  %v3882_v55 = vpack.c.bf16 %v1141_v49, %v1137_v25  ;;  %v1140_v57 = vld [vmem:[#allocation4 + $0xff0] sm:$0xff]  ;;  %v1467_v60 = vld [vmem:[#allocation4 + $0x1028] sm:$0xff] }
 0x284   :  { %v1138_v53 = vld [vmem:[#allocation4 + $0xfe0] sm:$0xff]  ;;  %v1469_v61 = vld [vmem:[#allocation4 + $0x1038] sm:$0xff]  ;;  %v1488_v25 = vld [vmem:[#allocation4 + $0x10d0] sm:$0xff] }
 0x285   :  { %3721 = vmatpush1.bf16.msra.mxu0 %v3720_v3  ;;  %3849 = vmatpush1.bf16.msra.mxu1 %v3848_v4  ;;  %v1115_v3 = vld [vmem:[#allocation4 + $0xf28] sm:$0xff]  ;;  %v1113_v4 = vld [vmem:[#allocation4 + $0xf18] sm:$0xff]  ;;  %v1492_v49 = vld [vmem:[#allocation4 + $0x10f0] sm:$0xff] }
 0x286   :  { %3723 = vmatprep.subr.bf16.mxu0 %v3722_v7  ;;  %3851 = vmatprep.subr.bf16.mxu1 %v3850_v8  ;;  %v3868_v7 = vpack.c.bf16 %v1108_v1, %v1104_v63  ;;  %v1110_v8 = vld [vmem:[#allocation4 + $0xf00] sm:$0xff]  ;;  %v3742_v10 = vpack.c.bf16 %v1115_v3, %v1111_v2  ;;  %v3870_v11 = vpack.c.bf16 %v1117_v5, %v1113_v4  ;;  %v1464_v4 = vld [vmem:[#allocation4 + $0x1010] sm:$0xff] }
 0x287   :  { %v3744_v17 = vpack.c.bf16 %v1114_v9, %v1110_v8  ;;  %v1462_v63 = vld [vmem:[#allocation4 + $0x1000] sm:$0xff]  ;;  %v1468_v5 = vld [vmem:[#allocation4 + $0x1030] sm:$0xff]  ;;  %v1475_v8 = vld [vmem:[#allocation4 + $0x1068] sm:$0xff] }
 0x288   :  { %v1466_v1 = vld [vmem:[#allocation4 + $0x1020] sm:$0xff]  ;;  %v1473_v9 = vld [vmem:[#allocation4 + $0x1058] sm:$0xff] }
 0x289   :  { %3725 = vmatpush1.bf16.msra.mxu0 %v3724_v14  ;;  %3853 = vmatpush1.bf16.msra.mxu1 %v3852_v15  ;;  %v1123_v14 = vld [vmem:[#allocation4 + $0xf68] sm:$0xff]  ;;  %v1121_v15 = vld [vmem:[#allocation4 + $0xf58] sm:$0xff] }
 0x28a   :  { %3727 = vmatprep.subr.bf16.mxu0 %v3726_v18  ;;  %3855 = vmatprep.subr.bf16.mxu1 %v3854_v19  ;;  %v3872_v18 = vpack.c.bf16 %v1116_v47, %v1112_v12  ;;  %v1118_v19 = vld [vmem:[#allocation4 + $0xf40] sm:$0xff]  ;;  %v3746_v22 = vpack.c.bf16 %v1123_v14, %v1119_v13  ;;  %v3874_v23 = vpack.c.bf16 %v1125_v16, %v1121_v15  ;;  %v1472_v15 = vld [vmem:[#allocation4 + $0x1050] sm:$0xff] }
 0x28b   :  { %v3748_v37 = vpack.c.bf16 %v1122_v20, %v1118_v19  ;;  %v1470_v12 = vld [vmem:[#allocation4 + $0x1040] sm:$0xff]  ;;  %v1476_v16 = vld [vmem:[#allocation4 + $0x1070] sm:$0xff]  ;;  %v1483_v19 = vld [vmem:[#allocation4 + $0x10a8] sm:$0xff] }
 0x28c   :  { %v1474_v47 = vld [vmem:[#allocation4 + $0x1060] sm:$0xff]  ;;  %v1481_v20 = vld [vmem:[#allocation4 + $0x1098] sm:$0xff] }
 0x28d   :  { %3729 = vmatpush1.bf16.msra.mxu0 %v3728_v33  ;;  %3857 = vmatpush1.bf16.msra.mxu1 %v3856_v34  ;;  %v1131_v33 = vld [vmem:[#allocation4 + $0xfa8] sm:$0xff]  ;;  %v1129_v34 = vld [vmem:[#allocation4 + $0xf98] sm:$0xff] }
 0x28e   :  { %3731 = vmatprep.subr.bf16.mxu0 %v3730_v38  ;;  %3859 = vmatprep.subr.bf16.mxu1 %v3858_v39  ;;  %v3876_v38 = vpack.c.bf16 %v1124_v29, %v1120_v24  ;;  %v1126_v39 = vld [vmem:[#allocation4 + $0xf80] sm:$0xff]  ;;  %v3750_v41 = vpack.c.bf16 %v1131_v33, %v1127_v32  ;;  %v3878_v42 = vpack.c.bf16 %v1133_v36, %v1129_v34  ;;  %v1480_v36 = vld [vmem:[#allocation4 + $0x1090] sm:$0xff] }
 0x28f   :  { %v4020_v24 = vpack.c.bf16 %v1476_v16, %v1472_v15  ;;  %v1478_v29 = vld [vmem:[#allocation4 + $0x1080] sm:$0xff] }
 0x290   :  { %v1482_v32 = vld [vmem:[#allocation4 + $0x10a0] sm:$0xff] }
 0x291   :  { %3733 = vmatpush1.bf16.msra.mxu0 %v3732_v46  ;;  %3861 = vmatpush1.bf16.msra.mxu1 %v3860_v48  ;;  %v580_v46 = vrot.slane %v4934_v21, %v4929_v35  ;;  %v1139_v48 = vld [vmem:[#allocation4 + $0xfe8] sm:$0xff]  ;;  %v1465_v21 = vld [vmem:[#allocation4 + $0x1018] sm:$0xff] }
 0x292   :  { %3735 = vmatprep.subr.bf16.mxu0 %v3734_v50  ;;  %3863 = vmatprep.subr.bf16.mxu1 %v3862_v51  ;;  %v3752_v50 = vpack.c.bf16 %v1130_v40, %v1126_v39  ;;  %v3880_v51 = vpack.c.bf16 %v1132_v44, %v1128_v43  ;;  %v3754_v54 = vpack.c.bf16 %v1139_v48, %v1135_v45  ;;  %v1491_v39 = vld [vmem:[#allocation4 + $0x10e8] sm:$0xff]  ;;  %v1489_v40 = vld [vmem:[#allocation4 + $0x10d8] sm:$0xff]  ;;  %v1486_v44 = vld [vmem:[#allocation4 + $0x10c0] sm:$0xff] }
 0x293   :  { %v4014_v3 = vpack.c.bf16 %v1469_v61, %v1465_v21  ;;  %v1490_v45 = vld [vmem:[#allocation4 + $0x10e0] sm:$0xff]  ;;  %v1500_v21 = vld [vmem:[#allocation4 + $0x1130] sm:$0xff]  ;;  %v1503_v61 = vld [vmem:[#allocation4 + $0x1148] sm:$0xff] }
 0x295   :  { %3737 = vmatpush1.bf16.msra.mxu0 %v3736_v58  ;;  %3865 = vmatpush1.bf16.msra.mxu1 %v3864_v59  ;;  %v1463_v58 = vld [vmem:[#allocation4 + $0x1008] sm:$0xff]  ;;  %v4536_v59 = vadd.f32 %v4942_v30, %v580_v46  ;;  %v1477_v30 = vld [vmem:[#allocation4 + $0x1078] sm:$0xff] }
 0x296   :  { %3739 = vmatprep.subr.bf16.mxu0 %v3738_v62  ;;  %3867 = vmatprep.subr.bf16.mxu1 %v3866_v27  ;;  %v3756_v62 = vpack.c.bf16 %v1138_v53, %v1134_v52  ;;  %v3884_v27 = vpack.c.bf16 %v1140_v57, %v1136_v56  ;;  %v3886_v2 = vpack.c.bf16 %v1467_v60, %v1463_v58  ;;  %v1497_v52 = vld [vmem:[#allocation4 + $0x1118] sm:$0xff]  ;;  %v1494_v56 = vld [vmem:[#allocation4 + $0x1100] sm:$0xff]  ;;  %v1496_v60 = vld [vmem:[#allocation4 + $0x1110] sm:$0xff] }
 0x297   :  { %vm875_vm11 = vcmp.ge.f32.partialorder %v4536_v59, 0.0  ;;  %v4018_v14 = vpack.c.bf16 %v1477_v30, %v1473_v9  ;;  %v1501_v53 = vld [vmem:[#allocation4 + $0x1138] sm:$0xff]  ;;  %v1498_v57 = vld [vmem:[#allocation4 + $0x1120] sm:$0xff]  ;;  %v1511_v9 = vld [vmem:[#allocation4 + $0x1188] sm:$0xff] }
 0x298   :  { %v1515_v30 = vld [vmem:[#allocation4 + $0x11a8] sm:$0xff] }
 0x299   :  { %3741 = vmatpush1.bf16.msra.mxu0 %v3740_v6  ;;  %3869 = vmatpush1.bf16.msra.mxu1 %v3868_v7  ;;  %v1471_v6 = vld [vmem:[#allocation4 + $0x1048] sm:$0xff]  ;;  %v879_v7 = vmul.f32 0.01, %v4536_v59  ;;  %v3910_v15 = vpack.c.bf16 %v1515_v30, %v1511_v9  ;;  %v1548_v9 = vld [vmem:[#allocation4 + $0x12b0] sm:$0xff] }
 0x29a   :  { %3743 = vmatprep.subr.bf16.mxu0 %v3742_v10  ;;  %3871 = vmatprep.subr.bf16.mxu1 %v3870_v11  ;;  %v3888_v10 = vpack.c.bf16 %v1466_v1, %v1462_v63  ;;  %v4016_v11 = vpack.c.bf16 %v1468_v5, %v1464_v4  ;;  %v3890_v13 = vpack.c.bf16 %v1475_v8, %v1471_v6  ;;  %v1509_v63 = vld [vmem:[#allocation4 + $0x1178] sm:$0xff]  ;;  %v1506_v4 = vld [vmem:[#allocation4 + $0x1160] sm:$0xff]  ;;  %v1508_v8 = vld [vmem:[#allocation4 + $0x1170] sm:$0xff] }
 0x29b   :  { %v3904_v1 = vpack.c.bf16 %v1498_v57, %v1494_v56  ;;  %v1534_v57 = vld [vmem:[#allocation4 + $0x1240] sm:$0xff]  ;;  %v1551_v30 = vld [vmem:[#allocation4 + $0x12c8] sm:$0xff] }
 0x29d   :  { %3745 = vmatpush1.bf16.msra.mxu0 %v3744_v17  ;;  %3873 = vmatpush1.bf16.msra.mxu1 %v3872_v18  ;;  %v1479_v17 = vld [vmem:[#allocation4 + $0x1088] sm:$0xff]  ;;  %v883_v18 = vsel %vm875_vm11, %v4536_v59, %v879_v7  ;;  %v4030_v59 = vpack.c.bf16 %v1501_v53, %v1497_v52  ;;  %v1504_v7 = vld [vmem:[#allocation4 + $0x1150] sm:$0xff]  ;;  %v1537_v53 = vld [vmem:[#allocation4 + $0x1258] sm:$0xff] }
 0x29e   :  { %3747 = vmatprep.subr.bf16.mxu0 %v3746_v22  ;;  %3875 = vmatprep.subr.bf16.mxu1 %v3874_v23  ;;  %v1485_v22 = vld [vmem:[#allocation4 + $0x10b8] sm:$0xff]  ;;  %v3892_v23 = vpack.c.bf16 %v1474_v47, %v1470_v12  ;;  %v3894_v33 = vpack.c.bf16 %v1483_v19, %v1479_v17  ;;  %v4036_v47 = vpack.c.bf16 %v1508_v8, %v1504_v7  ;;  %v1512_v17 = vld [vmem:[#allocation4 + $0x1190] sm:$0xff]  ;;  %v1519_v19 = vld [vmem:[#allocation4 + $0x11c8] sm:$0xff] }
 0x29f   :  { %v4022_v34 = vpack.c.bf16 %v1485_v22, %v1481_v20  ;;  %v1523_v20 = vld [vmem:[#allocation4 + $0x11e8] sm:$0xff]  ;;  %v1521_v22 = vld [vmem:[#allocation4 + $0x11d8] sm:$0xff]  ;;  %v1544_v8 = vld [vmem:[#allocation4 + $0x1290] sm:$0xff] }
 0x2a0   :  { %v1539_v52 = vld [vmem:[#allocation4 + $0x1268] sm:$0xff] }
 0x2a1   :  { %3749 = vmatpush1.bf16.msra.mxu0 %v3748_v37  ;;  %3877 = vmatpush1.bf16.msra.mxu1 %v3876_v38  ;;  %v1484_v37 = vld [vmem:[#allocation4 + $0x10b0] sm:$0xff]  ;;  %v1487_v38 = vld [vmem:[#allocation4 + $0x10c8] sm:$0xff] }
 0x2a2   :  { %3751 = vmatprep.subr.bf16.mxu0 %v3750_v41  ;;  %3879 = vmatprep.subr.bf16.mxu1 %v3878_v42  ;;  %v1493_v41 = vld [vmem:[#allocation4 + $0x10f8] sm:$0xff]  ;;  %v3896_v42 = vpack.c.bf16 %v1482_v32, %v1478_v29  ;;  %v4024_v43 = vpack.c.bf16 %v1484_v37, %v1480_v36  ;;  %v3898_v46 = vpack.c.bf16 %v1491_v39, %v1487_v38  ;;  %v1518_v32 = vld [vmem:[#allocation4 + $0x11c0] sm:$0xff]  ;;  %v1520_v37 = vld [vmem:[#allocation4 + $0x11d0] sm:$0xff] }
 0x2a3   :  { %v4026_v48 = vpack.c.bf16 %v1493_v41, %v1489_v40  ;;  %v1524_v38 = vld [vmem:[#allocation4 + $0x11f0] sm:$0xff]  ;;  %v1527_v39 = vld [vmem:[#allocation4 + $0x1208] sm:$0xff]  ;;  %v1529_v41 = vld [vmem:[#allocation4 + $0x1218] sm:$0xff] }
 0x2a4   :  { %v1531_v40 = vld [vmem:[#allocation4 + $0x1228] sm:$0xff] }
 0x2a5   :  { %3753 = vmatpush1.bf16.msra.mxu0 %v3752_v50  ;;  %3881 = vmatpush1.bf16.msra.mxu1 %v3880_v51  ;;  %v1495_v50 = vld [vmem:[#allocation4 + $0x1108] sm:$0xff] }
 0x2a6   :  { %3755 = vmatprep.subr.bf16.mxu0 %v3754_v54  ;;  %3883 = vmatprep.subr.bf16.mxu1 %v3882_v55  ;;  %v1499_v51 = vld [vmem:[#allocation4 + $0x1128] sm:$0xff]  ;;  %v3900_v54 = vpack.c.bf16 %v1490_v45, %v1486_v44  ;;  %v4028_v55 = vpack.c.bf16 %v1492_v49, %v1488_v25  ;;  %v4044_v44 = vpack.c.bf16 %v1524_v38, %v1520_v37  ;;  %v1526_v45 = vld [vmem:[#allocation4 + $0x1200] sm:$0xff]  ;;  %v1528_v49 = vld [vmem:[#allocation4 + $0x1210] sm:$0xff] }
 0x2a7   :  { %v3902_v58 = vpack.c.bf16 %v1499_v51, %v1495_v50  ;;  %v1532_v50 = vld [vmem:[#allocation4 + $0x1230] sm:$0xff]  ;;  %v1535_v51 = vld [vmem:[#allocation4 + $0x1248] sm:$0xff] }
 0x2a8   :  { %v4048_v56 = vpack.c.bf16 %v1532_v50, %v1528_v49  ;;  %v1560_v38 = vld [vmem:[#allocation4 + $0x1310] sm:$0xff] }
 0x2a9   :  { %3757 = vmatpush1.bf16.msra.mxu0 %v3756_v62  ;;  %3885 = vmatpush1.bf16.msra.mxu1 %v3884_v27  ;;  %v1507_v62 = vld [vmem:[#allocation4 + $0x1168] sm:$0xff]  ;;  %v1505_v27 = vld [vmem:[#allocation4 + $0x1158] sm:$0xff]  ;;  %v1568_v50 = vld [vmem:[#allocation4 + $0x1350] sm:$0xff] }
 0x2aa   :  { %3887 = vmatprep.subr.bf16.mxu0 %v3886_v2  ;;  %4015 = vmatprep.subr.bf16.mxu1 %v4014_v3  ;;  %v4032_v2 = vpack.c.bf16 %v1500_v21, %v1496_v60  ;;  %v1502_v3 = vld [vmem:[#allocation4 + $0x1140] sm:$0xff]  ;;  %v3906_v5 = vpack.c.bf16 %v1507_v62, %v1503_v61  ;;  %v4034_v6 = vpack.c.bf16 %v1509_v63, %v1505_v27  ;;  %v1536_v21 = vld [vmem:[#allocation4 + $0x1250] sm:$0xff]  ;;  %v1543_v62 = vld [vmem:[#allocation4 + $0x1288] sm:$0xff] }
 0x2ab   :  { %v3908_v12 = vpack.c.bf16 %v1506_v4, %v1502_v3  ;;  %v1540_v61 = vld [vmem:[#allocation4 + $0x1270] sm:$0xff]  ;;  %v1547_v27 = vld [vmem:[#allocation4 + $0x12a8] sm:$0xff]  ;;  %v1545_v63 = vld [vmem:[#allocation4 + $0x1298] sm:$0xff] }
 0x2ac   :  { %1301 = vmatmul.mubr.f32.vlgmr.msra.gmra.mrb[2].mxu0 %v883_v18  ;;  %1443 = vmatmul.mubr.f32.vlgmr.msra.gmra.mrb[6].mxu1 %v883_v18  ;;  %v1516_v18 = vld [vmem:[#allocation4 + $0x11b0] sm:$0xff]  ;;  %v4052_v3 = vpack.c.bf16 %v1540_v61, %v1536_v21  ;;  %v1542_v4 = vld [vmem:[#allocation4 + $0x1280] sm:$0xff] }
 0x2ad   :  { %3889 = vmatpush1.bf16.msra.mxu0 %v3888_v10  ;;  %4017 = vmatpush1.bf16.msra.mxu1 %v4016_v11  ;;  %v1513_v10 = vld [vmem:[#allocation4 + $0x1198] sm:$0xff]  ;;  %v4040_v29 = vpack.c.bf16 %v1516_v18, %v1512_v17  ;;  %v1552_v18 = vld [vmem:[#allocation4 + $0x12d0] sm:$0xff]  ;;  %v1578_v21 = vld [vmem:[#allocation4 + $0x13a0] sm:$0xff] }
 0x2ae   :  { %3891 = vmatprep.subr.bf16.mxu0 %v3890_v13  ;;  %4019 = vmatprep.subr.bf16.mxu1 %v4018_v14  ;;  %v1517_v11 = vld [vmem:[#allocation4 + $0x11b8] sm:$0xff]  ;;  %v1510_v13 = vld [vmem:[#allocation4 + $0x1180] sm:$0xff]  ;;  %v1576_v61 = vld [vmem:[#allocation4 + $0x1390] sm:$0xff] }
 0x2af   :  { %v1514_v14 = vld [vmem:[#allocation4 + $0x11a0] sm:$0xff]  ;;  %v4038_v16 = vpack.c.bf16 %v1517_v11, %v1513_v10  ;;  %v1555_v10 = vld [vmem:[#allocation4 + $0x12e8] sm:$0xff]  ;;  %v1553_v11 = vld [vmem:[#allocation4 + $0x12d8] sm:$0xff] }
 0x2b1   :  { %3893 = vmatpush1.bf16.msra.mxu0 %v3892_v23  ;;  %4021 = vmatpush1.bf16.msra.mxu1 %v4020_v24  ;;  %v1525_v23 = vld [vmem:[#allocation4 + $0x11f8] sm:$0xff]  ;;  %v3912_v24 = vpack.c.bf16 %v1514_v14, %v1510_v13  ;;  %v4056_v13 = vpack.c.bf16 %v1548_v9, %v1544_v8  ;;  %v1550_v14 = vld [vmem:[#allocation4 + $0x12c0] sm:$0xff] }
 0x2b2   :  { %3895 = vmatprep.subr.bf16.mxu0 %v3894_v33  ;;  %4023 = vmatprep.subr.bf16.mxu1 %v4022_v34  ;;  %v1522_v33 = vld [vmem:[#allocation4 + $0x11e0] sm:$0xff]  ;;  %v3914_v34 = vpack.c.bf16 %v1523_v20, %v1519_v19  ;;  %v4042_v36 = vpack.c.bf16 %v1525_v23, %v1521_v22  ;;  %v1556_v19 = vld [vmem:[#allocation4 + $0x12f0] sm:$0xff]  ;;  %v1559_v20 = vld [vmem:[#allocation4 + $0x1308] sm:$0xff] }
 0x2b3   :  { %v1563_v22 = vld [vmem:[#allocation4 + $0x1328] sm:$0xff]  ;;  %v1561_v23 = vld [vmem:[#allocation4 + $0x1318] sm:$0xff] }
 0x2b5   :  { %3897 = vmatpush1.bf16.msra.mxu0 %v3896_v42  ;;  %4025 = vmatpush1.bf16.msra.mxu1 %v4024_v43  ;;  %v1533_v42 = vld [vmem:[#allocation4 + $0x1238] sm:$0xff]  ;;  %v3916_v43 = vpack.c.bf16 %v1522_v33, %v1518_v32  ;;  %v4060_v32 = vpack.c.bf16 %v1556_v19, %v1552_v18  ;;  %v1558_v33 = vld [vmem:[#allocation4 + $0x1300] sm:$0xff] }
 0x2b6   :  { %3899 = vmatprep.subr.bf16.mxu0 %v3898_v46  ;;  %4027 = vmatprep.subr.bf16.mxu1 %v4026_v48  ;;  %v1530_v46 = vld [vmem:[#allocation4 + $0x1220] sm:$0xff]  ;;  %v3918_v48 = vpack.c.bf16 %v1531_v40, %v1527_v39  ;;  %v4046_v25 = vpack.c.bf16 %v1533_v42, %v1529_v41  ;;  %v1564_v39 = vld [vmem:[#allocation4 + $0x1330] sm:$0xff]  ;;  %v1567_v40 = vld [vmem:[#allocation4 + $0x1348] sm:$0xff] }
 0x2b7   :  { %v1571_v41 = vld [vmem:[#allocation4 + $0x1368] sm:$0xff]  ;;  %v1569_v42 = vld [vmem:[#allocation4 + $0x1358] sm:$0xff] }
 0x2b9   :  { %3901 = vmatpush1.bf16.msra.mxu0 %v3900_v54  ;;  %4029 = vmatpush1.bf16.msra.mxu1 %v4028_v55  ;;  %v1541_v54 = vld [vmem:[#allocation4 + $0x1278] sm:$0xff]  ;;  %v3920_v55 = vpack.c.bf16 %v1530_v46, %v1526_v45  ;;  %v4064_v45 = vpack.c.bf16 %v1564_v39, %v1560_v38  ;;  %v1566_v46 = vld [vmem:[#allocation4 + $0x1340] sm:$0xff]  ;;  %v1592_v38 = vld [vmem:[#allocation4 + $0x1410] sm:$0xff] }
 0x2ba   :  { %3903 = vmatprep.subr.bf16.mxu0 %v3902_v58  ;;  %4031 = vmatprep.subr.bf16.mxu1 %v4030_v59  ;;  %v1538_v58 = vld [vmem:[#allocation4 + $0x1260] sm:$0xff]  ;;  %v3922_v59 = vpack.c.bf16 %v1539_v52, %v1535_v51  ;;  %v4050_v60 = vpack.c.bf16 %v1541_v54, %v1537_v53  ;;  %v1572_v51 = vld [vmem:[#allocation4 + $0x1370] sm:$0xff]  ;;  %v1575_v52 = vld [vmem:[#allocation4 + $0x1388] sm:$0xff] }
 0x2bb   :  { %v1579_v53 = vld [vmem:[#allocation4 + $0x13a8] sm:$0xff]  ;;  %v1577_v54 = vld [vmem:[#allocation4 + $0x1398] sm:$0xff]  ;;  %v1596_v39 = vld [vmem:[#allocation4 + $0x1430] sm:$0xff] }
 0x2bd   :  { %3905 = vmatpush1.bf16.msra.mxu0 %v3904_v1  ;;  %4033 = vmatpush1.bf16.msra.mxu1 %v4032_v2  ;;  %v1549_v1 = vld [vmem:[#allocation4 + $0x12b8] sm:$0xff]  ;;  %v3924_v2 = vpack.c.bf16 %v1538_v58, %v1534_v57  ;;  %v4068_v57 = vpack.c.bf16 %v1572_v51, %v1568_v50  ;;  %v3942_v58 = vpack.c.bf16 %v1579_v53, %v1575_v52  ;;  %v1602_v50 = vld [vmem:[#allocation4 + $0x1460] sm:$0xff]  ;;  %v1600_v52 = vld [vmem:[#allocation4 + $0x1450] sm:$0xff] }
 0x2be   :  { %3907 = vmatprep.subr.bf16.mxu0 %v3906_v5  ;;  %4035 = vmatprep.subr.bf16.mxu1 %v4034_v6  ;;  %v1546_v5 = vld [vmem:[#allocation4 + $0x12a0] sm:$0xff]  ;;  %v3926_v6 = vpack.c.bf16 %v1547_v27, %v1543_v62  ;;  %v4054_v7 = vpack.c.bf16 %v1549_v1, %v1545_v63  ;;  %v1580_v27 = vld [vmem:[#allocation4 + $0x13b0] sm:$0xff]  ;;  %v1583_v1 = vld [vmem:[#allocation4 + $0x13c8] sm:$0xff] }
 0x2bf   :  { %v4072_v63 = vpack.c.bf16 %v1580_v27, %v1576_v61  ;;  %v1604_v53 = vld [vmem:[#allocation4 + $0x1470] sm:$0xff]  ;;  %v1606_v27 = vld [vmem:[#allocation4 + $0x1480] sm:$0xff] }
 0x2c1   :  { %3909 = vmatpush1.bf16.msra.mxu0 %v3908_v12  ;;  %4037 = vmatpush1.bf16.msra.mxu1 %v4036_v47  ;;  %v1557_v12 = vld [vmem:[#allocation4 + $0x12f8] sm:$0xff]  ;;  %v3928_v47 = vpack.c.bf16 %v1546_v5, %v1542_v4 }
 0x2c2   :  { %3911 = vmatprep.subr.bf16.mxu0 %v3910_v15  ;;  %4039 = vmatprep.subr.bf16.mxu1 %v4038_v16  ;;  %v1554_v15 = vld [vmem:[#allocation4 + $0x12e0] sm:$0xff]  ;;  %v3930_v16 = vpack.c.bf16 %v1555_v10, %v1551_v30  ;;  %v4058_v17 = vpack.c.bf16 %v1557_v12, %v1553_v11  ;;  %v1589_v5 = vld [vmem:[#allocation4 + $0x13f8] sm:$0xff]  ;;  %v1584_v30 = vld [vmem:[#allocation4 + $0x13d0] sm:$0xff] }
 0x2c3   :  { %v1588_v10 = vld [vmem:[#allocation4 + $0x13f0] sm:$0xff]  ;;  %v1591_v12 = vld [vmem:[#allocation4 + $0x1408] sm:$0xff] }
 0x2c4   :  { %v4076_v11 = vpack.c.bf16 %v1588_v10, %v1584_v30  ;;  %v1614_v10 = vld [vmem:[#allocation4 + $0x14c0] sm:$0xff] }
 0x2c5   :  { %3913 = vmatpush1.bf16.msra.mxu0 %v3912_v24  ;;  %4041 = vmatpush1.bf16.msra.mxu1 %v4040_v29  ;;  %v1565_v24 = vld [vmem:[#allocation4 + $0x1338] sm:$0xff]  ;;  %v3932_v29 = vpack.c.bf16 %v1554_v15, %v1550_v14 }
 0x2c6   :  { %3915 = vmatprep.subr.bf16.mxu0 %v3914_v34  ;;  %4043 = vmatprep.subr.bf16.mxu1 %v4042_v36  ;;  %v1562_v34 = vld [vmem:[#allocation4 + $0x1320] sm:$0xff]  ;;  %v3934_v36 = vpack.c.bf16 %v1563_v22, %v1559_v20  ;;  %v4062_v37 = vpack.c.bf16 %v1565_v24, %v1561_v23  ;;  %v1597_v15 = vld [vmem:[#allocation4 + $0x1438] sm:$0xff] }
 0x2c9   :  { %3917 = vmatpush1.bf16.msra.mxu0 %v3916_v43  ;;  %4045 = vmatpush1.bf16.msra.mxu1 %v4044_v44  ;;  %v1573_v43 = vld [vmem:[#allocation4 + $0x1378] sm:$0xff]  ;;  %v3936_v44 = vpack.c.bf16 %v1562_v34, %v1558_v33  ;;  %v1590_v33 = vld [vmem:[#allocation4 + $0x1400] sm:$0xff] }
 0x2ca   :  { %3919 = vmatprep.subr.bf16.mxu0 %v3918_v48  ;;  %4047 = vmatprep.subr.bf16.mxu1 %v4046_v25  ;;  %v1570_v48 = vld [vmem:[#allocation4 + $0x1360] sm:$0xff]  ;;  %v3938_v25 = vpack.c.bf16 %v1571_v41, %v1567_v40  ;;  %v4066_v49 = vpack.c.bf16 %v1573_v43, %v1569_v42  ;;  %v1599_v41 = vld [vmem:[#allocation4 + $0x1448] sm:$0xff] }
 0x2cb   :  { %v1603_v42 = vld [vmem:[#allocation4 + $0x1468] sm:$0xff] }
 0x2cd   :  { %3921 = vmatpush1.bf16.msra.mxu0 %v3920_v55  ;;  %4049 = vmatpush1.bf16.msra.mxu1 %v4048_v56  ;;  %v1581_v55 = vld [vmem:[#allocation4 + $0x13b8] sm:$0xff]  ;;  %v3940_v56 = vpack.c.bf16 %v1570_v48, %v1566_v46 }
 0x2ce   :  { %3923 = vmatprep.subr.bf16.mxu0 %v3922_v59  ;;  %4051 = vmatprep.subr.bf16.mxu1 %v4050_v60  ;;  %v4070_v59 = vpack.c.bf16 %v1581_v55, %v1577_v54  ;;  %v1574_v60 = vld [vmem:[#allocation4 + $0x1380] sm:$0xff]  ;;  %v1607_v54 = vld [vmem:[#allocation4 + $0x1488] sm:$0xff] }
 0x2cf   :  { %v3944_v62 = vpack.c.bf16 %v1578_v21, %v1574_v60  ;;  %v1613_v60 = vld [vmem:[#allocation4 + $0x14b8] sm:$0xff] }
 0x2d1   :  { %3925 = vmatpush1.bf16.msra.mxu0 %v3924_v2  ;;  %4053 = vmatpush1.bf16.msra.mxu1 %v4052_v3  ;;  %v1587_v2 = vld [vmem:[#allocation4 + $0x13e8] sm:$0xff]  ;;  %v1585_v3 = vld [vmem:[#allocation4 + $0x13d8] sm:$0xff] }
 0x2d2   :  { %3927 = vmatprep.subr.bf16.mxu0 %v3926_v6  ;;  %4055 = vmatprep.subr.bf16.mxu1 %v4054_v7  ;;  %v3946_v4 = vpack.c.bf16 %v1587_v2, %v1583_v1  ;;  %v1582_v6 = vld [vmem:[#allocation4 + $0x13c0] sm:$0xff]  ;;  %v4074_v8 = vpack.c.bf16 %v1589_v5, %v1585_v3  ;;  %v1608_v3 = vld [vmem:[#allocation4 + $0x1490] sm:$0xff]  ;;  %v1615_v5 = vld [vmem:[#allocation4 + $0x14c8] sm:$0xff] }
 0x2d3   :  { %v1586_v7 = vld [vmem:[#allocation4 + $0x13e0] sm:$0xff] }
 0x2d4   :  { %v3948_v9 = vpack.c.bf16 %v1586_v7, %v1582_v6  ;;  %v1619_v6 = vld [vmem:[#allocation4 + $0x14e8] sm:$0xff]  ;;  %v1617_v7 = vld [vmem:[#allocation4 + $0x14d8] sm:$0xff] }
 0x2d5   :  { %3929 = vmatpush1.bf16.msra.mxu0 %v3928_v47  ;;  %4057 = vmatpush1.bf16.msra.mxu1 %v4056_v13  ;;  %v1595_v47 = vld [vmem:[#allocation4 + $0x1428] sm:$0xff]  ;;  %v1593_v13 = vld [vmem:[#allocation4 + $0x1418] sm:$0xff] }
 0x2d6   :  { %3931 = vmatprep.subr.bf16.mxu0 %v3930_v16  ;;  %4059 = vmatprep.subr.bf16.mxu1 %v4058_v17  ;;  %v3950_v14 = vpack.c.bf16 %v1595_v47, %v1591_v12  ;;  %v4078_v16 = vpack.c.bf16 %v1597_v15, %v1593_v13  ;;  %v4949_v17 = vld [vmem:[#allocation6 + $0x8] sm:$0xf]  ;;  %v3962_v12 = vpack.c.bf16 %v1619_v6, %v1615_v5  ;;  %v1616_v13 = vld [vmem:[#allocation4 + $0x14d0] sm:$0xff] }
 0x2d7   :  { %v1148_v18 = vrot.slane %v4949_v17, %v4909_v26  ;;  %v1152_v19 = vrot.slane %v4949_v17, %v4914_v28  ;;  %v1160_v20 = vrot.slane %v4949_v17, %v4921_v31  ;;  %v1623_v15 = vld [vmem:[#allocation4 + $0x1508] sm:$0xff]  ;;  %v1648_v6 = vld [vmem:[#allocation4 + $0x15d0] sm:$0xff] }
 0x2d9   :  { %3933 = vmatpush1.bf16.msra.mxu0 %v3932_v29  ;;  %4061 = vmatpush1.bf16.msra.mxu1 %v4060_v32 }
 0x2da   :  { %3935 = vmatprep.subr.bf16.mxu0 %v3934_v36  ;;  %4063 = vmatprep.subr.bf16.mxu1 %v4062_v37  ;;  %v1594_v37 = vld [vmem:[#allocation4 + $0x1420] sm:$0xff] }
 0x2db   :  { %v3952_v48 = vpack.c.bf16 %v1594_v37, %v1590_v33  ;;  %v1631_v37 = vld [vmem:[#allocation4 + $0x1548] sm:$0xff] }
 0x2dd   :  { %3937 = vmatpush1.bf16.msra.mxu0 %v3936_v44  ;;  %4065 = vmatpush1.bf16.msra.mxu1 %v4064_v45  ;;  %v1601_v44 = vld [vmem:[#allocation4 + $0x1458] sm:$0xff] }
 0x2de   :  { %3939 = vmatprep.subr.bf16.mxu0 %v3938_v25  ;;  %4067 = vmatprep.subr.bf16.mxu1 %v4066_v49  ;;  %v1605_v45 = vld [vmem:[#allocation4 + $0x1478] sm:$0xff]  ;;  %v4080_v25 = vpack.c.bf16 %v1596_v39, %v1592_v38  ;;  %v1598_v49 = vld [vmem:[#allocation4 + $0x1440] sm:$0xff]  ;;  %v1635_v38 = vld [vmem:[#allocation4 + $0x1568] sm:$0xff] }
 0x2df   :  { %v3956_v61 = vpack.c.bf16 %v1602_v50, %v1598_v49  ;;  %v1633_v39 = vld [vmem:[#allocation4 + $0x1558] sm:$0xff]  ;;  %v1639_v49 = vld [vmem:[#allocation4 + $0x1588] sm:$0xff] }
 0x2e0   :  { %v1643_v50 = vld [vmem:[#allocation4 + $0x15a8] sm:$0xff] }
 0x2e1   :  { %3941 = vmatpush1.bf16.msra.mxu0 %v3940_v56  ;;  %4069 = vmatpush1.bf16.msra.mxu1 %v4068_v57  ;;  %v3954_v56 = vpack.c.bf16 %v1603_v42, %v1599_v41  ;;  %v4082_v57 = vpack.c.bf16 %v1605_v45, %v1601_v44  ;;  %v1634_v44 = vld [vmem:[#allocation4 + $0x1560] sm:$0xff]  ;;  %v3970_v45 = vpack.c.bf16 %v1635_v38, %v1631_v37  ;;  %v1664_v38 = vld [vmem:[#allocation4 + $0x1650] sm:$0xff] }
 0x2e2   :  { %3943 = vmatprep.subr.bf16.mxu0 %v3942_v58  ;;  %4071 = vmatprep.subr.bf16.mxu1 %v4070_v59  ;;  %v1611_v58 = vld [vmem:[#allocation4 + $0x14a8] sm:$0xff]  ;;  %v1609_v59 = vld [vmem:[#allocation4 + $0x1498] sm:$0xff] }
 0x2e3   :  { %v3958_v1 = vpack.c.bf16 %v1611_v58, %v1607_v54  ;;  %v4086_v2 = vpack.c.bf16 %v1613_v60, %v1609_v59  ;;  %v1640_v59 = vld [vmem:[#allocation4 + $0x1590] sm:$0xff] }
 0x2e4   :  { %v1644_v60 = vld [vmem:[#allocation4 + $0x15b0] sm:$0xff] }
 0x2e5   :  { %3945 = vmatpush1.bf16.msra.mxu0 %v3944_v62  ;;  %4073 = vmatpush1.bf16.msra.mxu1 %v4072_v63  ;;  %v4084_v62 = vpack.c.bf16 %v1604_v53, %v1600_v52  ;;  %v1610_v63 = vld [vmem:[#allocation4 + $0x14a0] sm:$0xff]  ;;  %v1645_v52 = vld [vmem:[#allocation4 + $0x15b8] sm:$0xff] }
 0x2e6   :  { %3947 = vmatprep.subr.bf16.mxu0 %v3946_v4  ;;  %4075 = vmatprep.subr.bf16.mxu1 %v4074_v8  ;;  %v1612_v4 = vld [vmem:[#allocation4 + $0x14b0] sm:$0xff]  ;;  %v1621_v8 = vld [vmem:[#allocation4 + $0x14f8] sm:$0xff] }
 0x2e7   :  { %v4088_v30 = vpack.c.bf16 %v1612_v4, %v1608_v3  ;;  %v4090_v47 = vpack.c.bf16 %v1621_v8, %v1617_v7  ;;  %v1650_v3 = vld [vmem:[#allocation4 + $0x15e0] sm:$0xff]  ;;  %v1652_v7 = vld [vmem:[#allocation4 + $0x15f0] sm:$0xff]  ;;  %v1655_v8 = vld [vmem:[#allocation4 + $0x1608] sm:$0xff] }
 0x2e9   :  { %3949 = vmatpush1.bf16.msra.mxu0 %v3948_v9  ;;  %4077 = vmatpush1.bf16.msra.mxu1 %v4076_v11  ;;  %v3960_v9 = vpack.c.bf16 %v1610_v63, %v1606_v27  ;;  %v1618_v11 = vld [vmem:[#allocation4 + $0x14e0] sm:$0xff]  ;;  %v1653_v27 = vld [vmem:[#allocation4 + $0x15f8] sm:$0xff] }
 0x2ea   :  { %3951 = vmatprep.subr.bf16.mxu0 %v3950_v14  ;;  %4079 = vmatprep.subr.bf16.mxu1 %v4078_v16  ;;  %v1620_v14 = vld [vmem:[#allocation4 + $0x14f0] sm:$0xff]  ;;  %v1627_v16 = vld [vmem:[#allocation4 + $0x1528] sm:$0xff] }
 0x37f   :  { %v1302_v22 = vpop.f32.mrb[2].mxu0  ;;  %v4957_v23 = vpop.f32.mrb[6].mxu1 }
 0x380   :  { %v4538_v24 = vadd.f32 %v1302_v22, %v1148_v18  ;;  %v1304_v29 = vpop.f32.mrb[3].mxu0  ;;  %v1446_v32 = vpop.f32.mrb[7].mxu1  ;;  %v1625_v18 = vld [vmem:[#allocation4 + $0x1518] sm:$0xff]  ;;  %v4092_v22 = vpack.c.bf16 %v1620_v14, %v1616_v13  ;;  %v1658_v13 = vld [vmem:[#allocation4 + $0x1620] sm:$0xff] }
 0x381   :  { %v4539_v34 = vadd.f32 %v1304_v29, %v1152_v19  ;;  %v4541_v36 = vadd.f32 %v1446_v32, %v1160_v20  ;;  %v1629_v19 = vld [vmem:[#allocation4 + $0x1538] sm:$0xff]  ;;  %v3964_v20 = vpack.c.bf16 %v1618_v11, %v1614_v10  ;;  %v1626_v29 = vld [vmem:[#allocation4 + $0x1520] sm:$0xff]  ;;  %v3966_v32 = vpack.c.bf16 %v1627_v16, %v1623_v15  ;;  %v1656_v16 = vld [vmem:[#allocation4 + $0x1610] sm:$0xff] }
 0x382   :  { %v1453_v40 = vmul.f32 0.01, %v4538_v24  ;;  %vm1449_vm12 = vcmp.ge.f32.partialorder %v4538_v24, 0.0  ;;  %v4094_v33 = vpack.c.bf16 %v1629_v19, %v1625_v18  ;;  %v1661_v10 = vld [vmem:[#allocation4 + $0x1638] sm:$0xff]  ;;  %v1660_v18 = vld [vmem:[#allocation4 + $0x1630] sm:$0xff]  ;;  %v1663_v19 = vld [vmem:[#allocation4 + $0x1648] sm:$0xff] }
 0x383   :  { %v1454_v43 = vmul.f32 0.01, %v4539_v34  ;;  %vm1450_vm13 = vcmp.ge.f32.partialorder %v4539_v34, 0.0  ;;  %v1456_v46 = vmul.f32 0.01, %v4541_v36  ;;  %vm1452_vm14 = vcmp.ge.f32.partialorder %v4541_v36, 0.0 }
 0x384   :  { %v1457_v55 = vsel %vm1449_vm12, %v4538_v24, %v1453_v40  ;;  %v1622_v24 = vld [vmem:[#allocation4 + $0x1500] sm:$0xff]  ;;  %v1637_v40 = vld [vmem:[#allocation4 + $0x1578] sm:$0xff] }
 0x385   :  { %v1458_v51 = vsel %vm1450_vm13, %v4539_v34, %v1454_v43  ;;  %v1460_v21 = vsel %vm1452_vm14, %v4541_v36, %v1456_v46  ;;  %v1624_v34 = vld [vmem:[#allocation4 + $0x1510] sm:$0xff]  ;;  %v3968_v41 = vpack.c.bf16 %v1626_v29, %v1622_v24  ;;  %v1630_v43 = vld [vmem:[#allocation4 + $0x1540] sm:$0xff]  ;;  %v4098_v46 = vpack.c.bf16 %v1637_v40, %v1633_v39  ;;  %v1669_v24 = vld [vmem:[#allocation4 + $0x1678] sm:$0xff] }
 0x386   :  { %1805 = vmatprep.mubr.f32.mxu0 %v1458_v51  ;;  %1947 = vmatprep.mubr.f32.mxu1 %v1458_v51  ;;  %v1628_v36 = vld [vmem:[#allocation4 + $0x1530] sm:$0xff]  ;;  %v1641_v51 = vld [vmem:[#allocation4 + $0x1598] sm:$0xff]  ;;  %v3972_v53 = vpack.c.bf16 %v1634_v44, %v1630_v43  ;;  %v1671_v40 = vld [vmem:[#allocation4 + $0x1688] sm:$0xff] }
 0x387   :  { %1806 = vmatmul.mubr.f32.vlgmr.msra.gmra.mrb[4].mxu0 %v1457_v55  ;;  %1948 = vmatmul.mubr.f32.vlgmr.msra.gmra.mrb[8].mxu1 %v1457_v55  ;;  %v4096_v42 = vpack.c.bf16 %v1628_v36, %v1624_v34  ;;  %v1638_v55 = vld [vmem:[#allocation4 + $0x1580] sm:$0xff]  ;;  %v4102_v58 = vpack.c.bf16 %v1645_v52, %v1641_v51  ;;  %v1668_v39 = vld [vmem:[#allocation4 + $0x1670] sm:$0xff]  ;;  %v1677_v43 = vld [vmem:[#allocation4 + $0x16b8] sm:$0xff] }
 0x388   :  { %3953 = vmatpush1.bf16.msra.mxu0 %v3952_v48  ;;  %4081 = vmatpush1.bf16.msra.mxu1 %v4080_v25  ;;  %v1632_v48 = vld [vmem:[#allocation4 + $0x1550] sm:$0xff]  ;;  %v1666_v34 = vld [vmem:[#allocation4 + $0x1660] sm:$0xff]  ;;  %v1679_v52 = vld [vmem:[#allocation4 + $0x16c8] sm:$0xff] }
 0x389   :  { %1876 = vmatprep.mubr.f32.mxu0 %v1460_v21  ;;  %2018 = vmatprep.mubr.f32.mxu1 %v1460_v21  ;;  %v1636_v25 = vld [vmem:[#allocation4 + $0x1570] sm:$0xff]  ;;  %v1647_v21 = vld [vmem:[#allocation4 + $0x15c8] sm:$0xff] }
 0x38a   :  { %3955 = vmatprep.subr.bf16.mxu0 %v3954_v56  ;;  %4083 = vmatprep.subr.bf16.mxu1 %v4082_v57  ;;  %v4100_v54 = vpack.c.bf16 %v1636_v25, %v1632_v48  ;;  %v1642_v56 = vld [vmem:[#allocation4 + $0x15a0] sm:$0xff]  ;;  %v3974_v57 = vpack.c.bf16 %v1643_v50, %v1639_v49  ;;  %v1672_v50 = vld [vmem:[#allocation4 + $0x1690] sm:$0xff] }
 0x38b   :  { %v3976_v63 = vpack.c.bf16 %v1642_v56, %v1638_v55  ;;  %v1674_v48 = vld [vmem:[#allocation4 + $0x16a0] sm:$0xff]  ;;  %v1676_v51 = vld [vmem:[#allocation4 + $0x16b0] sm:$0xff]  ;;  %v1685_v55 = vld [vmem:[#allocation4 + $0x16f8] sm:$0xff] }
 0x38c   :  { %3957 = vmatpush1.bf16.msra.mxu0 %v3956_v61  ;;  %4085 = vmatpush1.bf16.msra.mxu1 %v4084_v62  ;;  %v1651_v61 = vld [vmem:[#allocation4 + $0x15e8] sm:$0xff]  ;;  %v1649_v62 = vld [vmem:[#allocation4 + $0x15d8] sm:$0xff] }
 0x38d   :  { %3959 = vmatprep.subr.bf16.mxu0 %v3958_v1  ;;  %4087 = vmatprep.subr.bf16.mxu1 %v4086_v2  ;;  %v4104_v1 = vpack.c.bf16 %v1644_v60, %v1640_v59  ;;  %v1646_v2 = vld [vmem:[#allocation4 + $0x15c0] sm:$0xff]  ;;  %v3978_v4 = vpack.c.bf16 %v1651_v61, %v1647_v21  ;;  %v4106_v5 = vpack.c.bf16 %v1653_v27, %v1649_v62  ;;  %v1680_v61 = vld [vmem:[#allocation4 + $0x16d0] sm:$0xff]  ;;  %v1687_v27 = vld [vmem:[#allocation4 + $0x1708] sm:$0xff] }
 0x38e   :  { %v3980_v11 = vpack.c.bf16 %v1650_v3, %v1646_v2  ;;  %v1682_v59 = vld [vmem:[#allocation4 + $0x16e0] sm:$0xff]  ;;  %v1684_v62 = vld [vmem:[#allocation4 + $0x16f0] sm:$0xff]  ;;  %v1693_v2 = vld [vmem:[#allocation4 + $0x1738] sm:$0xff] }
 0x390   :  { %3961 = vmatpush1.bf16.msra.mxu0 %v3960_v9  ;;  %4089 = vmatpush1.bf16.msra.mxu1 %v4088_v30  ;;  %v1659_v9 = vld [vmem:[#allocation4 + $0x1628] sm:$0xff]  ;;  %v1657_v30 = vld [vmem:[#allocation4 + $0x1618] sm:$0xff] }
 0x391   :  { %3963 = vmatprep.subr.bf16.mxu0 %v3962_v12  ;;  %4091 = vmatprep.subr.bf16.mxu1 %v4090_v47  ;;  %v4108_v12 = vpack.c.bf16 %v1652_v7, %v1648_v6  ;;  %v1654_v47 = vld [vmem:[#allocation4 + $0x1600] sm:$0xff]  ;;  %v3982_v14 = vpack.c.bf16 %v1659_v9, %v1655_v8  ;;  %v4110_v15 = vpack.c.bf16 %v1661_v10, %v1657_v30  ;;  %v1688_v9 = vld [vmem:[#allocation4 + $0x1710] sm:$0xff]  ;;  %v1695_v10 = vld [vmem:[#allocation4 + $0x1748] sm:$0xff] }
 0x392   :  { %v3984_v29 = vpack.c.bf16 %v1658_v13, %v1654_v47  ;;  %v1690_v6 = vld [vmem:[#allocation4 + $0x1720] sm:$0xff]  ;;  %v1692_v30 = vld [vmem:[#allocation4 + $0x1730] sm:$0xff]  ;;  %v1701_v47 = vld [vmem:[#allocation4 + $0x1778] sm:$0xff] }
 0x394   :  { %3965 = vmatpush1.bf16.msra.mxu0 %v3964_v20  ;;  %4093 = vmatpush1.bf16.msra.mxu1 %v4092_v22  ;;  %v1667_v20 = vld [vmem:[#allocation4 + $0x1668] sm:$0xff]  ;;  %v1665_v22 = vld [vmem:[#allocation4 + $0x1658] sm:$0xff] }
 0x395   :  { %3967 = vmatprep.subr.bf16.mxu0 %v3966_v32  ;;  %4095 = vmatprep.subr.bf16.mxu1 %v4094_v33  ;;  %v4112_v32 = vpack.c.bf16 %v1660_v18, %v1656_v16  ;;  %v1662_v33 = vld [vmem:[#allocation4 + $0x1640] sm:$0xff]  ;;  %v3986_v36 = vpack.c.bf16 %v1667_v20, %v1663_v19  ;;  %v4114_v37 = vpack.c.bf16 %v1669_v24, %v1665_v22  ;;  %v1696_v20 = vld [vmem:[#allocation4 + $0x1750] sm:$0xff]  ;;  %v1703_v24 = vld [vmem:[#allocation4 + $0x1788] sm:$0xff] }
 0x396   :  { %v3988_v44 = vpack.c.bf16 %v1666_v34, %v1662_v33  ;;  %v1698_v16 = vld [vmem:[#allocation4 + $0x1760] sm:$0xff]  ;;  %v1700_v22 = vld [vmem:[#allocation4 + $0x1770] sm:$0xff]  ;;  %v1709_v33 = vld [vmem:[#allocation4 + $0x17b8] sm:$0xff] }
 0x398   :  { %3969 = vmatpush1.bf16.msra.mxu0 %v3968_v41  ;;  %4097 = vmatpush1.bf16.msra.mxu1 %v4096_v42  ;;  %v1675_v41 = vld [vmem:[#allocation4 + $0x16a8] sm:$0xff]  ;;  %v1673_v42 = vld [vmem:[#allocation4 + $0x1698] sm:$0xff] }
 0x399   :  { %3971 = vmatprep.subr.bf16.mxu0 %v3970_v45  ;;  %4099 = vmatprep.subr.bf16.mxu1 %v4098_v46  ;;  %v4116_v45 = vpack.c.bf16 %v1668_v39, %v1664_v38  ;;  %v1670_v46 = vld [vmem:[#allocation4 + $0x1680] sm:$0xff]  ;;  %v3990_v25 = vpack.c.bf16 %v1675_v41, %v1671_v40  ;;  %v4118_v49 = vpack.c.bf16 %v1677_v43, %v1673_v42  ;;  %v1704_v41 = vld [vmem:[#allocation4 + $0x1790] sm:$0xff]  ;;  %v1711_v43 = vld [vmem:[#allocation4 + $0x17c8] sm:$0xff] }
 0x39a   :  { %v3992_v56 = vpack.c.bf16 %v1674_v48, %v1670_v46  ;;  %v1706_v38 = vld [vmem:[#allocation4 + $0x17a0] sm:$0xff]  ;;  %v1708_v42 = vld [vmem:[#allocation4 + $0x17b0] sm:$0xff]  ;;  %v1713_v46 = vld [vmem:[#allocation4 + $0x17d8] sm:$0xff] }
 0x39b   :  { %v1717_v48 = vld [vmem:[#allocation4 + $0x17f8] sm:$0xff] }
 0x39c   :  { %3973 = vmatpush1.bf16.msra.mxu0 %v3972_v53  ;;  %4101 = vmatpush1.bf16.msra.mxu1 %v4100_v54  ;;  %v1683_v53 = vld [vmem:[#allocation4 + $0x16e8] sm:$0xff]  ;;  %v1681_v54 = vld [vmem:[#allocation4 + $0x16d8] sm:$0xff] }
 0x39d   :  { %3975 = vmatprep.subr.bf16.mxu0 %v3974_v57  ;;  %4103 = vmatprep.subr.bf16.mxu1 %v4102_v58  ;;  %v4120_v57 = vpack.c.bf16 %v1676_v51, %v1672_v50  ;;  %v1678_v58 = vld [vmem:[#allocation4 + $0x16c0] sm:$0xff]  ;;  %v3994_v60 = vpack.c.bf16 %v1683_v53, %v1679_v52  ;;  %v4122_v21 = vpack.c.bf16 %v1685_v55, %v1681_v54  ;;  %v1712_v54 = vld [vmem:[#allocation4 + $0x17d0] sm:$0xff] }
 0x39e   :  { %v3996_v3 = vpack.c.bf16 %v1682_v59, %v1678_v58  ;;  %v1710_v50 = vld [vmem:[#allocation4 + $0x17c0] sm:$0xff]  ;;  %v4138_v53 = vpack.c.bf16 %v1717_v48, %v1713_v46  ;;  %v1716_v55 = vld [vmem:[#allocation4 + $0x17f0] sm:$0xff]  ;;  %v2043_v58 = vld [vmem:[#allocation4 + $0x1828] sm:$0xff] }
 0x39f   :  { %v1714_v51 = vld [vmem:[#allocation4 + $0x17e0] sm:$0xff]  ;;  %v2045_v59 = vld [vmem:[#allocation4 + $0x1838] sm:$0xff]  ;;  %v2064_v46 = vld [vmem:[#allocation4 + $0x18d0] sm:$0xff] }
 0x3a0   :  { %3977 = vmatpush1.bf16.msra.mxu0 %v3976_v63  ;;  %4105 = vmatpush1.bf16.msra.mxu1 %v4104_v1  ;;  %v1691_v63 = vld [vmem:[#allocation4 + $0x1728] sm:$0xff]  ;;  %v1689_v1 = vld [vmem:[#allocation4 + $0x1718] sm:$0xff]  ;;  %v2068_v48 = vld [vmem:[#allocation4 + $0x18f0] sm:$0xff] }
 0x3a1   :  { %3979 = vmatprep.subr.bf16.mxu0 %v3978_v4  ;;  %4107 = vmatprep.subr.bf16.mxu1 %v4106_v5  ;;  %v4124_v4 = vpack.c.bf16 %v1684_v62, %v1680_v61  ;;  %v1686_v5 = vld [vmem:[#allocation4 + $0x1700] sm:$0xff]  ;;  %v3998_v7 = vpack.c.bf16 %v1691_v63, %v1687_v27  ;;  %v4126_v8 = vpack.c.bf16 %v1693_v2, %v1689_v1  ;;  %v2040_v1 = vld [vmem:[#allocation4 + $0x1810] sm:$0xff] }
 0x3a2   :  { %v4000_v13 = vpack.c.bf16 %v1690_v6, %v1686_v5  ;;  %v2038_v61 = vld [vmem:[#allocation4 + $0x1800] sm:$0xff]  ;;  %v2044_v2 = vld [vmem:[#allocation4 + $0x1830] sm:$0xff]  ;;  %v2051_v5 = vld [vmem:[#allocation4 + $0x1868] sm:$0xff] }
 0x3a3   :  { %v2042_v62 = vld [vmem:[#allocation4 + $0x1820] sm:$0xff]  ;;  %v2049_v6 = vld [vmem:[#allocation4 + $0x1858] sm:$0xff] }
 0x3a4   :  { %3981 = vmatpush1.bf16.msra.mxu0 %v3980_v11  ;;  %4109 = vmatpush1.bf16.msra.mxu1 %v4108_v12  ;;  %v1699_v11 = vld [vmem:[#allocation4 + $0x1768] sm:$0xff]  ;;  %v1697_v12 = vld [vmem:[#allocation4 + $0x1758] sm:$0xff] }
 0x3a5   :  { %3983 = vmatprep.subr.bf16.mxu0 %v3982_v14  ;;  %4111 = vmatprep.subr.bf16.mxu1 %v4110_v15  ;;  %v4128_v14 = vpack.c.bf16 %v1692_v30, %v1688_v9  ;;  %v1694_v15 = vld [vmem:[#allocation4 + $0x1740] sm:$0xff]  ;;  %v4002_v18 = vpack.c.bf16 %v1699_v11, %v1695_v10  ;;  %v4130_v19 = vpack.c.bf16 %v1701_v47, %v1697_v12  ;;  %v2048_v12 = vld [vmem:[#allocation4 + $0x1850] sm:$0xff] }
 0x3a6   :  { %v4004_v34 = vpack.c.bf16 %v1698_v16, %v1694_v15  ;;  %v2046_v9 = vld [vmem:[#allocation4 + $0x1840] sm:$0xff]  ;;  %v2052_v47 = vld [vmem:[#allocation4 + $0x1870] sm:$0xff]  ;;  %v2059_v15 = vld [vmem:[#allocation4 + $0x18a8] sm:$0xff] }
 0x3a7   :  { %v2050_v30 = vld [vmem:[#allocation4 + $0x1860] sm:$0xff]  ;;  %v2057_v16 = vld [vmem:[#allocation4 + $0x1898] sm:$0xff] }
 0x3a8   :  { %3985 = vmatpush1.bf16.msra.mxu0 %v3984_v29  ;;  %4113 = vmatpush1.bf16.msra.mxu1 %v4112_v32  ;;  %v1707_v29 = vld [vmem:[#allocation4 + $0x17a8] sm:$0xff]  ;;  %v1705_v32 = vld [vmem:[#allocation4 + $0x1798] sm:$0xff] }
 0x3a9   :  { %3987 = vmatprep.subr.bf16.mxu0 %v3986_v36  ;;  %4115 = vmatprep.subr.bf16.mxu1 %v4114_v37  ;;  %v4132_v36 = vpack.c.bf16 %v1700_v22, %v1696_v20  ;;  %v1702_v37 = vld [vmem:[#allocation4 + $0x1780] sm:$0xff]  ;;  %v4006_v39 = vpack.c.bf16 %v1707_v29, %v1703_v24  ;;  %v4134_v40 = vpack.c.bf16 %v1709_v33, %v1705_v32  ;;  %v2056_v33 = vld [vmem:[#allocation4 + $0x1890] sm:$0xff] }
 0x3aa   :  { %v4276_v20 = vpack.c.bf16 %v2052_v47, %v2048_v12  ;;  %v2054_v22 = vld [vmem:[#allocation4 + $0x1880] sm:$0xff] }
 0x3ab   :  { %v2058_v24 = vld [vmem:[#allocation4 + $0x18a0] sm:$0xff] }
 0x3ac   :  { %3989 = vmatpush1.bf16.msra.mxu0 %v3988_v44  ;;  %4117 = vmatpush1.bf16.msra.mxu1 %v4116_v45  ;;  %v1156_v44 = vrot.slane %v4949_v17, %v4929_v35  ;;  %v1715_v45 = vld [vmem:[#allocation4 + $0x17e8] sm:$0xff]  ;;  %v2041_v17 = vld [vmem:[#allocation4 + $0x1818] sm:$0xff] }
 0x3ad   :  { %3991 = vmatprep.subr.bf16.mxu0 %v3990_v25  ;;  %4119 = vmatprep.subr.bf16.mxu1 %v4118_v49  ;;  %v4008_v25 = vpack.c.bf16 %v1706_v38, %v1702_v37  ;;  %v4136_v49 = vpack.c.bf16 %v1708_v42, %v1704_v41  ;;  %v4010_v52 = vpack.c.bf16 %v1715_v45, %v1711_v43  ;;  %v2067_v37 = vld [vmem:[#allocation4 + $0x18e8] sm:$0xff]  ;;  %v2065_v38 = vld [vmem:[#allocation4 + $0x18d8] sm:$0xff]  ;;  %v2062_v42 = vld [vmem:[#allocation4 + $0x18c0] sm:$0xff] }
 0x3ae   :  { %v4270_v63 = vpack.c.bf16 %v2045_v59, %v2041_v17  ;;  %v2066_v43 = vld [vmem:[#allocation4 + $0x18e0] sm:$0xff]  ;;  %v2076_v17 = vld [vmem:[#allocation4 + $0x1930] sm:$0xff]  ;;  %v2079_v59 = vld [vmem:[#allocation4 + $0x1948] sm:$0xff] }
 0x3b0   :  { %3993 = vmatpush1.bf16.msra.mxu0 %v3992_v56  ;;  %4121 = vmatpush1.bf16.msra.mxu1 %v4120_v57  ;;  %v2039_v56 = vld [vmem:[#allocation4 + $0x1808] sm:$0xff]  ;;  %v4540_v57 = vadd.f32 %v4957_v23, %v1156_v44  ;;  %v2053_v23 = vld [vmem:[#allocation4 + $0x1878] sm:$0xff] }
 0x3b1   :  { %3995 = vmatprep.subr.bf16.mxu0 %v3994_v60  ;;  %4123 = vmatprep.subr.bf16.mxu1 %v4122_v21  ;;  %v4012_v60 = vpack.c.bf16 %v1714_v51, %v1710_v50  ;;  %v4140_v21 = vpack.c.bf16 %v1716_v55, %v1712_v54  ;;  %v4142_v27 = vpack.c.bf16 %v2043_v58, %v2039_v56  ;;  %v2073_v50 = vld [vmem:[#allocation4 + $0x1918] sm:$0xff]  ;;  %v2070_v54 = vld [vmem:[#allocation4 + $0x1900] sm:$0xff]  ;;  %v2072_v58 = vld [vmem:[#allocation4 + $0x1910] sm:$0xff] }
 0x3b2   :  { %vm1451_vm15 = vcmp.ge.f32.partialorder %v4540_v57, 0.0  ;;  %v4274_v11 = vpack.c.bf16 %v2053_v23, %v2049_v6  ;;  %v2077_v51 = vld [vmem:[#allocation4 + $0x1938] sm:$0xff]  ;;  %v2074_v55 = vld [vmem:[#allocation4 + $0x1920] sm:$0xff]  ;;  %v2087_v6 = vld [vmem:[#allocation4 + $0x1988] sm:$0xff] }
 0x3b3   :  { %v2091_v23 = vld [vmem:[#allocation4 + $0x19a8] sm:$0xff] }
 0x3b4   :  { %3997 = vmatpush1.bf16.msra.mxu0 %v3996_v3  ;;  %4125 = vmatpush1.bf16.msra.mxu1 %v4124_v4  ;;  %v2047_v3 = vld [vmem:[#allocation4 + $0x1848] sm:$0xff]  ;;  %v1455_v4 = vmul.f32 0.01, %v4540_v57  ;;  %v4166_v12 = vpack.c.bf16 %v2091_v23, %v2087_v6  ;;  %v2124_v6 = vld [vmem:[#allocation4 + $0x1ab0] sm:$0xff] }
 0x3b5   :  { %3999 = vmatprep.subr.bf16.mxu0 %v3998_v7  ;;  %4127 = vmatprep.subr.bf16.mxu1 %v4126_v8  ;;  %v4144_v7 = vpack.c.bf16 %v2042_v62, %v2038_v61  ;;  %v4272_v8 = vpack.c.bf16 %v2044_v2, %v2040_v1  ;;  %v4146_v10 = vpack.c.bf16 %v2051_v5, %v2047_v3  ;;  %v2085_v61 = vld [vmem:[#allocation4 + $0x1978] sm:$0xff]  ;;  %v2082_v1 = vld [vmem:[#allocation4 + $0x1960] sm:$0xff]  ;;  %v2084_v5 = vld [vmem:[#allocation4 + $0x1970] sm:$0xff] }
 0x3b6   :  { %v4160_v62 = vpack.c.bf16 %v2074_v55, %v2070_v54  ;;  %v2110_v55 = vld [vmem:[#allocation4 + $0x1a40] sm:$0xff]  ;;  %v2127_v23 = vld [vmem:[#allocation4 + $0x1ac8] sm:$0xff] }
 0x3b8   :  { %4001 = vmatpush1.bf16.msra.mxu0 %v4000_v13  ;;  %4129 = vmatpush1.bf16.msra.mxu1 %v4128_v14  ;;  %v2055_v13 = vld [vmem:[#allocation4 + $0x1888] sm:$0xff]  ;;  %v1459_v14 = vsel %vm1451_vm15, %v4540_v57, %v1455_v4  ;;  %v4286_v57 = vpack.c.bf16 %v2077_v51, %v2073_v50  ;;  %v2080_v4 = vld [vmem:[#allocation4 + $0x1950] sm:$0xff]  ;;  %v2113_v51 = vld [vmem:[#allocation4 + $0x1a58] sm:$0xff] }
 0x3b9   :  { %4003 = vmatprep.subr.bf16.mxu0 %v4002_v18  ;;  %4131 = vmatprep.subr.bf16.mxu1 %v4130_v19  ;;  %v2061_v18 = vld [vmem:[#allocation4 + $0x18b8] sm:$0xff]  ;;  %v4148_v19 = vpack.c.bf16 %v2050_v30, %v2046_v9  ;;  %v4150_v29 = vpack.c.bf16 %v2059_v15, %v2055_v13  ;;  %v4292_v30 = vpack.c.bf16 %v2084_v5, %v2080_v4  ;;  %v2088_v13 = vld [vmem:[#allocation4 + $0x1990] sm:$0xff]  ;;  %v2095_v15 = vld [vmem:[#allocation4 + $0x19c8] sm:$0xff] }
 0x3ba   :  { %v4278_v32 = vpack.c.bf16 %v2061_v18, %v2057_v16  ;;  %v2099_v16 = vld [vmem:[#allocation4 + $0x19e8] sm:$0xff]  ;;  %v2097_v18 = vld [vmem:[#allocation4 + $0x19d8] sm:$0xff]  ;;  %v2120_v5 = vld [vmem:[#allocation4 + $0x1a90] sm:$0xff] }
 0x3bb   :  { %v2115_v50 = vld [vmem:[#allocation4 + $0x1a68] sm:$0xff] }
 0x3bc   :  { %4005 = vmatpush1.bf16.msra.mxu0 %v4004_v34  ;;  %4133 = vmatpush1.bf16.msra.mxu1 %v4132_v36  ;;  %v2060_v34 = vld [vmem:[#allocation4 + $0x18b0] sm:$0xff]  ;;  %v2063_v36 = vld [vmem:[#allocation4 + $0x18c8] sm:$0xff] }
 0x3bd   :  { %4007 = vmatprep.subr.bf16.mxu0 %v4006_v39  ;;  %4135 = vmatprep.subr.bf16.mxu1 %v4134_v40  ;;  %v2069_v39 = vld [vmem:[#allocation4 + $0x18f8] sm:$0xff]  ;;  %v4152_v40 = vpack.c.bf16 %v2058_v24, %v2054_v22  ;;  %v4280_v41 = vpack.c.bf16 %v2060_v34, %v2056_v33  ;;  %v4154_v44 = vpack.c.bf16 %v2067_v37, %v2063_v36  ;;  %v2094_v24 = vld [vmem:[#allocation4 + $0x19c0] sm:$0xff]  ;;  %v2096_v34 = vld [vmem:[#allocation4 + $0x19d0] sm:$0xff] }
 0x3be   :  { %v4282_v45 = vpack.c.bf16 %v2069_v39, %v2065_v38  ;;  %v2100_v36 = vld [vmem:[#allocation4 + $0x19f0] sm:$0xff]  ;;  %v2103_v37 = vld [vmem:[#allocation4 + $0x1a08] sm:$0xff]  ;;  %v2105_v39 = vld [vmem:[#allocation4 + $0x1a18] sm:$0xff] }
 0x3bf   :  { %v2107_v38 = vld [vmem:[#allocation4 + $0x1a28] sm:$0xff] }
 0x3c0   :  { %4009 = vmatpush1.bf16.msra.mxu0 %v4008_v25  ;;  %4137 = vmatpush1.bf16.msra.mxu1 %v4136_v49  ;;  %v2071_v25 = vld [vmem:[#allocation4 + $0x1908] sm:$0xff] }
 0x3c1   :  { %4011 = vmatprep.subr.bf16.mxu0 %v4010_v52  ;;  %4139 = vmatprep.subr.bf16.mxu1 %v4138_v53  ;;  %v2075_v49 = vld [vmem:[#allocation4 + $0x1928] sm:$0xff]  ;;  %v4156_v52 = vpack.c.bf16 %v2066_v43, %v2062_v42  ;;  %v4284_v53 = vpack.c.bf16 %v2068_v48, %v2064_v46  ;;  %v4300_v42 = vpack.c.bf16 %v2100_v36, %v2096_v34  ;;  %v2102_v43 = vld [vmem:[#allocation4 + $0x1a00] sm:$0xff]  ;;  %v2104_v48 = vld [vmem:[#allocation4 + $0x1a10] sm:$0xff] }
 0x3c2   :  { %v4158_v56 = vpack.c.bf16 %v2075_v49, %v2071_v25  ;;  %v2108_v25 = vld [vmem:[#allocation4 + $0x1a30] sm:$0xff]  ;;  %v2111_v49 = vld [vmem:[#allocation4 + $0x1a48] sm:$0xff] }
 0x3c3   :  { %v4304_v54 = vpack.c.bf16 %v2108_v25, %v2104_v48  ;;  %v2136_v36 = vld [vmem:[#allocation4 + $0x1b10] sm:$0xff] }
 0x3c4   :  { %4013 = vmatpush1.bf16.msra.mxu0 %v4012_v60  ;;  %4141 = vmatpush1.bf16.msra.mxu1 %v4140_v21  ;;  %v2083_v60 = vld [vmem:[#allocation4 + $0x1968] sm:$0xff]  ;;  %v2081_v21 = vld [vmem:[#allocation4 + $0x1958] sm:$0xff]  ;;  %v2144_v25 = vld [vmem:[#allocation4 + $0x1b50] sm:$0xff] }
 0x3c5   :  { %4143 = vmatprep.subr.bf16.mxu0 %v4142_v27  ;;  %4271 = vmatprep.subr.bf16.mxu1 %v4270_v63  ;;  %v4288_v27 = vpack.c.bf16 %v2076_v17, %v2072_v58  ;;  %v2078_v63 = vld [vmem:[#allocation4 + $0x1940] sm:$0xff]  ;;  %v4162_v2 = vpack.c.bf16 %v2083_v60, %v2079_v59  ;;  %v4290_v3 = vpack.c.bf16 %v2085_v61, %v2081_v21  ;;  %v2112_v17 = vld [vmem:[#allocation4 + $0x1a50] sm:$0xff]  ;;  %v2119_v60 = vld [vmem:[#allocation4 + $0x1a88] sm:$0xff] }
 0x3c6   :  { %v4164_v9 = vpack.c.bf16 %v2082_v1, %v2078_v63  ;;  %v2116_v59 = vld [vmem:[#allocation4 + $0x1a70] sm:$0xff]  ;;  %v2123_v21 = vld [vmem:[#allocation4 + $0x1aa8] sm:$0xff]  ;;  %v2121_v61 = vld [vmem:[#allocation4 + $0x1a98] sm:$0xff] }
 0x3c7   :  { %1877 = vmatmul.mubr.f32.vlgmr.msra.gmra.mrb[4].mxu0 %v1459_v14  ;;  %2019 = vmatmul.mubr.f32.vlgmr.msra.gmra.mrb[8].mxu1 %v1459_v14  ;;  %v2092_v14 = vld [vmem:[#allocation4 + $0x19b0] sm:$0xff]  ;;  %v4308_v63 = vpack.c.bf16 %v2116_v59, %v2112_v17  ;;  %v2118_v1 = vld [vmem:[#allocation4 + $0x1a80] sm:$0xff] }
 0x3c8   :  { %4145 = vmatpush1.bf16.msra.mxu0 %v4144_v7  ;;  %4273 = vmatpush1.bf16.msra.mxu1 %v4272_v8  ;;  %v2089_v7 = vld [vmem:[#allocation4 + $0x1998] sm:$0xff]  ;;  %v4296_v22 = vpack.c.bf16 %v2092_v14, %v2088_v13  ;;  %v2128_v14 = vld [vmem:[#allocation4 + $0x1ad0] sm:$0xff]  ;;  %v2154_v17 = vld [vmem:[#allocation4 + $0x1ba0] sm:$0xff] }
 0x3c9   :  { %4147 = vmatprep.subr.bf16.mxu0 %v4146_v10  ;;  %4275 = vmatprep.subr.bf16.mxu1 %v4274_v11  ;;  %v2093_v8 = vld [vmem:[#allocation4 + $0x19b8] sm:$0xff]  ;;  %v2086_v10 = vld [vmem:[#allocation4 + $0x1980] sm:$0xff]  ;;  %v2152_v59 = vld [vmem:[#allocation4 + $0x1b90] sm:$0xff] }
 0x3ca   :  { %v2090_v11 = vld [vmem:[#allocation4 + $0x19a0] sm:$0xff]  ;;  %v4294_v47 = vpack.c.bf16 %v2093_v8, %v2089_v7  ;;  %v2131_v7 = vld [vmem:[#allocation4 + $0x1ae8] sm:$0xff]  ;;  %v2129_v8 = vld [vmem:[#allocation4 + $0x1ad8] sm:$0xff] }
 0x3cc   :  { %4149 = vmatpush1.bf16.msra.mxu0 %v4148_v19  ;;  %4277 = vmatpush1.bf16.msra.mxu1 %v4276_v20  ;;  %v2101_v19 = vld [vmem:[#allocation4 + $0x19f8] sm:$0xff]  ;;  %v4168_v20 = vpack.c.bf16 %v2090_v11, %v2086_v10  ;;  %v4312_v10 = vpack.c.bf16 %v2124_v6, %v2120_v5  ;;  %v2126_v11 = vld [vmem:[#allocation4 + $0x1ac0] sm:$0xff] }
 0x3cd   :  { %4151 = vmatprep.subr.bf16.mxu0 %v4150_v29  ;;  %4279 = vmatprep.subr.bf16.mxu1 %v4278_v32  ;;  %v2098_v29 = vld [vmem:[#allocation4 + $0x19e0] sm:$0xff]  ;;  %v4170_v32 = vpack.c.bf16 %v2099_v16, %v2095_v15  ;;  %v4298_v33 = vpack.c.bf16 %v2101_v19, %v2097_v18  ;;  %v2132_v15 = vld [vmem:[#allocation4 + $0x1af0] sm:$0xff]  ;;  %v2135_v16 = vld [vmem:[#allocation4 + $0x1b08] sm:$0xff] }
 0x3ce   :  { %v2139_v18 = vld [vmem:[#allocation4 + $0x1b28] sm:$0xff]  ;;  %v2137_v19 = vld [vmem:[#allocation4 + $0x1b18] sm:$0xff] }
 0x3d0   :  { %4153 = vmatpush1.bf16.msra.mxu0 %v4152_v40  ;;  %4281 = vmatpush1.bf16.msra.mxu1 %v4280_v41  ;;  %v2109_v40 = vld [vmem:[#allocation4 + $0x1a38] sm:$0xff]  ;;  %v4172_v41 = vpack.c.bf16 %v2098_v29, %v2094_v24  ;;  %v4316_v24 = vpack.c.bf16 %v2132_v15, %v2128_v14  ;;  %v2134_v29 = vld [vmem:[#allocation4 + $0x1b00] sm:$0xff] }
 0x3d1   :  { %4155 = vmatprep.subr.bf16.mxu0 %v4154_v44  ;;  %4283 = vmatprep.subr.bf16.mxu1 %v4282_v45  ;;  %v2106_v44 = vld [vmem:[#allocation4 + $0x1a20] sm:$0xff]  ;;  %v4174_v45 = vpack.c.bf16 %v2107_v38, %v2103_v37  ;;  %v4302_v46 = vpack.c.bf16 %v2109_v40, %v2105_v39  ;;  %v2140_v37 = vld [vmem:[#allocation4 + $0x1b30] sm:$0xff]  ;;  %v2143_v38 = vld [vmem:[#allocation4 + $0x1b48] sm:$0xff] }
 0x3d2   :  { %v2147_v39 = vld [vmem:[#allocation4 + $0x1b68] sm:$0xff]  ;;  %v2145_v40 = vld [vmem:[#allocation4 + $0x1b58] sm:$0xff] }
 0x3d4   :  { %4157 = vmatpush1.bf16.msra.mxu0 %v4156_v52  ;;  %4285 = vmatpush1.bf16.msra.mxu1 %v4284_v53  ;;  %v2117_v52 = vld [vmem:[#allocation4 + $0x1a78] sm:$0xff]  ;;  %v4176_v53 = vpack.c.bf16 %v2106_v44, %v2102_v43  ;;  %v4320_v43 = vpack.c.bf16 %v2140_v37, %v2136_v36  ;;  %v2142_v44 = vld [vmem:[#allocation4 + $0x1b40] sm:$0xff]  ;;  %v2168_v36 = vld [vmem:[#allocation4 + $0x1c10] sm:$0xff] }
 0x3d5   :  { %4159 = vmatprep.subr.bf16.mxu0 %v4158_v56  ;;  %4287 = vmatprep.subr.bf16.mxu1 %v4286_v57  ;;  %v2114_v56 = vld [vmem:[#allocation4 + $0x1a60] sm:$0xff]  ;;  %v4178_v57 = vpack.c.bf16 %v2115_v50, %v2111_v49  ;;  %v4306_v58 = vpack.c.bf16 %v2117_v52, %v2113_v51  ;;  %v2148_v49 = vld [vmem:[#allocation4 + $0x1b70] sm:$0xff]  ;;  %v2151_v50 = vld [vmem:[#allocation4 + $0x1b88] sm:$0xff] }
 0x3d6   :  { %v2155_v51 = vld [vmem:[#allocation4 + $0x1ba8] sm:$0xff]  ;;  %v2153_v52 = vld [vmem:[#allocation4 + $0x1b98] sm:$0xff]  ;;  %v2172_v37 = vld [vmem:[#allocation4 + $0x1c30] sm:$0xff] }
 0x3d8   :  { %4161 = vmatpush1.bf16.msra.mxu0 %v4160_v62  ;;  %4289 = vmatpush1.bf16.msra.mxu1 %v4288_v27  ;;  %v2125_v62 = vld [vmem:[#allocation4 + $0x1ab8] sm:$0xff]  ;;  %v4180_v27 = vpack.c.bf16 %v2114_v56, %v2110_v55  ;;  %v4324_v55 = vpack.c.bf16 %v2148_v49, %v2144_v25  ;;  %v4198_v56 = vpack.c.bf16 %v2155_v51, %v2151_v50  ;;  %v2178_v25 = vld [vmem:[#allocation4 + $0x1c60] sm:$0xff]  ;;  %v2176_v50 = vld [vmem:[#allocation4 + $0x1c50] sm:$0xff] }
 0x3d9   :  { %4163 = vmatprep.subr.bf16.mxu0 %v4162_v2  ;;  %4291 = vmatprep.subr.bf16.mxu1 %v4290_v3  ;;  %v2122_v2 = vld [vmem:[#allocation4 + $0x1aa0] sm:$0xff]  ;;  %v4182_v3 = vpack.c.bf16 %v2123_v21, %v2119_v60  ;;  %v4310_v4 = vpack.c.bf16 %v2125_v62, %v2121_v61  ;;  %v2156_v21 = vld [vmem:[#allocation4 + $0x1bb0] sm:$0xff]  ;;  %v2159_v62 = vld [vmem:[#allocation4 + $0x1bc8] sm:$0xff] }
 0x3da   :  { %v4328_v61 = vpack.c.bf16 %v2156_v21, %v2152_v59  ;;  %v2180_v51 = vld [vmem:[#allocation4 + $0x1c70] sm:$0xff]  ;;  %v2182_v21 = vld [vmem:[#allocation4 + $0x1c80] sm:$0xff] }
 0x3dc   :  { %4165 = vmatpush1.bf16.msra.mxu0 %v4164_v9  ;;  %4293 = vmatpush1.bf16.msra.mxu1 %v4292_v30  ;;  %v2133_v9 = vld [vmem:[#allocation4 + $0x1af8] sm:$0xff]  ;;  %v4184_v30 = vpack.c.bf16 %v2122_v2, %v2118_v1 }
 0x3dd   :  { %4167 = vmatprep.subr.bf16.mxu0 %v4166_v12  ;;  %4295 = vmatprep.subr.bf16.mxu1 %v4294_v47  ;;  %v2130_v12 = vld [vmem:[#allocation4 + $0x1ae0] sm:$0xff]  ;;  %v4186_v47 = vpack.c.bf16 %v2131_v7, %v2127_v23  ;;  %v4314_v13 = vpack.c.bf16 %v2133_v9, %v2129_v8  ;;  %v2165_v2 = vld [vmem:[#allocation4 + $0x1bf8] sm:$0xff]  ;;  %v2160_v23 = vld [vmem:[#allocation4 + $0x1bd0] sm:$0xff] }
 0x3de   :  { %v2164_v7 = vld [vmem:[#allocation4 + $0x1bf0] sm:$0xff]  ;;  %v2167_v9 = vld [vmem:[#allocation4 + $0x1c08] sm:$0xff] }
 0x3df   :  { %v4332_v8 = vpack.c.bf16 %v2164_v7, %v2160_v23  ;;  %v2190_v7 = vld [vmem:[#allocation4 + $0x1cc0] sm:$0xff] }
 0x3e0   :  { %4169 = vmatpush1.bf16.msra.mxu0 %v4168_v20  ;;  %4297 = vmatpush1.bf16.msra.mxu1 %v4296_v22  ;;  %v2141_v20 = vld [vmem:[#allocation4 + $0x1b38] sm:$0xff]  ;;  %v4188_v22 = vpack.c.bf16 %v2130_v12, %v2126_v11 }
 0x3e1   :  { %4171 = vmatprep.subr.bf16.mxu0 %v4170_v32  ;;  %4299 = vmatprep.subr.bf16.mxu1 %v4298_v33  ;;  %v2138_v32 = vld [vmem:[#allocation4 + $0x1b20] sm:$0xff]  ;;  %v4190_v33 = vpack.c.bf16 %v2139_v18, %v2135_v16  ;;  %v4318_v34 = vpack.c.bf16 %v2141_v20, %v2137_v19  ;;  %v2173_v12 = vld [vmem:[#allocation4 + $0x1c38] sm:$0xff] }
 0x3e4   :  { %4173 = vmatpush1.bf16.msra.mxu0 %v4172_v41  ;;  %4301 = vmatpush1.bf16.msra.mxu1 %v4300_v42  ;;  %v2149_v41 = vld [vmem:[#allocation4 + $0x1b78] sm:$0xff]  ;;  %v4192_v42 = vpack.c.bf16 %v2138_v32, %v2134_v29  ;;  %v2166_v29 = vld [vmem:[#allocation4 + $0x1c00] sm:$0xff] }
 0x3e5   :  { %4175 = vmatprep.subr.bf16.mxu0 %v4174_v45  ;;  %4303 = vmatprep.subr.bf16.mxu1 %v4302_v46  ;;  %v2146_v45 = vld [vmem:[#allocation4 + $0x1b60] sm:$0xff]  ;;  %v4194_v46 = vpack.c.bf16 %v2147_v39, %v2143_v38  ;;  %v4322_v48 = vpack.c.bf16 %v2149_v41, %v2145_v40  ;;  %v2175_v39 = vld [vmem:[#allocation4 + $0x1c48] sm:$0xff] }
 0x3e6   :  { %v2179_v40 = vld [vmem:[#allocation4 + $0x1c68] sm:$0xff] }
 0x3e8   :  { %4177 = vmatpush1.bf16.msra.mxu0 %v4176_v53  ;;  %4305 = vmatpush1.bf16.msra.mxu1 %v4304_v54  ;;  %v2157_v53 = vld [vmem:[#allocation4 + $0x1bb8] sm:$0xff]  ;;  %v4196_v54 = vpack.c.bf16 %v2146_v45, %v2142_v44 }
 0x3e9   :  { %4179 = vmatprep.subr.bf16.mxu0 %v4178_v57  ;;  %4307 = vmatprep.subr.bf16.mxu1 %v4306_v58  ;;  %v4326_v57 = vpack.c.bf16 %v2157_v53, %v2153_v52  ;;  %v2150_v58 = vld [vmem:[#allocation4 + $0x1b80] sm:$0xff]  ;;  %v2183_v52 = vld [vmem:[#allocation4 + $0x1c88] sm:$0xff] }
 0x3ea   :  { %v4200_v60 = vpack.c.bf16 %v2154_v17, %v2150_v58  ;;  %v2189_v58 = vld [vmem:[#allocation4 + $0x1cb8] sm:$0xff] }
 0x3ec   :  { %4181 = vmatpush1.bf16.msra.mxu0 %v4180_v27  ;;  %4309 = vmatpush1.bf16.msra.mxu1 %v4308_v63  ;;  %v2163_v27 = vld [vmem:[#allocation4 + $0x1be8] sm:$0xff]  ;;  %v2161_v63 = vld [vmem:[#allocation4 + $0x1bd8] sm:$0xff] }
 0x3ed   :  { %4183 = vmatprep.subr.bf16.mxu0 %v4182_v3  ;;  %4311 = vmatprep.subr.bf16.mxu1 %v4310_v4  ;;  %v4202_v1 = vpack.c.bf16 %v2163_v27, %v2159_v62  ;;  %v2158_v3 = vld [vmem:[#allocation4 + $0x1bc0] sm:$0xff]  ;;  %v4330_v5 = vpack.c.bf16 %v2165_v2, %v2161_v63  ;;  %v2184_v63 = vld [vmem:[#allocation4 + $0x1c90] sm:$0xff]  ;;  %v2191_v2 = vld [vmem:[#allocation4 + $0x1cc8] sm:$0xff] }
 0x3ee   :  { %v2162_v4 = vld [vmem:[#allocation4 + $0x1be0] sm:$0xff] }
 0x3ef   :  { %v4204_v6 = vpack.c.bf16 %v2162_v4, %v2158_v3  ;;  %v2195_v3 = vld [vmem:[#allocation4 + $0x1ce8] sm:$0xff]  ;;  %v2193_v4 = vld [vmem:[#allocation4 + $0x1cd8] sm:$0xff] }
 0x3f0   :  { %4185 = vmatpush1.bf16.msra.mxu0 %v4184_v30  ;;  %4313 = vmatpush1.bf16.msra.mxu1 %v4312_v10  ;;  %v2171_v30 = vld [vmem:[#allocation4 + $0x1c28] sm:$0xff]  ;;  %v2169_v10 = vld [vmem:[#allocation4 + $0x1c18] sm:$0xff] }
 0x3f1   :  { %4187 = vmatprep.subr.bf16.mxu0 %v4186_v47  ;;  %4315 = vmatprep.subr.bf16.mxu1 %v4314_v13  ;;  %v4206_v11 = vpack.c.bf16 %v2171_v30, %v2167_v9  ;;  %v4334_v47 = vpack.c.bf16 %v2173_v12, %v2169_v10  ;;  %v4964_v13 = vld [vmem:[#allocation6 + $0xc] sm:$0xf]  ;;  %v4218_v9 = vpack.c.bf16 %v2195_v3, %v2191_v2  ;;  %v2192_v10 = vld [vmem:[#allocation4 + $0x1cd0] sm:$0xff] }
 0x3f2   :  { %v1724_v14 = vrot.slane %v4964_v13, %v4909_v26  ;;  %v1728_v15 = vrot.slane %v4964_v13, %v4914_v28  ;;  %v1736_v16 = vrot.slane %v4964_v13, %v4921_v31  ;;  %v2199_v12 = vld [vmem:[#allocation4 + $0x1d08] sm:$0xff]  ;;  %v2224_v3 = vld [vmem:[#allocation4 + $0x1dd0] sm:$0xff] }
 0x3f4   :  { %4189 = vmatpush1.bf16.msra.mxu0 %v4188_v22  ;;  %4317 = vmatpush1.bf16.msra.mxu1 %v4316_v24 }
 0x3f5   :  { %4191 = vmatprep.subr.bf16.mxu0 %v4190_v33  ;;  %4319 = vmatprep.subr.bf16.mxu1 %v4318_v34  ;;  %v2170_v34 = vld [vmem:[#allocation4 + $0x1c20] sm:$0xff] }
 0x3f6   :  { %v4208_v45 = vpack.c.bf16 %v2170_v34, %v2166_v29  ;;  %v2207_v34 = vld [vmem:[#allocation4 + $0x1d48] sm:$0xff] }
 0x3f8   :  { %4193 = vmatpush1.bf16.msra.mxu0 %v4192_v42  ;;  %4321 = vmatpush1.bf16.msra.mxu1 %v4320_v43  ;;  %v2177_v42 = vld [vmem:[#allocation4 + $0x1c58] sm:$0xff] }
 0x3f9   :  { %4195 = vmatprep.subr.bf16.mxu0 %v4194_v46  ;;  %4323 = vmatprep.subr.bf16.mxu1 %v4322_v48  ;;  %v2181_v43 = vld [vmem:[#allocation4 + $0x1c78] sm:$0xff]  ;;  %v4336_v46 = vpack.c.bf16 %v2172_v37, %v2168_v36  ;;  %v2174_v48 = vld [vmem:[#allocation4 + $0x1c40] sm:$0xff]  ;;  %v2211_v36 = vld [vmem:[#allocation4 + $0x1d68] sm:$0xff] }
 0x3fa   :  { %v4212_v59 = vpack.c.bf16 %v2178_v25, %v2174_v48  ;;  %v2209_v37 = vld [vmem:[#allocation4 + $0x1d58] sm:$0xff]  ;;  %v2215_v48 = vld [vmem:[#allocation4 + $0x1d88] sm:$0xff] }
 0x3fb   :  { %v2219_v25 = vld [vmem:[#allocation4 + $0x1da8] sm:$0xff] }
 0x3fc   :  { %4197 = vmatpush1.bf16.msra.mxu0 %v4196_v54  ;;  %4325 = vmatpush1.bf16.msra.mxu1 %v4324_v55  ;;  %v4210_v54 = vpack.c.bf16 %v2179_v40, %v2175_v39  ;;  %v4338_v55 = vpack.c.bf16 %v2181_v43, %v2177_v42  ;;  %v2210_v42 = vld [vmem:[#allocation4 + $0x1d60] sm:$0xff]  ;;  %v4226_v43 = vpack.c.bf16 %v2211_v36, %v2207_v34  ;;  %v2240_v36 = vld [vmem:[#allocation4 + $0x1e50] sm:$0xff] }
 0x3fd   :  { %4199 = vmatprep.subr.bf16.mxu0 %v4198_v56  ;;  %4327 = vmatprep.subr.bf16.mxu1 %v4326_v57  ;;  %v2187_v56 = vld [vmem:[#allocation4 + $0x1ca8] sm:$0xff]  ;;  %v2185_v57 = vld [vmem:[#allocation4 + $0x1c98] sm:$0xff] }
 0x3fe   :  { %v4214_v62 = vpack.c.bf16 %v2187_v56, %v2183_v52  ;;  %v4342_v27 = vpack.c.bf16 %v2189_v58, %v2185_v57  ;;  %v2216_v57 = vld [vmem:[#allocation4 + $0x1d90] sm:$0xff] }
 0x3ff   :  { %v2220_v58 = vld [vmem:[#allocation4 + $0x1db0] sm:$0xff] }
 0x400   :  { %4201 = vmatpush1.bf16.msra.mxu0 %v4200_v60  ;;  %4329 = vmatpush1.bf16.msra.mxu1 %v4328_v61  ;;  %v4340_v60 = vpack.c.bf16 %v2180_v51, %v2176_v50  ;;  %v2186_v61 = vld [vmem:[#allocation4 + $0x1ca0] sm:$0xff]  ;;  %v2221_v50 = vld [vmem:[#allocation4 + $0x1db8] sm:$0xff] }
 0x401   :  { %4203 = vmatprep.subr.bf16.mxu0 %v4202_v1  ;;  %4331 = vmatprep.subr.bf16.mxu1 %v4330_v5  ;;  %v2188_v1 = vld [vmem:[#allocation4 + $0x1cb0] sm:$0xff]  ;;  %v2197_v5 = vld [vmem:[#allocation4 + $0x1cf8] sm:$0xff] }
 0x402   :  { %v4344_v23 = vpack.c.bf16 %v2188_v1, %v2184_v63  ;;  %v4346_v30 = vpack.c.bf16 %v2197_v5, %v2193_v4  ;;  %v2226_v63 = vld [vmem:[#allocation4 + $0x1de0] sm:$0xff]  ;;  %v2228_v4 = vld [vmem:[#allocation4 + $0x1df0] sm:$0xff]  ;;  %v2231_v5 = vld [vmem:[#allocation4 + $0x1e08] sm:$0xff] }
 0x404   :  { %4205 = vmatpush1.bf16.msra.mxu0 %v4204_v6  ;;  %4333 = vmatpush1.bf16.msra.mxu1 %v4332_v8  ;;  %v4216_v6 = vpack.c.bf16 %v2186_v61, %v2182_v21  ;;  %v2194_v8 = vld [vmem:[#allocation4 + $0x1ce0] sm:$0xff]  ;;  %v2229_v21 = vld [vmem:[#allocation4 + $0x1df8] sm:$0xff] }
 0x405   :  { %4207 = vmatprep.subr.bf16.mxu0 %v4206_v11  ;;  %4335 = vmatprep.subr.bf16.mxu1 %v4334_v47  ;;  %v2196_v11 = vld [vmem:[#allocation4 + $0x1cf0] sm:$0xff]  ;;  %v2203_v47 = vld [vmem:[#allocation4 + $0x1d28] sm:$0xff] }
 0x49a   :  { %v1878_v18 = vpop.f32.mrb[4].mxu0  ;;  %v4972_v19 = vpop.f32.mrb[8].mxu1 }
 0x49b   :  { %v4542_v20 = vadd.f32 %v1878_v18, %v1724_v14  ;;  %v1880_v22 = vpop.f32.mrb[5].mxu0  ;;  %v2022_v24 = vpop.f32.mrb[9].mxu1  ;;  %v2201_v14 = vld [vmem:[#allocation4 + $0x1d18] sm:$0xff]  ;;  %v4348_v18 = vpack.c.bf16 %v2196_v11, %v2192_v10  ;;  %v2234_v10 = vld [vmem:[#allocation4 + $0x1e20] sm:$0xff] }
 0x49c   :  { %v4543_v32 = vadd.f32 %v1880_v22, %v1728_v15  ;;  %v4545_v33 = vadd.f32 %v2022_v24, %v1736_v16  ;;  %v2205_v15 = vld [vmem:[#allocation4 + $0x1d38] sm:$0xff]  ;;  %v4220_v16 = vpack.c.bf16 %v2194_v8, %v2190_v7  ;;  %v2202_v22 = vld [vmem:[#allocation4 + $0x1d20] sm:$0xff]  ;;  %v4222_v24 = vpack.c.bf16 %v2203_v47, %v2199_v12  ;;  %v2232_v47 = vld [vmem:[#allocation4 + $0x1e10] sm:$0xff] }
 0x49d   :  { %v2029_v38 = vmul.f32 0.01, %v4542_v20  ;;  %vm2025_vm0 = vcmp.ge.f32.partialorder %v4542_v20, 0.0  ;;  %v4350_v29 = vpack.c.bf16 %v2205_v15, %v2201_v14  ;;  %v2237_v7 = vld [vmem:[#allocation4 + $0x1e38] sm:$0xff]  ;;  %v2236_v14 = vld [vmem:[#allocation4 + $0x1e30] sm:$0xff]  ;;  %v2239_v15 = vld [vmem:[#allocation4 + $0x1e48] sm:$0xff] }
 0x49e   :  { %v2030_v41 = vmul.f32 0.01, %v4543_v32  ;;  %vm2026_vm1 = vcmp.ge.f32.partialorder %v4543_v32, 0.0  ;;  %v2032_v44 = vmul.f32 0.01, %v4545_v33  ;;  %vm2028_vm2 = vcmp.ge.f32.partialorder %v4545_v33, 0.0 }
 0x49f   :  { %v2033_v53 = vsel %vm2025_vm0, %v4542_v20, %v2029_v38  ;;  %v2198_v20 = vld [vmem:[#allocation4 + $0x1d00] sm:$0xff]  ;;  %v2213_v38 = vld [vmem:[#allocation4 + $0x1d78] sm:$0xff] }
 0x4a0   :  { %v2034_v49 = vsel %vm2026_vm1, %v4543_v32, %v2030_v41  ;;  %v2036_v17 = vsel %vm2028_vm2, %v4545_v33, %v2032_v44  ;;  %v2200_v32 = vld [vmem:[#allocation4 + $0x1d10] sm:$0xff]  ;;  %v4224_v39 = vpack.c.bf16 %v2202_v22, %v2198_v20  ;;  %v2206_v41 = vld [vmem:[#allocation4 + $0x1d40] sm:$0xff]  ;;  %v4354_v44 = vpack.c.bf16 %v2213_v38, %v2209_v37  ;;  %v2245_v20 = vld [vmem:[#allocation4 + $0x1e78] sm:$0xff] }
 0x4a1   :  { %2381 = vmatprep.mubr.f32.mxu0 %v2034_v49  ;;  %2523 = vmatprep.mubr.f32.mxu1 %v2034_v49  ;;  %v2204_v33 = vld [vmem:[#allocation4 + $0x1d30] sm:$0xff]  ;;  %v2217_v49 = vld [vmem:[#allocation4 + $0x1d98] sm:$0xff]  ;;  %v4228_v51 = vpack.c.bf16 %v2210_v42, %v2206_v41  ;;  %v2247_v38 = vld [vmem:[#allocation4 + $0x1e88] sm:$0xff] }
 0x4a2   :  { %2382 = vmatmul.mubr.f32.vlgmr.msra.gmra.mrb[6].mxu0 %v2033_v53  ;;  %2524 = vmatmul.mubr.f32.vlgmr.msra.gmra.mrb[10].mxu1 %v2033_v53  ;;  %v4352_v40 = vpack.c.bf16 %v2204_v33, %v2200_v32  ;;  %v2214_v53 = vld [vmem:[#allocation4 + $0x1d80] sm:$0xff]  ;;  %v4358_v56 = vpack.c.bf16 %v2221_v50, %v2217_v49  ;;  %v2244_v37 = vld [vmem:[#allocation4 + $0x1e70] sm:$0xff]  ;;  %v2253_v41 = vld [vmem:[#allocation4 + $0x1eb8] sm:$0xff] }
 0x4a3   :  { %4209 = vmatpush1.bf16.msra.mxu0 %v4208_v45  ;;  %4337 = vmatpush1.bf16.msra.mxu1 %v4336_v46  ;;  %v2208_v45 = vld [vmem:[#allocation4 + $0x1d50] sm:$0xff]  ;;  %v2242_v32 = vld [vmem:[#allocation4 + $0x1e60] sm:$0xff]  ;;  %v2255_v50 = vld [vmem:[#allocation4 + $0x1ec8] sm:$0xff] }
 0x4a4   :  { %2452 = vmatprep.mubr.f32.mxu0 %v2036_v17  ;;  %2594 = vmatprep.mubr.f32.mxu1 %v2036_v17  ;;  %v2212_v46 = vld [vmem:[#allocation4 + $0x1d70] sm:$0xff]  ;;  %v2223_v17 = vld [vmem:[#allocation4 + $0x1dc8] sm:$0xff] }
 0x4a5   :  { %4211 = vmatprep.subr.bf16.mxu0 %v4210_v54  ;;  %4339 = vmatprep.subr.bf16.mxu1 %v4338_v55  ;;  %v4356_v52 = vpack.c.bf16 %v2212_v46, %v2208_v45  ;;  %v2218_v54 = vld [vmem:[#allocation4 + $0x1da0] sm:$0xff]  ;;  %v4230_v55 = vpack.c.bf16 %v2219_v25, %v2215_v48  ;;  %v2248_v25 = vld [vmem:[#allocation4 + $0x1e90] sm:$0xff] }
 0x4a6   :  { %v4232_v61 = vpack.c.bf16 %v2218_v54, %v2214_v53  ;;  %v2250_v45 = vld [vmem:[#allocation4 + $0x1ea0] sm:$0xff]  ;;  %v2252_v49 = vld [vmem:[#allocation4 + $0x1eb0] sm:$0xff]  ;;  %v2261_v53 = vld [vmem:[#allocation4 + $0x1ef8] sm:$0xff] }
 0x4a7   :  { %4213 = vmatpush1.bf16.msra.mxu0 %v4212_v59  ;;  %4341 = vmatpush1.bf16.msra.mxu1 %v4340_v60  ;;  %v2227_v59 = vld [vmem:[#allocation4 + $0x1de8] sm:$0xff]  ;;  %v2225_v60 = vld [vmem:[#allocation4 + $0x1dd8] sm:$0xff] }
 0x4a8   :  { %4215 = vmatprep.subr.bf16.mxu0 %v4214_v62  ;;  %4343 = vmatprep.subr.bf16.mxu1 %v4342_v27  ;;  %v4360_v62 = vpack.c.bf16 %v2220_v58, %v2216_v57  ;;  %v2222_v27 = vld [vmem:[#allocation4 + $0x1dc0] sm:$0xff]  ;;  %v4234_v1 = vpack.c.bf16 %v2227_v59, %v2223_v17  ;;  %v4362_v2 = vpack.c.bf16 %v2229_v21, %v2225_v60  ;;  %v2256_v59 = vld [vmem:[#allocation4 + $0x1ed0] sm:$0xff]  ;;  %v2263_v21 = vld [vmem:[#allocation4 + $0x1f08] sm:$0xff] }
 0x4a9   :  { %v4236_v8 = vpack.c.bf16 %v2226_v63, %v2222_v27  ;;  %v2258_v57 = vld [vmem:[#allocation4 + $0x1ee0] sm:$0xff]  ;;  %v2260_v60 = vld [vmem:[#allocation4 + $0x1ef0] sm:$0xff]  ;;  %v2269_v27 = vld [vmem:[#allocation4 + $0x1f38] sm:$0xff] }
 0x4ab   :  { %4217 = vmatpush1.bf16.msra.mxu0 %v4216_v6  ;;  %4345 = vmatpush1.bf16.msra.mxu1 %v4344_v23  ;;  %v2235_v6 = vld [vmem:[#allocation4 + $0x1e28] sm:$0xff]  ;;  %v2233_v23 = vld [vmem:[#allocation4 + $0x1e18] sm:$0xff] }
 0x4ac   :  { %4219 = vmatprep.subr.bf16.mxu0 %v4218_v9  ;;  %4347 = vmatprep.subr.bf16.mxu1 %v4346_v30  ;;  %v4364_v9 = vpack.c.bf16 %v2228_v4, %v2224_v3  ;;  %v2230_v30 = vld [vmem:[#allocation4 + $0x1e00] sm:$0xff]  ;;  %v4238_v11 = vpack.c.bf16 %v2235_v6, %v2231_v5  ;;  %v4366_v12 = vpack.c.bf16 %v2237_v7, %v2233_v23  ;;  %v2264_v6 = vld [vmem:[#allocation4 + $0x1f10] sm:$0xff]  ;;  %v2271_v7 = vld [vmem:[#allocation4 + $0x1f48] sm:$0xff] }
 0x4ad   :  { %v4240_v22 = vpack.c.bf16 %v2234_v10, %v2230_v30  ;;  %v2266_v3 = vld [vmem:[#allocation4 + $0x1f20] sm:$0xff]  ;;  %v2268_v23 = vld [vmem:[#allocation4 + $0x1f30] sm:$0xff]  ;;  %v2277_v30 = vld [vmem:[#allocation4 + $0x1f78] sm:$0xff] }
 0x4af   :  { %4221 = vmatpush1.bf16.msra.mxu0 %v4220_v16  ;;  %4349 = vmatpush1.bf16.msra.mxu1 %v4348_v18  ;;  %v2243_v16 = vld [vmem:[#allocation4 + $0x1e68] sm:$0xff]  ;;  %v2241_v18 = vld [vmem:[#allocation4 + $0x1e58] sm:$0xff] }
 0x4b0   :  { %4223 = vmatprep.subr.bf16.mxu0 %v4222_v24  ;;  %4351 = vmatprep.subr.bf16.mxu1 %v4350_v29  ;;  %v4368_v24 = vpack.c.bf16 %v2236_v14, %v2232_v47  ;;  %v2238_v29 = vld [vmem:[#allocation4 + $0x1e40] sm:$0xff]  ;;  %v4242_v33 = vpack.c.bf16 %v2243_v16, %v2239_v15  ;;  %v4370_v34 = vpack.c.bf16 %v2245_v20, %v2241_v18  ;;  %v2272_v16 = vld [vmem:[#allocation4 + $0x1f50] sm:$0xff]  ;;  %v2279_v20 = vld [vmem:[#allocation4 + $0x1f88] sm:$0xff] }
 0x4b1   :  { %v4244_v42 = vpack.c.bf16 %v2242_v32, %v2238_v29  ;;  %v2274_v47 = vld [vmem:[#allocation4 + $0x1f60] sm:$0xff]  ;;  %v2276_v18 = vld [vmem:[#allocation4 + $0x1f70] sm:$0xff]  ;;  %v2285_v29 = vld [vmem:[#allocation4 + $0x1fb8] sm:$0xff] }
 0x4b3   :  { %4225 = vmatpush1.bf16.msra.mxu0 %v4224_v39  ;;  %4353 = vmatpush1.bf16.msra.mxu1 %v4352_v40  ;;  %v2251_v39 = vld [vmem:[#allocation4 + $0x1ea8] sm:$0xff]  ;;  %v2249_v40 = vld [vmem:[#allocation4 + $0x1e98] sm:$0xff] }
 0x4b4   :  { %4227 = vmatprep.subr.bf16.mxu0 %v4226_v43  ;;  %4355 = vmatprep.subr.bf16.mxu1 %v4354_v44  ;;  %v4372_v43 = vpack.c.bf16 %v2244_v37, %v2240_v36  ;;  %v2246_v44 = vld [vmem:[#allocation4 + $0x1e80] sm:$0xff]  ;;  %v4246_v46 = vpack.c.bf16 %v2251_v39, %v2247_v38  ;;  %v4374_v48 = vpack.c.bf16 %v2253_v41, %v2249_v40  ;;  %v2280_v39 = vld [vmem:[#allocation4 + $0x1f90] sm:$0xff]  ;;  %v2287_v41 = vld [vmem:[#allocation4 + $0x1fc8] sm:$0xff] }
 0x4b5   :  { %v4248_v54 = vpack.c.bf16 %v2250_v45, %v2246_v44  ;;  %v2282_v36 = vld [vmem:[#allocation4 + $0x1fa0] sm:$0xff]  ;;  %v2284_v40 = vld [vmem:[#allocation4 + $0x1fb0] sm:$0xff]  ;;  %v2289_v44 = vld [vmem:[#allocation4 + $0x1fd8] sm:$0xff] }
 0x4b6   :  { %v2293_v45 = vld [vmem:[#allocation4 + $0x1ff8] sm:$0xff] }
 0x4b7   :  { %4229 = vmatpush1.bf16.msra.mxu0 %v4228_v51  ;;  %4357 = vmatpush1.bf16.msra.mxu1 %v4356_v52  ;;  %v2259_v51 = vld [vmem:[#allocation4 + $0x1ee8] sm:$0xff]  ;;  %v2257_v52 = vld [vmem:[#allocation4 + $0x1ed8] sm:$0xff] }
 0x4b8   :  { %4231 = vmatprep.subr.bf16.mxu0 %v4230_v55  ;;  %4359 = vmatprep.subr.bf16.mxu1 %v4358_v56  ;;  %v4376_v55 = vpack.c.bf16 %v2252_v49, %v2248_v25  ;;  %v2254_v56 = vld [vmem:[#allocation4 + $0x1ec0] sm:$0xff]  ;;  %v4250_v58 = vpack.c.bf16 %v2259_v51, %v2255_v50  ;;  %v4378_v17 = vpack.c.bf16 %v2261_v53, %v2257_v52  ;;  %v2288_v52 = vld [vmem:[#allocation4 + $0x1fd0] sm:$0xff] }
 0x4b9   :  { %v4252_v63 = vpack.c.bf16 %v2258_v57, %v2254_v56  ;;  %v2286_v25 = vld [vmem:[#allocation4 + $0x1fc0] sm:$0xff]  ;;  %v4394_v51 = vpack.c.bf16 %v2293_v45, %v2289_v44  ;;  %v2292_v53 = vld [vmem:[#allocation4 + $0x1ff0] sm:$0xff] }
 0x4ba   :  { %v2290_v49 = vld [vmem:[#allocation4 + $0x1fe0] sm:$0xff]  ;;  %v2652_v45 = vld [vmem:[#allocation7 + $0x138] sm:$0xff] }
 0x4bb   :  { %4233 = vmatpush1.bf16.msra.mxu0 %v4232_v61  ;;  %4361 = vmatpush1.bf16.msra.mxu1 %v4360_v62  ;;  %v2267_v61 = vld [vmem:[#allocation4 + $0x1f28] sm:$0xff]  ;;  %v2265_v62 = vld [vmem:[#allocation4 + $0x1f18] sm:$0xff] }
 0x4bc   :  { %4235 = vmatprep.subr.bf16.mxu0 %v4234_v1  ;;  %4363 = vmatprep.subr.bf16.mxu1 %v4362_v2  ;;  %v4380_v1 = vpack.c.bf16 %v2260_v60, %v2256_v59  ;;  %v2262_v2 = vld [vmem:[#allocation4 + $0x1f00] sm:$0xff]  ;;  %v4254_v4 = vpack.c.bf16 %v2267_v61, %v2263_v21  ;;  %v4382_v5 = vpack.c.bf16 %v2269_v27, %v2265_v62  ;;  %v2613_v59 = vld [vmem:[#allocation7] sm:$0xff] }
 0x4bd   :  { %v4256_v10 = vpack.c.bf16 %v2266_v3, %v2262_v2  ;;  %v2630_v56 = vld [vmem:[#allocation7 + $0x88] sm:$0xff]  ;;  %v2645_v62 = vld [vmem:[#allocation7 + $0x100] sm:$0xff]  ;;  %v2632_v2 = vld [vmem:[#allocation7 + $0x98] sm:$0xff] }
 0x4be   :  { %v2662_v57 = vld [vmem:[#allocation7 + $0x188] sm:$0xff]  ;;  %v2663_v3 = vld [vmem:[#allocation7 + $0x190] sm:$0xff] }
 0x4bf   :  { %4237 = vmatpush1.bf16.msra.mxu0 %v4236_v8  ;;  %4365 = vmatpush1.bf16.msra.mxu1 %v4364_v9  ;;  %v2275_v8 = vld [vmem:[#allocation4 + $0x1f68] sm:$0xff]  ;;  %v2273_v9 = vld [vmem:[#allocation4 + $0x1f58] sm:$0xff] }
 0x4c0   :  { %4239 = vmatprep.subr.bf16.mxu0 %v4238_v11  ;;  %4367 = vmatprep.subr.bf16.mxu1 %v4366_v12  ;;  %v4384_v11 = vpack.c.bf16 %v2268_v23, %v2264_v6  ;;  %v2270_v12 = vld [vmem:[#allocation4 + $0x1f40] sm:$0xff]  ;;  %v4258_v14 = vpack.c.bf16 %v2275_v8, %v2271_v7  ;;  %v4386_v15 = vpack.c.bf16 %v2277_v30, %v2273_v9  ;;  %v2616_v23 = vld [vmem:[#allocation7 + $0x18] sm:$0xff] }
 0x4c1   :  { %v4260_v32 = vpack.c.bf16 %v2274_v47, %v2270_v12  ;;  %v2614_v60 = vld [vmem:[#allocation7 + $0x8] sm:$0xff]  ;;  %v2615_v6 = vld [vmem:[#allocation7 + $0x10] sm:$0xff]  ;;  %v2648_v30 = vld [vmem:[#allocation7 + $0x118] sm:$0xff] }
 0x4c2   :  { %v2646_v27 = vld [vmem:[#allocation7 + $0x108] sm:$0xff]  ;;  %v2647_v9 = vld [vmem:[#allocation7 + $0x110] sm:$0xff]  ;;  %v2665_v47 = vld [vmem:[#allocation7 + $0x1a0] sm:$0xff] }
 0x4c3   :  { %4241 = vmatpush1.bf16.msra.mxu0 %v4240_v22  ;;  %4369 = vmatpush1.bf16.msra.mxu1 %v4368_v24  ;;  %v2283_v22 = vld [vmem:[#allocation4 + $0x1fa8] sm:$0xff]  ;;  %v2281_v24 = vld [vmem:[#allocation4 + $0x1f98] sm:$0xff] }
 0x4c4   :  { %4243 = vmatprep.subr.bf16.mxu0 %v4242_v33  ;;  %4371 = vmatprep.subr.bf16.mxu1 %v4370_v34  ;;  %v4388_v33 = vpack.c.bf16 %v2276_v18, %v2272_v16  ;;  %v2278_v34 = vld [vmem:[#allocation4 + $0x1f80] sm:$0xff]  ;;  %v4262_v37 = vpack.c.bf16 %v2283_v22, %v2279_v20  ;;  %v4390_v38 = vpack.c.bf16 %v2285_v29, %v2281_v24  ;;  %v2617_v18 = vld [vmem:[#allocation7 + $0x20] sm:$0xff] }
 0x4c5   :  { %v2634_v12 = vld [vmem:[#allocation7 + $0xa8] sm:$0xff]  ;;  %v4436_v16 = vpack.c.bf16 %v2648_v30, %v2647_v9  ;;  %v2649_v29 = vld [vmem:[#allocation7 + $0x120] sm:$0xff]  ;;  %v2651_v44 = vld [vmem:[#allocation7 + $0x130] sm:$0xff] }
 0x4c6   :  { %v2618_v20 = vld [vmem:[#allocation7 + $0x28] sm:$0xff] }
 0x4c7   :  { %4245 = vmatpush1.bf16.msra.mxu0 %v4244_v42  ;;  %4373 = vmatpush1.bf16.msra.mxu1 %v4372_v43  ;;  %v1732_v42 = vrot.slane %v4964_v13, %v4929_v35  ;;  %v2291_v43 = vld [vmem:[#allocation4 + $0x1fe8] sm:$0xff]  ;;  %v2661_v13 = vld [vmem:[#allocation7 + $0x180] sm:$0xff]  ;;  %v2626_v9 = vld [vmem:[#allocation7 + $0x68] sm:$0xff] }
 0x4c8   :  { %4247 = vmatprep.subr.bf16.mxu0 %v4246_v46  ;;  %4375 = vmatprep.subr.bf16.mxu1 %v4374_v48  ;;  %v4264_v46 = vpack.c.bf16 %v2282_v36, %v2278_v34  ;;  %v4392_v48 = vpack.c.bf16 %v2284_v40, %v2280_v39  ;;  %v4266_v50 = vpack.c.bf16 %v2291_v43, %v2287_v41  ;;  %v2636_v34 = vld [vmem:[#allocation7 + $0xb8] sm:$0xff]  ;;  %v2667_v36 = vld [vmem:[#allocation7 + $0x1b0] sm:$0xff] }
 0x4c9   :  { %v4430_v61 = vpack.c.bf16 %v2662_v57, %v2661_v13  ;;  %v2619_v40 = vld [vmem:[#allocation7 + $0x30] sm:$0xff]  ;;  %v2620_v41 = vld [vmem:[#allocation7 + $0x38] sm:$0xff]  ;;  %v2654_v13 = vld [vmem:[#allocation7 + $0x148] sm:$0xff] }
 0x4ca   :  { %v2639_v57 = vld [vmem:[#allocation7 + $0xd0] sm:$0xff] }
 0x4cb   :  { %4249 = vmatpush1.bf16.msra.mxu0 %v4248_v54  ;;  %4377 = vmatpush1.bf16.msra.mxu1 %v4376_v55  ;;  %v2629_v54 = vld [vmem:[#allocation7 + $0x80] sm:$0xff]  ;;  %v4544_v55 = vadd.f32 %v4972_v19, %v1732_v42  ;;  %v2664_v19 = vld [vmem:[#allocation7 + $0x198] sm:$0xff] }
 0x4cc   :  { %4251 = vmatprep.subr.bf16.mxu0 %v4250_v58  ;;  %4379 = vmatprep.subr.bf16.mxu1 %v4378_v17  ;;  %v4268_v58 = vpack.c.bf16 %v2290_v49, %v2286_v25  ;;  %v4396_v17 = vpack.c.bf16 %v2292_v53, %v2288_v52  ;;  %v4398_v21 = vpack.c.bf16 %v2630_v56, %v2629_v54  ;;  %v2669_v25 = vld [vmem:[#allocation7 + $0x1c0] sm:$0xff]  ;;  %v2670_v49 = vld [vmem:[#allocation7 + $0x1c8] sm:$0xff] }
 0x4cd   :  { %vm2027_vm3 = vcmp.ge.f32.partialorder %v4544_v55, 0.0  ;;  %v4434_v8 = vpack.c.bf16 %v2664_v19, %v2663_v3  ;;  %v2621_v52 = vld [vmem:[#allocation7 + $0x40] sm:$0xff]  ;;  %v2622_v53 = vld [vmem:[#allocation7 + $0x48] sm:$0xff] }
 0x4ce   :  { %v2653_v56 = vld [vmem:[#allocation7 + $0x140] sm:$0xff] }
 0x4cf   :  { %4253 = vmatpush1.bf16.msra.mxu0 %v4252_v63  ;;  %4381 = vmatpush1.bf16.msra.mxu1 %v4380_v1  ;;  %v2631_v63 = vld [vmem:[#allocation7 + $0x90] sm:$0xff]  ;;  %v2031_v1 = vmul.f32 0.01, %v4544_v55 }
 0x4d0   :  { %4255 = vmatprep.subr.bf16.mxu0 %v4254_v4  ;;  %4383 = vmatprep.subr.bf16.mxu1 %v4382_v5  ;;  %v4400_v4 = vpack.c.bf16 %v2614_v60, %v2613_v59  ;;  %v4432_v5 = vpack.c.bf16 %v2646_v27, %v2645_v62  ;;  %v4402_v7 = vpack.c.bf16 %v2632_v2, %v2631_v63  ;;  %v2672_v59 = vld [vmem:[#allocation7 + $0x1d8] sm:$0xff] }
 0x4d1   :  { %v4416_v60 = vpack.c.bf16 %v2622_v53, %v2621_v52  ;;  %v2624_v63 = vld [vmem:[#allocation7 + $0x58] sm:$0xff]  ;;  %v2828_v52 = vld [vmem:[#allocation9 + $0x8] sm:$0xff] }
 0x4d2   :  { %v2656_v2 = vld [vmem:[#allocation7 + $0x158] sm:$0xff] }
 0x4d3   :  { %4257 = vmatpush1.bf16.msra.mxu0 %v4256_v10  ;;  %4385 = vmatpush1.bf16.msra.mxu1 %v4384_v11  ;;  %v2633_v10 = vld [vmem:[#allocation7 + $0xa0] sm:$0xff]  ;;  %v2035_v11 = vsel %vm2027_vm3, %v4544_v55, %v2031_v1  ;;  %v4446_v55 = vpack.c.bf16 %v2670_v49, %v2669_v25  ;;  %v2655_v1 = vld [vmem:[#allocation7 + $0x150] sm:$0xff] }
 0x4d4   :  { %4259 = vmatprep.subr.bf16.mxu0 %v4258_v14  ;;  %4387 = vmatprep.subr.bf16.mxu1 %v4386_v15  ;;  %v2666_v14 = vld [vmem:[#allocation7 + $0x1a8] sm:$0xff]  ;;  %v4404_v15 = vpack.c.bf16 %v2616_v23, %v2615_v6  ;;  %v4406_v22 = vpack.c.bf16 %v2634_v12, %v2633_v10  ;;  %v4452_v19 = vpack.c.bf16 %v2656_v2, %v2655_v1  ;;  %v2673_v6 = vld [vmem:[#allocation7 + $0x1e0] sm:$0xff] }
 0x4d5   :  { %v4438_v24 = vpack.c.bf16 %v2666_v14, %v2665_v47  ;;  %v2658_v12 = vld [vmem:[#allocation7 + $0x168] sm:$0xff]  ;;  %v2643_v14 = vld [vmem:[#allocation7 + $0xf0] sm:$0xff] }
 0x4d6   :  { %v2836_v1 = vld [vmem:[#allocation9 + $0x48] sm:$0xff] }
 0x4d7   :  { %4261 = vmatpush1.bf16.msra.mxu0 %v4260_v32  ;;  %4389 = vmatpush1.bf16.msra.mxu1 %v4388_v33  ;;  %v2650_v32 = vld [vmem:[#allocation7 + $0x128] sm:$0xff]  ;;  %v2635_v33 = vld [vmem:[#allocation7 + $0xb0] sm:$0xff] }
 0x4d8   :  { %4263 = vmatprep.subr.bf16.mxu0 %v4262_v37  ;;  %4391 = vmatprep.subr.bf16.mxu1 %v4390_v38  ;;  %v2668_v37 = vld [vmem:[#allocation7 + $0x1b8] sm:$0xff]  ;;  %v4408_v38 = vpack.c.bf16 %v2618_v20, %v2617_v18  ;;  %v4440_v39 = vpack.c.bf16 %v2650_v32, %v2649_v29  ;;  %v4410_v42 = vpack.c.bf16 %v2636_v34, %v2635_v33  ;;  %v2659_v33 = vld [vmem:[#allocation7 + $0x170] sm:$0xff] }
 0x4d9   :  { %v4442_v43 = vpack.c.bf16 %v2668_v37, %v2667_v36  ;;  %v2676_v20 = vld [vmem:[#allocation7 + $0x1f8] sm:$0xff]  ;;  %v4740_v37 = vmov 0.0|0.0  }
 0x4da   :  { %v2660_v34 = vld [vmem:[#allocation7 + $0x178] sm:$0xff] }
 0x4db   :  { %4265 = vmatpush1.bf16.msra.mxu0 %v4264_v46  ;;  %4393 = vmatpush1.bf16.msra.mxu1 %v4392_v48  ;;  %v2637_v46 = vld [vmem:[#allocation7 + $0xc0] sm:$0xff]  ;;  %v2638_v48 = vld [vmem:[#allocation7 + $0xc8] sm:$0xff]  ;;  %v4460_v36 = vpack.c.bf16 %v2660_v34, %v2659_v33  ;;  %v2935_v34 = vld [vmem:[#allocation9 + $0xd0] sm:$0xff] }
 0x4dc   :  { %4267 = vmatprep.subr.bf16.mxu0 %v4266_v50  ;;  %4395 = vmatprep.subr.bf16.mxu1 %v4394_v51  ;;  %v4412_v50 = vpack.c.bf16 %v2620_v41, %v2619_v40  ;;  %v4444_v51 = vpack.c.bf16 %v2652_v45, %v2651_v44  ;;  %v4414_v54 = vpack.c.bf16 %v2638_v48, %v2637_v46 }
 0x4df   :  { %4269 = vmatpush1.bf16.msra.mxu0 %v4268_v58  ;;  %4397 = vmatpush1.bf16.msra.mxu1 %v4396_v17  ;;  %v2640_v58 = vld [vmem:[#allocation7 + $0xd8] sm:$0xff]  ;;  %v2671_v17 = vld [vmem:[#allocation7 + $0x1d0] sm:$0xff] }
 0x4e0   :  { %4399 = vmatprep.subr.bf16.mxu0 %v4398_v21  ;;  %4431 = vmatprep.subr.bf16.mxu1 %v4430_v61  ;;  %v4448_v21 = vpack.c.bf16 %v2654_v13, %v2653_v56  ;;  %v2623_v61 = vld [vmem:[#allocation7 + $0x50] sm:$0xff]  ;;  %v4418_v62 = vpack.c.bf16 %v2640_v58, %v2639_v57  ;;  %v4450_v27 = vpack.c.bf16 %v2672_v59, %v2671_v17  ;;  %v2830_v13 = vld [vmem:[#allocation9 + $0x18] sm:$0xff]  ;;  %v2831_v59 = vld [vmem:[#allocation9 + $0x20] sm:$0xff] }
 0x4e1   :  { %v4420_v3 = vpack.c.bf16 %v2624_v63, %v2623_v61  ;;  %v2829_v56 = vld [vmem:[#allocation9 + $0x10] sm:$0xff]  ;;  %v2835_v63 = vld [vmem:[#allocation9 + $0x40] sm:$0xff] }
 0x4e2   :  { %2453 = vmatmul.mubr.f32.vlgmr.msra.gmra.mrb[6].mxu0 %v2035_v11  ;;  %2595 = vmatmul.mubr.f32.vlgmr.msra.gmra.mrb[10].mxu1 %v2035_v11  ;;  %v2657_v11 = vld [vmem:[#allocation7 + $0x160] sm:$0xff]  ;;  %v4466_v17 = vpack.c.bf16 %v2830_v13, %v2829_v56  ;;  %v2833_v61 = vld [vmem:[#allocation9 + $0x30] sm:$0xff]  ;;  %v4475_v2 = vpack.c.bf16 %v2836_v1, %v2835_v63  ;;  %v3026_v56 = vld [vmem:[#allocation9 + $0x118] sm:$0xff] }
 0x4e3   :  { %4401 = vmatpush3.bf16.msra.mxu0 %v4400_v4  ;;  %4433 = vmatpush3.bf16.msra.mxu1 %v4432_v5  ;;  %v2641_v4 = vld [vmem:[#allocation7 + $0xe0] sm:$0xff]  ;;  %v2642_v5 = vld [vmem:[#allocation7 + $0xe8] sm:$0xff]  ;;  %v4456_v47 = vpack.c.bf16 %v2658_v12, %v2657_v11  ;;  %v2927_v11 = vld [vmem:[#allocation9 + $0x90] sm:$0xff] }
 0x4e4   :  { %4403 = vmatprep.subr.bf16.mxu0 %v4402_v7  ;;  %4435 = vmatprep.subr.bf16.mxu1 %v4434_v8  ;;  %v4422_v23 = vpack.c.bf16 %v2642_v5, %v2641_v4  ;;  %v2674_v7 = vld [vmem:[#allocation7 + $0x1e8] sm:$0xff]  ;;  %v2625_v8 = vld [vmem:[#allocation7 + $0x60] sm:$0xff]  ;;  %v3034_v63 = vld [vmem:[#allocation9 + $0x158] sm:$0xff] }
 0x4e5   :  { %v4454_v30 = vpack.c.bf16 %v2674_v7, %v2673_v6  ;;  %v4424_v10 = vpack.c.bf16 %v2626_v9, %v2625_v8  ;;  %v2839_v5 = vld [vmem:[#allocation9 + $0x60] sm:$0xff]  ;;  %v2840_v6 = vld [vmem:[#allocation9 + $0x68] sm:$0xff]  ;;  %v2841_v7 = vld [vmem:[#allocation9 + $0x70] sm:$0xff] }
 0x4e6   :  { %v2842_v8 = vld [vmem:[#allocation9 + $0x78] sm:$0xff] }
 0x4e7   :  { %4405 = vmatpush3.bf16.msra.mxu0 %v4404_v15  ;;  %4437 = vmatpush3.bf16.msra.mxu1 %v4436_v16  ;;  %v2644_v15 = vld [vmem:[#allocation7 + $0xf8] sm:$0xff]  ;;  %v2675_v16 = vld [vmem:[#allocation7 + $0x1f0] sm:$0xff]  ;;  %v4484_v9 = vpack.c.bf16 %v2842_v8, %v2841_v7 }
 0x4e8   :  { %4407 = vmatprep.subr.bf16.mxu0 %v4406_v22  ;;  %4439 = vmatprep.subr.bf16.mxu1 %v4438_v24  ;;  %v4426_v18 = vpack.c.bf16 %v2644_v15, %v2643_v14  ;;  %v2627_v22 = vld [vmem:[#allocation7 + $0x70] sm:$0xff]  ;;  %v2628_v24 = vld [vmem:[#allocation7 + $0x78] sm:$0xff]  ;;  %v4458_v29 = vpack.c.bf16 %v2676_v20, %v2675_v16  ;;  %v2929_v15 = vld [vmem:[#allocation9 + $0xa0] sm:$0xff] }
 0x4e9   :  { %v4428_v32 = vpack.c.bf16 %v2628_v24, %v2627_v22  ;;  %v2930_v16 = vld [vmem:[#allocation9 + $0xa8] sm:$0xff]  ;;  %v2931_v20 = vld [vmem:[#allocation9 + $0xb0] sm:$0xff]  ;;  %v2932_v22 = vld [vmem:[#allocation9 + $0xb8] sm:$0xff] }
 0x4ea   :  { %v4496_v24 = vpack.c.bf16 %v2932_v22, %v2931_v20 }
 0x4eb   :  { %4409 = vmatpush3.bf16.msra.mxu0 %v4408_v38  ;;  %4441 = vmatpush3.bf16.msra.mxu1 %v4440_v39  ;;  %v2295_v38 = vld [vmem:[#allocation6 + $0x10] sm:$0xf] }
 0x4ec   :  { %4411 = vmatprep.subr.bf16.mxu0 %v4410_v42  ;;  %4443 = vmatprep.subr.bf16.mxu1 %v4442_v43  ;;  %v2300_v39 = vrot.slane %v2295_v38, %v4909_v26  ;;  %v2308_v40 = vrot.slane %v2295_v38, %v4929_v35  ;;  %v2304_v41 = vrot.slane %v2295_v38, %v4914_v28 }
 0x4ed   :  { %v2312_v42 = vrot.slane %v2295_v38, %v4921_v31 }
 0x4ef   :  { %4413 = vmatpush3.bf16.msra.mxu0 %v4412_v50  ;;  %4445 = vmatpush3.bf16.msra.mxu1 %v4444_v51  ;;  %v2827_v51 = vld [vmem:[#allocation9] sm:$0xff] }
 0x4f0   :  { %4415 = vmatprep.subr.bf16.mxu0 %v4414_v54  ;;  %4447 = vmatprep.subr.bf16.mxu1 %v4446_v55  ;;  %v4463_v28 = vpack.c.bf16 %v2828_v52, %v2827_v51 }
 0x4f3   :  { %4417 = vmatpush3.bf16.msra.mxu0 %v4416_v60  ;;  %4449 = vmatpush3.bf16.msra.mxu1 %v4448_v21  ;;  %v2832_v60 = vld [vmem:[#allocation9 + $0x28] sm:$0xff] }
 0x4f4   :  { %4419 = vmatprep.subr.bf16.mxu0 %v4418_v62  ;;  %4451 = vmatprep.subr.bf16.mxu1 %v4450_v27  ;;  %v4469_v21 = vpack.c.bf16 %v2832_v60, %v2831_v59  ;;  %v2834_v62 = vld [vmem:[#allocation9 + $0x38] sm:$0xff] }
 0x4f5   :  { %v4472_v27 = vpack.c.bf16 %v2834_v62, %v2833_v61  ;;  %v3030_v59 = vld [vmem:[#allocation9 + $0x138] sm:$0xff]  ;;  %v3032_v61 = vld [vmem:[#allocation9 + $0x148] sm:$0xff] }
 0x4f7   :  { %4421 = vmatpush3.bf16.msra.mxu0 %v4420_v3  ;;  %4453 = vmatpush3.bf16.msra.mxu1 %v4452_v19  ;;  %v2837_v3 = vld [vmem:[#allocation9 + $0x50] sm:$0xff]  ;;  %v2838_v19 = vld [vmem:[#allocation9 + $0x58] sm:$0xff] }
 0x4f8   :  { %4423 = vmatprep.subr.bf16.mxu0 %v4422_v23  ;;  %4455 = vmatprep.subr.bf16.mxu1 %v4454_v30  ;;  %v4478_v4 = vpack.c.bf16 %v2838_v19, %v2837_v3  ;;  %v4481_v23 = vpack.c.bf16 %v2840_v6, %v2839_v5  ;;  %v2925_v30 = vld [vmem:[#allocation9 + $0x80] sm:$0xff]  ;;  %v3036_v3 = vld [vmem:[#allocation9 + $0x168] sm:$0xff] }
 0x4fb   :  { %4425 = vmatpush3.bf16.msra.mxu0 %v4424_v10  ;;  %4457 = vmatpush3.bf16.msra.mxu1 %v4456_v47  ;;  %v2926_v10 = vld [vmem:[#allocation9 + $0x88] sm:$0xff]  ;;  %v2928_v47 = vld [vmem:[#allocation9 + $0x98] sm:$0xff] }
 0x4fc   :  { %4427 = vmatprep.subr.bf16.mxu0 %v4426_v18  ;;  %4459 = vmatprep.subr.bf16.mxu1 %v4458_v29  ;;  %v4487_v12 = vpack.c.bf16 %v2926_v10, %v2925_v30  ;;  %v4490_v14 = vpack.c.bf16 %v2928_v47, %v2927_v11  ;;  %v4493_v18 = vpack.c.bf16 %v2930_v16, %v2929_v15  ;;  %v2933_v29 = vld [vmem:[#allocation9 + $0xc0] sm:$0xff]  ;;  %v3038_v30 = vld [vmem:[#allocation9 + $0x178] sm:$0xff] }
 0x4fd   :  { %v3134_v11 = vld [vmem:[#allocation10 + $0x2] ss:$0 sm:$0xff] }
 0x4ff   :  { %4429 = vmatpush3.bf16.msra.mxu0 %v4428_v32  ;;  %4461 = vmatpush3.bf16.msra.mxu1 %v4460_v36  ;;  %v2934_v32 = vld [vmem:[#allocation9 + $0xc8] sm:$0xff]  ;;  %v2936_v36 = vld [vmem:[#allocation9 + $0xd8] sm:$0xff] }
 0x500   :  { %4462 = vmatprep.subr.bf16.mxu0 %v4740_v37  ;;  %4486 = vmatprep.subr.bf16.mxu1 %v4740_v37  ;;  %v4499_v33 = vpack.c.bf16 %v2934_v32, %v2933_v29  ;;  %v4502_v38 = vpack.c.bf16 %v2936_v36, %v2935_v34 }
 0x5b5   :  { %v2454_v43 = vpop.f32.mrb[6].mxu0  ;;  %v2596_v44 = vpop.f32.mrb[10].mxu1 }
 0x5b6   :  { %v4546_v45 = vadd.f32 %v2454_v43, %v2300_v39  ;;  %v4548_v46 = vadd.f32 %v2596_v44, %v2308_v40  ;;  %v2456_v48 = vpop.f32.mrb[7].mxu0  ;;  %v2598_v25 = vpop.f32.mrb[11].mxu1  ;;  %v2937_v39 = vld [vmem:[#allocation9 + $0xe0] sm:$0xff]  ;;  %v2938_v40 = vld [vmem:[#allocation9 + $0xe8] sm:$0xff] }
 0x5b7   :  { %v4547_v49 = vadd.f32 %v2456_v48, %v2304_v41  ;;  %v4549_v50 = vadd.f32 %v2598_v25, %v2312_v42  ;;  %v4505_v41 = vpack.c.bf16 %v2938_v40, %v2937_v39  ;;  %v3132_v44 = vld [vmem:[#allocation10] ss:$0 sm:$0xff] }
 0x5b8   :  { %vm2601_vm4 = vcmp.ge.f32.partialorder %v4546_v45, 0.0  ;;  %v2605_v53 = vmul.f32 0.01, %v4546_v45  ;;  %vm2603_vm5 = vcmp.ge.f32.partialorder %v4548_v46, 0.0  ;;  %v2607_v26 = vmul.f32 0.01, %v4548_v46 }
 0x5b9   :  { %v2606_v54 = vmul.f32 0.01, %v4547_v49  ;;  %v2608_v35 = vmul.f32 0.01, %v4549_v50  ;;  %vm2602_vm6 = vcmp.ge.f32.partialorder %v4547_v49, 0.0  ;;  %vm2604_vm7 = vcmp.ge.f32.partialorder %v4549_v50, 0.0 }
 0x5ba   :  { %v2609_v57 = vsel %vm2601_vm4, %v4546_v45, %v2605_v53  ;;  %v2611_v58 = vsel %vm2603_vm5, %v4548_v46, %v2607_v26  ;;  %v2939_v53 = vld [vmem:[#allocation9 + $0xf0] sm:$0xff]  ;;  %v2940_v26 = vld [vmem:[#allocation9 + $0xf8] sm:$0xff] }
 0x5bb   :  { %v2610_v31 = vsel %vm2602_vm6, %v4547_v49, %v2606_v54  ;;  %v2612_v55 = vsel %vm2604_vm7, %v4549_v50, %v2608_v35  ;;  %v4508_v54 = vpack.c.bf16 %v2940_v26, %v2939_v53  ;;  %v3023_v35 = vld [vmem:[#allocation9 + $0x100] sm:$0xff] }
 0x5bc   :  { %2748 = vmatprep.mubr.f32.mxu0 %v2610_v31  ;;  %2818 = vmatprep.mubr.f32.mxu1 %v2612_v55  ;;  %v3025_v31 = vld [vmem:[#allocation9 + $0x110] sm:$0xff] }
 0x5bd   :  { %2749 = vmatmul.mubr.f32.vlgmr.msra.gmra.mrb[8].mxu0 %v2609_v57  ;;  %2819 = vmatmul.mubr.f32.vlgmr.msra.gmra.mrb[12].mxu1 %v2611_v58  ;;  %v4514_v13 = vpack.c.bf16 %v3026_v56, %v3025_v31  ;;  %v3027_v57 = vld [vmem:[#allocation9 + $0x120] sm:$0xff]  ;;  %v3028_v58 = vld [vmem:[#allocation9 + $0x128] sm:$0xff] }
 0x5be   :  { %4464 = vmatpush3.bf16.msra.mxu0 %v4463_v28  ;;  %3289 = vmatprep.mubr.msk.f32.mxu0 %vm4741_vm8, %v4738_v0  ;;  %v3024_v28 = vld [vmem:[#allocation9 + $0x108] sm:$0xff] }
 0x5bf   :  { %4465 = vmatprep.subr.bf16.mxu0 %v4740_v37  ;;  %3324 = vmatprep.mubr.msk.f32.mxu1 %vm4741_vm8, %v4738_v0  ;;  %v4511_v55 = vpack.c.bf16 %v3024_v28, %v3023_v35 }
 0x5c0   :  { %4488 = vmatpush3.bf16.msra.mxu1 %v4487_v12 }
 0x5c1   :  { %4489 = vmatprep.subr.bf16.mxu1 %v4740_v37 }
 0x5c2   :  { %4467 = vmatpush3.bf16.msra.mxu0 %v4466_v17  ;;  %v4517_v17 = vpack.c.bf16 %v3028_v58, %v3027_v57 }
 0x5c3   :  { %4468 = vmatprep.subr.bf16.mxu0 %v4740_v37 }
 0x5c4   :  { %4491 = vmatpush3.bf16.msra.mxu1 %v4490_v14 }
 0x5c5   :  { %4492 = vmatprep.subr.bf16.mxu1 %v4740_v37 }
 0x5c6   :  { %4470 = vmatpush3.bf16.msra.mxu0 %v4469_v21  ;;  %v3031_v21 = vld [vmem:[#allocation9 + $0x140] sm:$0xff] }
 0x5c7   :  { %4471 = vmatprep.subr.bf16.mxu0 %v4740_v37  ;;  %v4523_v62 = vpack.c.bf16 %v3032_v61, %v3031_v21 }
 0x5c8   :  { %4494 = vmatpush3.bf16.msra.mxu1 %v4493_v18 }
 0x5c9   :  { %4495 = vmatprep.subr.bf16.mxu1 %v4740_v37 }
 0x5ca   :  { %4473 = vmatpush3.bf16.msra.mxu0 %v4472_v27  ;;  %v3033_v27 = vld [vmem:[#allocation9 + $0x150] sm:$0xff] }
 0x5cb   :  { %4474 = vmatprep.subr.bf16.mxu0 %v4740_v37  ;;  %v4526_v1 = vpack.c.bf16 %v3034_v63, %v3033_v27 }
 0x5cc   :  { %4497 = vmatpush3.bf16.msra.mxu1 %v4496_v24 }
 0x5cd   :  { %4498 = vmatprep.subr.bf16.mxu1 %v4740_v37 }
 0x5ce   :  { %4476 = vmatpush3.bf16.msra.mxu0 %v4475_v2  ;;  %v3035_v2 = vld [vmem:[#allocation9 + $0x160] sm:$0xff] }
 0x5cf   :  { %4477 = vmatprep.subr.bf16.mxu0 %v4740_v37  ;;  %v4529_v19 = vpack.c.bf16 %v3036_v3, %v3035_v2 }
 0x5d0   :  { %4500 = vmatpush3.bf16.msra.mxu1 %v4499_v33 }
 0x5d1   :  { %4501 = vmatprep.subr.bf16.mxu1 %v4740_v37 }
 0x5d2   :  { %4479 = vmatpush3.bf16.msra.mxu0 %v4478_v4  ;;  %v3133_v4 = vld [vmem:[#allocation10 + $0x1] ss:$0 sm:$0xff] }
 0x5d3   :  { %4480 = vmatprep.subr.bf16.mxu0 %v4740_v37 }
 0x5d4   :  { %4503 = vmatpush3.bf16.msra.mxu1 %v4502_v38 }
 0x5d5   :  { %4504 = vmatprep.subr.bf16.mxu1 %v4740_v37 }
 0x5d6   :  { %4482 = vmatpush3.bf16.msra.mxu0 %v4481_v23 }
 0x5d7   :  { %4483 = vmatprep.subr.bf16.mxu0 %v4740_v37 }
 0x5d8   :  { %4506 = vmatpush3.bf16.msra.mxu1 %v4505_v41 }
 0x5d9   :  { %4507 = vmatprep.subr.bf16.mxu1 %v4740_v37 }
 0x5da   :  { %4485 = vmatpush3.bf16.msra.mxu0 %v4484_v9  ;;  %v3037_v9 = vld [vmem:[#allocation9 + $0x170] sm:$0xff] }
 0x5db   :  { %4510 = vmatprep.subr.bf16.mxu0 %v4740_v37  ;;  %v4532_v10 = vpack.c.bf16 %v3038_v30, %v3037_v9 }
 0x5dc   :  { %4509 = vmatpush3.bf16.msra.mxu1 %v4508_v54 }
 0x690   :  { %v3168_v42 = vpop.f32.mrb[8].mxu0  ;;  %v3203_v43 = vpop.f32.mrb[12].mxu1 }
 0x691   :  { %v3169_v45 = vpop.f32.mrb[9].mxu0  ;;  %v3204_v46 = vpop.f32.mrb[13].mxu1 }
 0x692   :  { %v3170_v48 = vadd.f32 %v3169_v45, %v3168_v42  ;;  %v3205_v25 = vadd.f32 %v3204_v46, %v3203_v43 }
 0x694   :  { %v2751_v49 = vadd.f32 %v3170_v48, %v3132_v44 }
 0x696   :  { %v2821_v50 = vadd.f32 %v3205_v25, %v2751_v49 }
 0x698   :  { %v2825_v51 = vmul.f32 0.01, %v2821_v50  ;;  %vm2824_vm9 = vcmp.ge.f32.partialorder %v2821_v50, 0.0 }
 0x69a   :  { %v2826_v52 = vsel %vm2824_vm9, %v2821_v50, %v2825_v51 }
 0x69b   :  { %3290 = vmatmul.mubr.f32.vlgmr.msra.gmra.mrb[10].mxu0 %v2826_v52 }
 0x69c   :  { %3359 = vmatprep.mubr.msk.f32.mxu0 %vm4741_vm8, %v4738_v0  ;;  %4512 = vmatpush3.bf16.msra.mxu0 %v4511_v55  ;;  %v3029_v0 = vld [vmem:[#allocation9 + $0x130] sm:$0xff] }
 0x69d   :  { %4513 = vmatprep.subr.bf16.mxu0 %v4740_v37  ;;  %v4520_v60 = vpack.c.bf16 %v3030_v59, %v3029_v0 }
 0x6a0   :  { %4515 = vmatpush3.bf16.msra.mxu0 %v4514_v13 }
 0x6a1   :  { %4516 = vmatprep.subr.bf16.mxu0 %v4740_v37 }
 0x6a4   :  { %4518 = vmatpush3.bf16.msra.mxu0 %v4517_v17 }
 0x6a5   :  { %4519 = vmatprep.subr.bf16.mxu0 %v4740_v37 }
 0x6a8   :  { %4521 = vmatpush3.bf16.msra.mxu0 %v4520_v60 }
 0x6a9   :  { %4522 = vmatprep.subr.bf16.mxu0 %v4740_v37 }
 0x6ac   :  { %4524 = vmatpush3.bf16.msra.mxu0 %v4523_v62 }
 0x6ad   :  { %4525 = vmatprep.subr.bf16.mxu0 %v4740_v37 }
 0x6b0   :  { %4527 = vmatpush3.bf16.msra.mxu0 %v4526_v1 }
 0x6b1   :  { %4528 = vmatprep.subr.bf16.mxu0 %v4740_v37 }
 0x6b4   :  { %4530 = vmatpush3.bf16.msra.mxu0 %v4529_v19 }
 0x6b5   :  { %4531 = vmatprep.subr.bf16.mxu0 %v4740_v37  ;;  %v3135_v37 = vld [vmem:[#allocation10 + $0x3] ss:$0 sm:$0xff] }
 0x6b8   :  { %4533 = vmatpush3.bf16.msra.mxu0 %v4532_v10 }
 0x76e   :  { %v2917_v5 = vpop.f32.mrb[10].mxu0 }
 0x76f   :  { %v2918_v6 = vadd.f32 %v3133_v4, %v2917_v5  ;;  %v3291_v23 = vpop.f32.mrb[11].mxu0 }
 0x771   :  { %vm2921_vm10 = vcmp.ge.f32.partialorder %v2918_v6, 0.0  ;;  %v2922_v7 = vmul.f32 0.01, %v2918_v6 }
 0x773   :  { %v2923_v8 = vsel %vm2921_vm10, %v2918_v6, %v2922_v7 }
 0x774   :  { %3325 = vmatmul.mubr.f32.vlgmr.msra.gmra.mrb[14].mxu1 %v2923_v8 }
 0x847   :  { %v3015_v12 = vpop.f32.mrb[14].mxu1 }
 0x848   :  { %v3016_v47 = vadd.f32 %v3134_v11, %v3015_v12  ;;  %v3326_v14 = vpop.f32.mrb[15].mxu1 }
 0x84a   :  { %vm3019_vm11 = vcmp.ge.f32.partialorder %v3016_v47, 0.0  ;;  %v3020_v15 = vmul.f32 0.01, %v3016_v47 }
 0x84c   :  { %v3021_v16 = vsel %vm3019_vm11, %v3016_v47, %v3020_v15 }
 0x84d   :  { %3360 = vmatmul.mubr.f32.vlgmr.msra.gmra.mrb[12].mxu0 %v3021_v16 }
 0x920   :  { %v3113_v18 = vpop.f32.mrb[12].mxu0 }
 0x921   :  { %v3114_v20 = vadd.f32 %v3135_v37, %v3113_v18  ;;  %v3361_v22 = vpop.f32.mrb[13].mxu0 }
 0x923   :  { %3117 = vst [vmem:[%s5023_s7] sm:$0xff] %v3114_v20 }
 0x924   :  { %3122 = vsyncpa [#allocation3], 1 }
 0x925   :  { %3123 = vsyncpa [#allocation5], 1 }
 0x926   :  { %3124 = vsyncpa [#allocation8], 1 }
 0x927   :  { %3125 = vsyncpa [#allocation11], 1 }

</bundles_post_ra>
